<compile_context>
chip_gen: v6e
topology: v6e:2x2x1
jax: 0.10.0
libtpu: 0.0.40
codegen_flags: <defaults>
</compile_context>

<pallas_src>
import functools

import jax
import jax.numpy as jnp
from jax.experimental import pallas as pl
from jax.experimental.pallas import tpu as pltpu

_LN_EPS = 1e-5
_BF16 = jnp.bfloat16
_F32 = jnp.float32


def _layer_norm(x, gamma, beta, eps=_LN_EPS):
    mean = jnp.mean(x, axis=-1, keepdims=True)
    var = jnp.mean((x - mean) ** 2, axis=-1, keepdims=True)
    return (x - mean) * jax.lax.rsqrt(var + eps) * gamma + beta


def _block_kernel(x_ref, m_ref, a_ref,
                  wqkv_ref, bqkv_ref,
                  wo_ref, bo_ref,
                  g1_ref, be1_ref,
                  w1_ref, b1_ref, w2_ref, b2_ref,
                  g2_ref, be2_ref,
                  out_ref, *attn_refs,
                  n_head, num_edge_type):
    attn_ref = attn_refs[0] if attn_refs else None

    bt, n_nodes, d_model = x_ref.shape
    d_head = d_model // n_head
    rows = bt * n_nodes
    inv_sqrt = 1.0 / float(d_head) ** 0.5
    inv_e = 1.0 / float(num_edge_type)

    x = x_ref[...]                                   # (bt, N, D) f32 residual base
    xb = x.reshape(rows, d_model).astype(_BF16)      # bf16 MXU operand

    # ---- fused QKV projection: one (bt*N, D) @ (D, 3D) matmul ----
    qkv = jnp.dot(xb, wqkv_ref[...], preferred_element_type=_F32) + bqkv_ref[...]
    q = qkv[:, :d_model] * inv_sqrt                  # fold 1/sqrt(dh) once
    k = qkv[:, d_model:2 * d_model]
    v = qkv[:, 2 * d_model:]

    # ---- relational bias, hoisted out of the head loop ----
    key_bias = jnp.where(m_ref[...] > 0.5, 0.0, -1e9)         # (bt, 1, N)
    bias = a_ref[...] + key_bias[:, None, :, :]                # (bt, E, N, N)

    # ---- multi-relational multi-head attention ----
    y_acc = jnp.zeros((rows, d_model), _F32)
    for h in range(n_head):
        lo, hi = h * d_head, (h + 1) * d_head
        qh = q[:, lo:hi].reshape(bt, n_nodes, d_head).astype(_BF16)
        kh = k[:, lo:hi].reshape(bt, n_nodes, d_head).astype(_BF16)
        vh = v[:, lo:hi].reshape(bt, n_nodes, d_head).astype(_BF16)

        scores = jnp.einsum('bnd,bmd->bnm', qh, kh,
                            preferred_element_type=_F32)       # (bt, N, N)

        s = scores[:, None, :, :] + bias                       # (bt, E, N, N)
        s = s - jnp.max(s, axis=-1, keepdims=True)
        p = jnp.exp(s)
        p = p * pl.reciprocal(jnp.sum(p, axis=-1, keepdims=True), approx=True)

        if attn_ref is not None:
            # Output layout (bt, E*H, N, N) with flat index e*H + h, so the
            # wrapper reshape to (B, E, H, N, N) is free (no transpose).
            for e in range(num_edge_type):
                idx = e * n_head + h
                attn_ref[:, idx:idx + 1] = p[:, e:e + 1]

        # Sum over edge types first, then a single p@V matmul per head
        # (linearity: sum_e p_e @ V == (sum_e p_e) @ V).
        p_avg = (jnp.sum(p, axis=1) * inv_e).astype(_BF16)     # (bt, N, N)
        acc_h = jnp.einsum('bnm,bmd->bnd', p_avg, vh,
                           preferred_element_type=_F32)        # (bt, N, dh)
        # Fold the head offset into the Wo contraction (no concatenate).
        y_acc = y_acc + jnp.dot(acc_h.reshape(rows, d_head).astype(_BF16),
                                wo_ref[lo:hi, :],
                                preferred_element_type=_F32)

    y = (y_acc + bo_ref[...]).reshape(bt, n_nodes, d_model)

    # ---- output projection residual + AddNorm 1 (dropout = identity) ----
    x1 = _layer_norm(x + y, g1_ref[...], be1_ref[...])

    # ---- position-wise FFN + AddNorm 2 ----
    x1f = x1.reshape(rows, d_model).astype(_BF16)
    h1 = jnp.maximum(
        jnp.dot(x1f, w1_ref[...], preferred_element_type=_F32) + b1_ref[...], 0.0)
    y2 = jnp.dot(h1.astype(_BF16), w2_ref[...], preferred_element_type=_F32) + b2_ref[...]
    x2 = _layer_norm(x1 + y2.reshape(bt, n_nodes, d_model), g2_ref[...], be2_ref[...])

    out_ref[...] = x2


def multi_relational_block(x, node_mask, adjacencies, params, *, n_head,
                           return_attn=True, batch_block=None):
    """x: (B, N, D); node_mask: (B, N); adjacencies: (B, E, N, N)."""
    B, N, D = x.shape
    E = adjacencies.shape[1]
    d_ffn = params["w1"].shape[1]

    def step_block_bytes(bt):
        bb = 4 * (2 * bt * N * D + bt * N + bt * E * N * N)
        if return_attn:
            bb += 4 * bt * E * n_head * N * N
        return 2 * bb                       # double-buffered activation blocks

    if batch_block is None:
        # Smallest divisor of B giving >= 256 matmul rows (Bt*N), subject to a
        # ~24 MiB cap on the double-buffered activation block; falls back to the
        # largest divisor that fits.
        target = max(1, -(-256 // max(N, 1)))
        batch_block = 1
        for cand in range(1, B + 1):
            if B % cand == 0 and step_block_bytes(cand) <= (24 << 20):
                batch_block = cand
                if cand >= target:
                    break
    bt = int(batch_block)
    assert B % bt == 0, "batch_block must divide the batch size"
    grid = (B // bt,)

    x = x.astype(jnp.float32)
    mask3 = node_mask.reshape(B, 1, N).astype(jnp.float32)
    adjacencies = adjacencies.astype(jnp.float32)

    # bf16 weights for the MXU; biases / LayerNorm params stay f32.
    wqkv = jnp.concatenate(
        [params["wq"], params["wk"], params["wv"]], axis=1).astype(_BF16)   # (D, 3D)
    bqkv = jnp.concatenate(
        [params["bq"], params["bk"], params["bv"]], axis=1).astype(jnp.float32)  # (1, 3D)
    wo = params["wo"].astype(_BF16)
    w1 = params["w1"].astype(_BF16)
    w2 = params["w2"].astype(_BF16)

    kernel = functools.partial(_block_kernel, n_head=n_head, num_edge_type=E)

    def full(shape):
        nd = len(shape)
        return pl.BlockSpec(shape, lambda b, _nd=nd: (0,) * _nd)

    def per_batch(shape):
        nd = len(shape)
        return pl.BlockSpec((bt,) + shape[1:],
                            lambda b, _nd=nd: (b,) + (0,) * (_nd - 1))

    in_specs = [
        per_batch((B, N, D)),                 # x
        per_batch((B, 1, N)),                 # mask
        per_batch((B, E, N, N)),              # adjacency stack
        full((D, 3 * D)), full((1, 3 * D)),   # fused Wqkv, bqkv
        full((D, D)), full((1, D)),           # Wo, bo
        full((1, D)), full((1, D)),           # LN1 gamma, beta
        full((D, d_ffn)), full((1, d_ffn)),   # FFN W1, b1
        full((d_ffn, D)), full((1, D)),       # FFN W2, b2
        full((1, D)), full((1, D)),           # LN2 gamma, beta
    ]
    out_specs = [per_batch((B, N, D))]
    out_shape = [jax.ShapeDtypeStruct((B, N, D), jnp.float32)]
    if return_attn:
        # Attention weights in (B, E*H, N, N); wrapper reshape (free) to
        # (B, E, H, N, N) -- no XLA transpose on the largest tensor.
        out_specs.append(per_batch((B, E * n_head, N, N)))
        out_shape.append(jax.ShapeDtypeStruct((B, E * n_head, N, N), jnp.float32))

    # Advisory cost estimate.
    flops = (8 * B * N * D * D            # QKV + Wo projections
             + 4 * B * N * D * d_ffn      # FFN
             + 4 * B * N * N * D)         # scores + p@V
    transcendentals = B * E * n_head * N * N
    weight_bytes = 2 * (3 * D * D + D * D + 2 * D * d_ffn) + 4 * (3 * D + 6 * D + d_ffn)
    act_bytes = 4 * (2 * B * N * D + B * N + B * E * N * N)
    attn_bytes = 4 * B * E * n_head * N * N if return_attn else 0
    cost = pl.CostEstimate(flops=int(flops),
                           transcendentals=int(transcendentals),
                           bytes_accessed=int(weight_bytes + act_bytes + attn_bytes))

    # VMEM budget: double-buffered blocks + weights + headroom, capped at
    # 64 MiB so it is valid on v7x as well as v5e/v6e.
    vmem_limit = int(min(max(step_block_bytes(bt) + 2 * weight_bytes + (8 << 20),
                             32 << 20),
                         64 << 20))

    outs = pl.pallas_call(
        kernel,
        grid=grid,
        in_specs=in_specs,
        out_specs=tuple(out_specs),
        out_shape=tuple(out_shape),
        compiler_params=pltpu.CompilerParams(
            dimension_semantics=("parallel",),
            vmem_limit_bytes=vmem_limit),
        cost_estimate=cost,
    )(x, mask3, adjacencies,
      wqkv, bqkv, wo, params["bo"],
      params["g1"], params["be1"],
      w1, params["b1"], w2, params["b2"],
      params["g2"], params["be2"])

    if return_attn:
        out, attn = outs
        attn_weight = attn.reshape(B, E, n_head, N, N)   # free: no data movement
        return {"out": out, "attn_weight": attn_weight}
    (out,) = outs
    return {"out": out, "attn_weight": None}


def init_params(key, d_model, d_ffn):
    ks = jax.random.split(key, 6)
    w = lambda k, s: jax.random.normal(k, s, jnp.float32) * 0.02
    return dict(
        wq=w(ks[0], (d_model, d_model)), bq=jnp.zeros((1, d_model), jnp.float32),
        wk=w(ks[1], (d_model, d_model)), bk=jnp.zeros((1, d_model), jnp.float32),
        wv=w(ks[2], (d_model, d_model)), bv=jnp.zeros((1, d_model), jnp.float32),
        wo=w(ks[3], (d_model, d_model)), bo=jnp.zeros((1, d_model), jnp.float32),
        g1=jnp.ones((1, d_model), jnp.float32), be1=jnp.zeros((1, d_model), jnp.float32),
        w1=w(ks[4], (d_model, d_ffn)), b1=jnp.zeros((1, d_ffn), jnp.float32),
        w2=w(ks[5], (d_ffn, d_model)), b2=jnp.zeros((1, d_model), jnp.float32),
        g2=jnp.ones((1, d_model), jnp.float32), be2=jnp.zeros((1, d_model), jnp.float32),
    )


if __name__ == "__main__":
    # Small shapes: decoder-style block (encoder=False -> 3 edge types).
    B, N, D, F, H, E = 2, 16, 128, 256, 4, 3

    key = jax.random.PRNGKey(0)
    k_x, k_a, k_p = jax.random.split(key, 3)

    x = jax.random.normal(k_x, (B, N, D), jnp.float32)

    node_mask = jnp.ones((B, N), jnp.float32)
    node_mask = node_mask.at[:, 12:].set(0.0)       # pad out last 4 nodes

    # adjacency / attraction_adjacency / repulsion_adjacency -> (B, E, N, N)
    adj = (jax.random.uniform(k_a, (B, E, N, N)) > 0.5).astype(jnp.float32)

    params = init_params(k_p, D, F)

    result = multi_relational_block(x, node_mask, adj, params, n_head=H)
    jax.block_until_ready(result)
    assert result["out"].shape == (B, N, D)
    assert result["attn_weight"].shape == (B, E, H, N, N)
    assert bool(jnp.all(jnp.isfinite(result["out"])))
    assert bool(jnp.all(jnp.isfinite(result["attn_weight"])))

    # Attention-weights-free variant (skips the large HBM writeback).
    result_no_attn = multi_relational_block(
        x, node_mask, adj, params, n_head=H, return_attn=False)
    jax.block_until_ready(result_no_attn)
    assert result_no_attn["out"].shape == (B, N, D)

    print("KERNEL_OK")
</pallas_src>

<mosaic_0001>
module attributes {stable_mosaic.version = 11 : i64} {
  func.func @_block_kernel(%arg0: i32, %arg1: memref<2x16x128xf32, #tpu.memory_space<vmem>>, %arg2: memref<2x1x16xf32, #tpu.memory_space<vmem>>, %arg3: memref<2x3x16x16xf32, #tpu.memory_space<vmem>>, %arg4: memref<128x384xbf16, #tpu.memory_space<vmem>>, %arg5: memref<1x384xf32, #tpu.memory_space<vmem>>, %arg6: memref<128x128xbf16, #tpu.memory_space<vmem>>, %arg7: memref<1x128xf32, #tpu.memory_space<vmem>>, %arg8: memref<1x128xf32, #tpu.memory_space<vmem>>, %arg9: memref<1x128xf32, #tpu.memory_space<vmem>>, %arg10: memref<128x256xbf16, #tpu.memory_space<vmem>>, %arg11: memref<1x256xf32, #tpu.memory_space<vmem>>, %arg12: memref<256x128xbf16, #tpu.memory_space<vmem>>, %arg13: memref<1x128xf32, #tpu.memory_space<vmem>>, %arg14: memref<1x128xf32, #tpu.memory_space<vmem>>, %arg15: memref<1x128xf32, #tpu.memory_space<vmem>>, %arg16: memref<2x16x128xf32, #tpu.memory_space<vmem>>, %arg17: memref<2x12x16x16xf32, #tpu.memory_space<vmem>>) attributes {dimension_semantics = [#tpu.dimension_semantics<parallel>], iteration_bounds = array<i64: 1>, scalar_prefetch = 0 : i64, scratch_operands = 0 : i64, tpu.core_type = #tpu.core_type<tc>, window_params = [{transform_indices = @transform_0, window_bounds = array<i64: 2, 16, 128>}, {transform_indices = @transform_1, window_bounds = array<i64: 2, 1, 16>}, {transform_indices = @transform_2, window_bounds = array<i64: 2, 3, 16, 16>}, {pipeline_mode = #tpu.pipeline_mode<synchronous>, transform_indices = @transform_3, window_bounds = array<i64: 128, 384>}, {pipeline_mode = #tpu.pipeline_mode<synchronous>, transform_indices = @transform_4, window_bounds = array<i64: 1, 384>}, {pipeline_mode = #tpu.pipeline_mode<synchronous>, transform_indices = @transform_5, window_bounds = array<i64: 128, 128>}, {pipeline_mode = #tpu.pipeline_mode<synchronous>, transform_indices = @transform_6, window_bounds = array<i64: 1, 128>}, {pipeline_mode = #tpu.pipeline_mode<synchronous>, transform_indices = @transform_7, window_bounds = array<i64: 1, 128>}, {pipeline_mode = #tpu.pipeline_mode<synchronous>, transform_indices = @transform_8, window_bounds = array<i64: 1, 128>}, {pipeline_mode = #tpu.pipeline_mode<synchronous>, transform_indices = @transform_9, window_bounds = array<i64: 128, 256>}, {pipeline_mode = #tpu.pipeline_mode<synchronous>, transform_indices = @transform_10, window_bounds = array<i64: 1, 256>}, {pipeline_mode = #tpu.pipeline_mode<synchronous>, transform_indices = @transform_11, window_bounds = array<i64: 256, 128>}, {pipeline_mode = #tpu.pipeline_mode<synchronous>, transform_indices = @transform_12, window_bounds = array<i64: 1, 128>}, {pipeline_mode = #tpu.pipeline_mode<synchronous>, transform_indices = @transform_13, window_bounds = array<i64: 1, 128>}, {pipeline_mode = #tpu.pipeline_mode<synchronous>, transform_indices = @transform_14, window_bounds = array<i64: 1, 128>}, {transform_indices = @transform_15, window_bounds = array<i64: 2, 16, 128>}, {transform_indices = @transform_16, window_bounds = array<i64: 2, 12, 16, 16>}]} {
    %c0 = arith.constant 0 : index
    %c0_0 = arith.constant 0 : index
    %c0_1 = arith.constant 0 : index
    %0 = vector.load %arg1[%c0, %c0_0, %c0_1] : memref<2x16x128xf32, #tpu.memory_space<vmem>>, vector<2x16x128xf32>
    %1 = vector.shape_cast %0 : vector<2x16x128xf32> to vector<32x128xf32>
    %2 = arith.truncf %1 : vector<32x128xf32> to vector<32x128xbf16>
    %c0_2 = arith.constant 0 : index
    %c0_3 = arith.constant 0 : index
    %3 = vector.load %arg4[%c0_2, %c0_3] : memref<128x384xbf16, #tpu.memory_space<vmem>>, vector<128x384xbf16>
    %cst = arith.constant dense<0.000000e+00> : vector<32x384xf32>
    %4 = tpu.matmul %2, %3, %cst {dimension_numbers = #tpu.dot_dimension_numbers<[1], [0], [0], [1], [0, 0, 1, 1], [], []>} : vector<32x128xbf16>, vector<128x384xbf16>, vector<32x384xf32> -> vector<32x384xf32>
    %c0_4 = arith.constant 0 : index
    %c0_5 = arith.constant 0 : index
    %5 = vector.load %arg5[%c0_4, %c0_5] : memref<1x384xf32, #tpu.memory_space<vmem>>, vector<1x384xf32>
    %6 = vector.broadcast %5 : vector<1x384xf32> to vector<32x384xf32>
    %7 = arith.addf %4, %6 : vector<32x384xf32>
    %8 = vector.extract_strided_slice %7 {offsets = [0, 0], sizes = [32, 128], strides = [1, 1]} : vector<32x384xf32> to vector<32x128xf32>
    %cst_6 = arith.constant 0.176776692 : f32
    %9 = vector.broadcast %cst_6 : f32 to vector<32x128xf32>
    %10 = arith.mulf %8, %9 : vector<32x128xf32>
    %11 = vector.extract_strided_slice %7 {offsets = [0, 128], sizes = [32, 128], strides = [1, 1]} : vector<32x384xf32> to vector<32x128xf32>
    %12 = vector.extract_strided_slice %7 {offsets = [0, 256], sizes = [32, 128], strides = [1, 1]} : vector<32x384xf32> to vector<32x128xf32>
    %c0_7 = arith.constant 0 : index
    %c0_8 = arith.constant 0 : index
    %c0_9 = arith.constant 0 : index
    %13 = vector.load %arg2[%c0_7, %c0_8, %c0_9] : memref<2x1x16xf32, #tpu.memory_space<vmem>>, vector<2x1x16xf32>
    %cst_10 = arith.constant 5.000000e-01 : f32
    %14 = vector.broadcast %cst_10 : f32 to vector<2x1x16xf32>
    %15 = arith.cmpf ogt, %13, %14 : vector<2x1x16xf32>
    %cst_11 = arith.constant 0.000000e+00 : f32
    %cst_12 = arith.constant -1.000000e+09 : f32
    %16 = vector.broadcast %cst_11 : f32 to vector<2x1x16xf32>
    %17 = vector.broadcast %cst_12 : f32 to vector<2x1x16xf32>
    %18 = arith.select %15, %16, %17 : vector<2x1x16xi1>, vector<2x1x16xf32>
    %c0_13 = arith.constant 0 : index
    %c0_14 = arith.constant 0 : index
    %c0_15 = arith.constant 0 : index
    %c0_16 = arith.constant 0 : index
    %19 = vector.load %arg3[%c0_13, %c0_14, %c0_15, %c0_16] : memref<2x3x16x16xf32, #tpu.memory_space<vmem>>, vector<2x3x16x16xf32>
    %20 = vector.shape_cast %18 : vector<2x1x16xf32> to vector<2x1x1x16xf32>
    %21 = vector.broadcast %20 : vector<2x1x1x16xf32> to vector<2x3x16x16xf32>
    %22 = arith.addf %19, %21 : vector<2x3x16x16xf32>
    %cst_17 = arith.constant 0.000000e+00 : f32
    %23 = vector.broadcast %cst_17 : f32 to vector<32x128xf32>
    %24 = vector.extract_strided_slice %10 {offsets = [0, 0], sizes = [32, 32], strides = [1, 1]} : vector<32x128xf32> to vector<32x32xf32>
    %25 = vector.shape_cast %24 : vector<32x32xf32> to vector<2x16x32xf32>
    %26 = arith.truncf %25 : vector<2x16x32xf32> to vector<2x16x32xbf16>
    %27 = vector.extract_strided_slice %11 {offsets = [0, 0], sizes = [32, 32], strides = [1, 1]} : vector<32x128xf32> to vector<32x32xf32>
    %28 = vector.shape_cast %27 : vector<32x32xf32> to vector<2x16x32xf32>
    %29 = arith.truncf %28 : vector<2x16x32xf32> to vector<2x16x32xbf16>
    %30 = vector.extract_strided_slice %12 {offsets = [0, 0], sizes = [32, 32], strides = [1, 1]} : vector<32x128xf32> to vector<32x32xf32>
    %31 = vector.shape_cast %30 : vector<32x32xf32> to vector<2x16x32xf32>
    %32 = arith.truncf %31 : vector<2x16x32xf32> to vector<2x16x32xbf16>
    "tpu.trace_start"() <{level = 10 : i32, message = "bnd,bmd->bnm"}> : () -> ()
    %cst_18 = arith.constant dense<0.000000e+00> : vector<2x16x16xf32>
    %33 = tpu.matmul %26, %29, %cst_18 {dimension_numbers = #tpu.dot_dimension_numbers<[2], [2], [1], [1], [0, 0, 0, 1, 1, 1], [0], [0]>} : vector<2x16x32xbf16>, vector<2x16x32xbf16>, vector<2x16x16xf32> -> vector<2x16x16xf32>
    "tpu.trace_stop"() : () -> ()
    %34 = vector.shape_cast %33 : vector<2x16x16xf32> to vector<2x1x16x16xf32>
    %35 = vector.broadcast %34 : vector<2x1x16x16xf32> to vector<2x3x16x16xf32>
    %36 = arith.addf %35, %22 : vector<2x3x16x16xf32>
    %cst_19 = arith.constant dense<0xFF800000> : vector<2x3x16xf32>
    %37 = vector.multi_reduction <maximumf>, %36, %cst_19 [3] : vector<2x3x16x16xf32> to vector<2x3x16xf32>
    %38 = vector.shape_cast %37 : vector<2x3x16xf32> to vector<2x3x16x1xf32>
    %39 = vector.broadcast %38 : vector<2x3x16x1xf32> to vector<2x3x16x16xf32>
    %40 = arith.subf %36, %39 : vector<2x3x16x16xf32>
    %41 = math.exp %40 : vector<2x3x16x16xf32>
    %cst_20 = arith.constant dense<0.000000e+00> : vector<2x3x16xf32>
    %42 = vector.multi_reduction <add>, %41, %cst_20 [3] : vector<2x3x16x16xf32> to vector<2x3x16xf32>
    %43 = vector.shape_cast %42 : vector<2x3x16xf32> to vector<2x3x16x1xf32>
    %44 = tpu.reciprocal %43 {approx = true} : vector<2x3x16x1xf32> -> vector<2x3x16x1xf32>
    %45 = vector.broadcast %44 : vector<2x3x16x1xf32> to vector<2x3x16x16xf32>
    %46 = arith.mulf %41, %45 : vector<2x3x16x16xf32>
    %47 = vector.extract_strided_slice %46 {offsets = [0, 0, 0, 0], sizes = [2, 1, 16, 16], strides = [1, 1, 1, 1]} : vector<2x3x16x16xf32> to vector<2x1x16x16xf32>
    %c0_21 = arith.constant 0 : index
    %c0_22 = arith.constant 0 : index
    %c0_23 = arith.constant 0 : index
    %c0_24 = arith.constant 0 : index
    %48 = vector.load %arg17[%c0_21, %c0_22, %c0_23, %c0_24] : memref<2x12x16x16xf32, #tpu.memory_space<vmem>>, vector<2x1x16x16xf32>
    tpu.vector_store %arg17[%c0_21, %c0_22, %c0_23, %c0_24], %47 {strides = array<i32>} : memref<2x12x16x16xf32, #tpu.memory_space<vmem>>, vector<2x1x16x16xf32>,
    %49 = vector.extract_strided_slice %46 {offsets = [0, 1, 0, 0], sizes = [2, 1, 16, 16], strides = [1, 1, 1, 1]} : vector<2x3x16x16xf32> to vector<2x1x16x16xf32>
    %c0_25 = arith.constant 0 : index
    %c4 = arith.constant 4 : index
    %c0_26 = arith.constant 0 : index
    %c0_27 = arith.constant 0 : index
    %50 = vector.load %arg17[%c0_25, %c4, %c0_26, %c0_27] : memref<2x12x16x16xf32, #tpu.memory_space<vmem>>, vector<2x1x16x16xf32>
    tpu.vector_store %arg17[%c0_25, %c4, %c0_26, %c0_27], %49 {strides = array<i32>} : memref<2x12x16x16xf32, #tpu.memory_space<vmem>>, vector<2x1x16x16xf32>,
    %51 = vector.extract_strided_slice %46 {offsets = [0, 2, 0, 0], sizes = [2, 1, 16, 16], strides = [1, 1, 1, 1]} : vector<2x3x16x16xf32> to vector<2x1x16x16xf32>
    %c0_28 = arith.constant 0 : index
    %c8 = arith.constant 8 : index
    %c0_29 = arith.constant 0 : index
    %c0_30 = arith.constant 0 : index
    %52 = vector.load %arg17[%c0_28, %c8, %c0_29, %c0_30] : memref<2x12x16x16xf32, #tpu.memory_space<vmem>>, vector<2x1x16x16xf32>
    tpu.vector_store %arg17[%c0_28, %c8, %c0_29, %c0_30], %51 {strides = array<i32>} : memref<2x12x16x16xf32, #tpu.memory_space<vmem>>, vector<2x1x16x16xf32>,
    %cst_31 = arith.constant dense<0.000000e+00> : vector<2x16x16xf32>
    %53 = vector.multi_reduction <add>, %46, %cst_31 [1] : vector<2x3x16x16xf32> to vector<2x16x16xf32>
    %cst_32 = arith.constant 0.333333343 : f32
    %54 = vector.broadcast %cst_32 : f32 to vector<2x16x16xf32>
    %55 = arith.mulf %53, %54 : vector<2x16x16xf32>
    %56 = arith.truncf %55 : vector<2x16x16xf32> to vector<2x16x16xbf16>
    "tpu.trace_start"() <{level = 10 : i32, message = "bnm,bmd->bnd"}> : () -> ()
    %cst_33 = arith.constant dense<0.000000e+00> : vector<2x16x32xf32>
    %57 = tpu.matmul %56, %32, %cst_33 {dimension_numbers = #tpu.dot_dimension_numbers<[2], [1], [1], [2], [0, 0, 0, 1, 1, 2], [0], [0]>} : vector<2x16x16xbf16>, vector<2x16x32xbf16>, vector<2x16x32xf32> -> vector<2x16x32xf32>
    "tpu.trace_stop"() : () -> ()
    %58 = vector.shape_cast %57 : vector<2x16x32xf32> to vector<32x32xf32>
    %59 = arith.truncf %58 : vector<32x32xf32> to vector<32x32xbf16>
    %c0_34 = arith.constant 0 : index
    %c0_35 = arith.constant 0 : index
    %60 = vector.load %arg6[%c0_34, %c0_35] : memref<128x128xbf16, #tpu.memory_space<vmem>>, vector<32x128xbf16>
    %cst_36 = arith.constant dense<0.000000e+00> : vector<32x128xf32>
    %61 = tpu.matmul %59, %60, %cst_36 {dimension_numbers = #tpu.dot_dimension_numbers<[1], [0], [0], [1], [0, 0, 1, 1], [], []>} : vector<32x32xbf16>, vector<32x128xbf16>, vector<32x128xf32> -> vector<32x128xf32>
    %62 = arith.addf %23, %61 : vector<32x128xf32>
    %63 = vector.extract_strided_slice %10 {offsets = [0, 32], sizes = [32, 32], strides = [1, 1]} : vector<32x128xf32> to vector<32x32xf32>
    %64 = vector.shape_cast %63 : vector<32x32xf32> to vector<2x16x32xf32>
    %65 = arith.truncf %64 : vector<2x16x32xf32> to vector<2x16x32xbf16>
    %66 = vector.extract_strided_slice %11 {offsets = [0, 32], sizes = [32, 32], strides = [1, 1]} : vector<32x128xf32> to vector<32x32xf32>
    %67 = vector.shape_cast %66 : vector<32x32xf32> to vector<2x16x32xf32>
    %68 = arith.truncf %67 : vector<2x16x32xf32> to vector<2x16x32xbf16>
    %69 = vector.extract_strided_slice %12 {offsets = [0, 32], sizes = [32, 32], strides = [1, 1]} : vector<32x128xf32> to vector<32x32xf32>
    %70 = vector.shape_cast %69 : vector<32x32xf32> to vector<2x16x32xf32>
    %71 = arith.truncf %70 : vector<2x16x32xf32> to vector<2x16x32xbf16>
    "tpu.trace_start"() <{level = 10 : i32, message = "bnd,bmd->bnm"}> : () -> ()
    %cst_37 = arith.constant dense<0.000000e+00> : vector<2x16x16xf32>
    %72 = tpu.matmul %65, %68, %cst_37 {dimension_numbers = #tpu.dot_dimension_numbers<[2], [2], [1], [1], [0, 0, 0, 1, 1, 1], [0], [0]>} : vector<2x16x32xbf16>, vector<2x16x32xbf16>, vector<2x16x16xf32> -> vector<2x16x16xf32>
    "tpu.trace_stop"() : () -> ()
    %73 = vector.shape_cast %72 : vector<2x16x16xf32> to vector<2x1x16x16xf32>
    %74 = vector.broadcast %73 : vector<2x1x16x16xf32> to vector<2x3x16x16xf32>
    %75 = arith.addf %74, %22 : vector<2x3x16x16xf32>
    %cst_38 = arith.constant dense<0xFF800000> : vector<2x3x16xf32>
    %76 = vector.multi_reduction <maximumf>, %75, %cst_38 [3] : vector<2x3x16x16xf32> to vector<2x3x16xf32>
    %77 = vector.shape_cast %76 : vector<2x3x16xf32> to vector<2x3x16x1xf32>
    %78 = vector.broadcast %77 : vector<2x3x16x1xf32> to vector<2x3x16x16xf32>
    %79 = arith.subf %75, %78 : vector<2x3x16x16xf32>
    %80 = math.exp %79 : vector<2x3x16x16xf32>
    %cst_39 = arith.constant dense<0.000000e+00> : vector<2x3x16xf32>
    %81 = vector.multi_reduction <add>, %80, %cst_39 [3] : vector<2x3x16x16xf32> to vector<2x3x16xf32>
    %82 = vector.shape_cast %81 : vector<2x3x16xf32> to vector<2x3x16x1xf32>
    %83 = tpu.reciprocal %82 {approx = true} : vector<2x3x16x1xf32> -> vector<2x3x16x1xf32>
    %84 = vector.broadcast %83 : vector<2x3x16x1xf32> to vector<2x3x16x16xf32>
    %85 = arith.mulf %80, %84 : vector<2x3x16x16xf32>
    %86 = vector.extract_strided_slice %85 {offsets = [0, 0, 0, 0], sizes = [2, 1, 16, 16], strides = [1, 1, 1, 1]} : vector<2x3x16x16xf32> to vector<2x1x16x16xf32>
    %c0_40 = arith.constant 0 : index
    %c1 = arith.constant 1 : index
    %c0_41 = arith.constant 0 : index
    %c0_42 = arith.constant 0 : index
    %87 = vector.load %arg17[%c0_40, %c1, %c0_41, %c0_42] : memref<2x12x16x16xf32, #tpu.memory_space<vmem>>, vector<2x1x16x16xf32>
    tpu.vector_store %arg17[%c0_40, %c1, %c0_41, %c0_42], %86 {strides = array<i32>} : memref<2x12x16x16xf32, #tpu.memory_space<vmem>>, vector<2x1x16x16xf32>,
    %88 = vector.extract_strided_slice %85 {offsets = [0, 1, 0, 0], sizes = [2, 1, 16, 16], strides = [1, 1, 1, 1]} : vector<2x3x16x16xf32> to vector<2x1x16x16xf32>
    %c0_43 = arith.constant 0 : index
    %c5 = arith.constant 5 : index
    %c0_44 = arith.constant 0 : index
    %c0_45 = arith.constant 0 : index
    %89 = vector.load %arg17[%c0_43, %c5, %c0_44, %c0_45] : memref<2x12x16x16xf32, #tpu.memory_space<vmem>>, vector<2x1x16x16xf32>
    tpu.vector_store %arg17[%c0_43, %c5, %c0_44, %c0_45], %88 {strides = array<i32>} : memref<2x12x16x16xf32, #tpu.memory_space<vmem>>, vector<2x1x16x16xf32>,
    %90 = vector.extract_strided_slice %85 {offsets = [0, 2, 0, 0], sizes = [2, 1, 16, 16], strides = [1, 1, 1, 1]} : vector<2x3x16x16xf32> to vector<2x1x16x16xf32>
    %c0_46 = arith.constant 0 : index
    %c9 = arith.constant 9 : index
    %c0_47 = arith.constant 0 : index
    %c0_48 = arith.constant 0 : index
    %91 = vector.load %arg17[%c0_46, %c9, %c0_47, %c0_48] : memref<2x12x16x16xf32, #tpu.memory_space<vmem>>, vector<2x1x16x16xf32>
    tpu.vector_store %arg17[%c0_46, %c9, %c0_47, %c0_48], %90 {strides = array<i32>} : memref<2x12x16x16xf32, #tpu.memory_space<vmem>>, vector<2x1x16x16xf32>,
    %cst_49 = arith.constant dense<0.000000e+00> : vector<2x16x16xf32>
    %92 = vector.multi_reduction <add>, %85, %cst_49 [1] : vector<2x3x16x16xf32> to vector<2x16x16xf32>
    %cst_50 = arith.constant 0.333333343 : f32
    %93 = vector.broadcast %cst_50 : f32 to vector<2x16x16xf32>
    %94 = arith.mulf %92, %93 : vector<2x16x16xf32>
    %95 = arith.truncf %94 : vector<2x16x16xf32> to vector<2x16x16xbf16>
    "tpu.trace_start"() <{level = 10 : i32, message = "bnm,bmd->bnd"}> : () -> ()
    %cst_51 = arith.constant dense<0.000000e+00> : vector<2x16x32xf32>
    %96 = tpu.matmul %95, %71, %cst_51 {dimension_numbers = #tpu.dot_dimension_numbers<[2], [1], [1], [2], [0, 0, 0, 1, 1, 2], [0], [0]>} : vector<2x16x16xbf16>, vector<2x16x32xbf16>, vector<2x16x32xf32> -> vector<2x16x32xf32>
    "tpu.trace_stop"() : () -> ()
    %97 = vector.shape_cast %96 : vector<2x16x32xf32> to vector<32x32xf32>
    %98 = arith.truncf %97 : vector<32x32xf32> to vector<32x32xbf16>
    %c32 = arith.constant 32 : index
    %c0_52 = arith.constant 0 : index
    %99 = vector.load %arg6[%c32, %c0_52] : memref<128x128xbf16, #tpu.memory_space<vmem>>, vector<32x128xbf16>
    %cst_53 = arith.constant dense<0.000000e+00> : vector<32x128xf32>
    %100 = tpu.matmul %98, %99, %cst_53 {dimension_numbers = #tpu.dot_dimension_numbers<[1], [0], [0], [1], [0, 0, 1, 1], [], []>} : vector<32x32xbf16>, vector<32x128xbf16>, vector<32x128xf32> -> vector<32x128xf32>
    %101 = arith.addf %62, %100 : vector<32x128xf32>
    %102 = vector.extract_strided_slice %10 {offsets = [0, 64], sizes = [32, 32], strides = [1, 1]} : vector<32x128xf32> to vector<32x32xf32>
    %103 = vector.shape_cast %102 : vector<32x32xf32> to vector<2x16x32xf32>
    %104 = arith.truncf %103 : vector<2x16x32xf32> to vector<2x16x32xbf16>
    %105 = vector.extract_strided_slice %11 {offsets = [0, 64], sizes = [32, 32], strides = [1, 1]} : vector<32x128xf32> to vector<32x32xf32>
    %106 = vector.shape_cast %105 : vector<32x32xf32> to vector<2x16x32xf32>
    %107 = arith.truncf %106 : vector<2x16x32xf32> to vector<2x16x32xbf16>
    %108 = vector.extract_strided_slice %12 {offsets = [0, 64], sizes = [32, 32], strides = [1, 1]} : vector<32x128xf32> to vector<32x32xf32>
    %109 = vector.shape_cast %108 : vector<32x32xf32> to vector<2x16x32xf32>
    %110 = arith.truncf %109 : vector<2x16x32xf32> to vector<2x16x32xbf16>
    "tpu.trace_start"() <{level = 10 : i32, message = "bnd,bmd->bnm"}> : () -> ()
    %cst_54 = arith.constant dense<0.000000e+00> : vector<2x16x16xf32>
    %111 = tpu.matmul %104, %107, %cst_54 {dimension_numbers = #tpu.dot_dimension_numbers<[2], [2], [1], [1], [0, 0, 0, 1, 1, 1], [0], [0]>} : vector<2x16x32xbf16>, vector<2x16x32xbf16>, vector<2x16x16xf32> -> vector<2x16x16xf32>
    "tpu.trace_stop"() : () -> ()
    %112 = vector.shape_cast %111 : vector<2x16x16xf32> to vector<2x1x16x16xf32>
    %113 = vector.broadcast %112 : vector<2x1x16x16xf32> to vector<2x3x16x16xf32>
    %114 = arith.addf %113, %22 : vector<2x3x16x16xf32>
    %cst_55 = arith.constant dense<0xFF800000> : vector<2x3x16xf32>
    %115 = vector.multi_reduction <maximumf>, %114, %cst_55 [3] : vector<2x3x16x16xf32> to vector<2x3x16xf32>
    %116 = vector.shape_cast %115 : vector<2x3x16xf32> to vector<2x3x16x1xf32>
    %117 = vector.broadcast %116 : vector<2x3x16x1xf32> to vector<2x3x16x16xf32>
    %118 = arith.subf %114, %117 : vector<2x3x16x16xf32>
    %119 = math.exp %118 : vector<2x3x16x16xf32>
    %cst_56 = arith.constant dense<0.000000e+00> : vector<2x3x16xf32>
    %120 = vector.multi_reduction <add>, %119, %cst_56 [3] : vector<2x3x16x16xf32> to vector<2x3x16xf32>
    %121 = vector.shape_cast %120 : vector<2x3x16xf32> to vector<2x3x16x1xf32>
    %122 = tpu.reciprocal %121 {approx = true} : vector<2x3x16x1xf32> -> vector<2x3x16x1xf32>
    %123 = vector.broadcast %122 : vector<2x3x16x1xf32> to vector<2x3x16x16xf32>
    %124 = arith.mulf %119, %123 : vector<2x3x16x16xf32>
    %125 = vector.extract_strided_slice %124 {offsets = [0, 0, 0, 0], sizes = [2, 1, 16, 16], strides = [1, 1, 1, 1]} : vector<2x3x16x16xf32> to vector<2x1x16x16xf32>
    %c0_57 = arith.constant 0 : index
    %c2 = arith.constant 2 : index
    %c0_58 = arith.constant 0 : index
    %c0_59 = arith.constant 0 : index
    %126 = vector.load %arg17[%c0_57, %c2, %c0_58, %c0_59] : memref<2x12x16x16xf32, #tpu.memory_space<vmem>>, vector<2x1x16x16xf32>
    tpu.vector_store %arg17[%c0_57, %c2, %c0_58, %c0_59], %125 {strides = array<i32>} : memref<2x12x16x16xf32, #tpu.memory_space<vmem>>, vector<2x1x16x16xf32>,
    %127 = vector.extract_strided_slice %124 {offsets = [0, 1, 0, 0], sizes = [2, 1, 16, 16], strides = [1, 1, 1, 1]} : vector<2x3x16x16xf32> to vector<2x1x16x16xf32>
    %c0_60 = arith.constant 0 : index
    %c6 = arith.constant 6 : index
    %c0_61 = arith.constant 0 : index
    %c0_62 = arith.constant 0 : index
    %128 = vector.load %arg17[%c0_60, %c6, %c0_61, %c0_62] : memref<2x12x16x16xf32, #tpu.memory_space<vmem>>, vector<2x1x16x16xf32>
    tpu.vector_store %arg17[%c0_60, %c6, %c0_61, %c0_62], %127 {strides = array<i32>} : memref<2x12x16x16xf32, #tpu.memory_space<vmem>>, vector<2x1x16x16xf32>,
    %129 = vector.extract_strided_slice %124 {offsets = [0, 2, 0, 0], sizes = [2, 1, 16, 16], strides = [1, 1, 1, 1]} : vector<2x3x16x16xf32> to vector<2x1x16x16xf32>
    %c0_63 = arith.constant 0 : index
    %c10 = arith.constant 10 : index
    %c0_64 = arith.constant 0 : index
    %c0_65 = arith.constant 0 : index
    %130 = vector.load %arg17[%c0_63, %c10, %c0_64, %c0_65] : memref<2x12x16x16xf32, #tpu.memory_space<vmem>>, vector<2x1x16x16xf32>
    tpu.vector_store %arg17[%c0_63, %c10, %c0_64, %c0_65], %129 {strides = array<i32>} : memref<2x12x16x16xf32, #tpu.memory_space<vmem>>, vector<2x1x16x16xf32>,
    %cst_66 = arith.constant dense<0.000000e+00> : vector<2x16x16xf32>
    %131 = vector.multi_reduction <add>, %124, %cst_66 [1] : vector<2x3x16x16xf32> to vector<2x16x16xf32>
    %cst_67 = arith.constant 0.333333343 : f32
    %132 = vector.broadcast %cst_67 : f32 to vector<2x16x16xf32>
    %133 = arith.mulf %131, %132 : vector<2x16x16xf32>
    %134 = arith.truncf %133 : vector<2x16x16xf32> to vector<2x16x16xbf16>
    "tpu.trace_start"() <{level = 10 : i32, message = "bnm,bmd->bnd"}> : () -> ()
    %cst_68 = arith.constant dense<0.000000e+00> : vector<2x16x32xf32>
    %135 = tpu.matmul %134, %110, %cst_68 {dimension_numbers = #tpu.dot_dimension_numbers<[2], [1], [1], [2], [0, 0, 0, 1, 1, 2], [0], [0]>} : vector<2x16x16xbf16>, vector<2x16x32xbf16>, vector<2x16x32xf32> -> vector<2x16x32xf32>
    "tpu.trace_stop"() : () -> ()
    %136 = vector.shape_cast %135 : vector<2x16x32xf32> to vector<32x32xf32>
    %137 = arith.truncf %136 : vector<32x32xf32> to vector<32x32xbf16>
    %c64 = arith.constant 64 : index
    %c0_69 = arith.constant 0 : index
    %138 = vector.load %arg6[%c64, %c0_69] : memref<128x128xbf16, #tpu.memory_space<vmem>>, vector<32x128xbf16>
    %cst_70 = arith.constant dense<0.000000e+00> : vector<32x128xf32>
    %139 = tpu.matmul %137, %138, %cst_70 {dimension_numbers = #tpu.dot_dimension_numbers<[1], [0], [0], [1], [0, 0, 1, 1], [], []>} : vector<32x32xbf16>, vector<32x128xbf16>, vector<32x128xf32> -> vector<32x128xf32>
    %140 = arith.addf %101, %139 : vector<32x128xf32>
    %141 = vector.extract_strided_slice %10 {offsets = [0, 96], sizes = [32, 32], strides = [1, 1]} : vector<32x128xf32> to vector<32x32xf32>
    %142 = vector.shape_cast %141 : vector<32x32xf32> to vector<2x16x32xf32>
    %143 = arith.truncf %142 : vector<2x16x32xf32> to vector<2x16x32xbf16>
    %144 = vector.extract_strided_slice %11 {offsets = [0, 96], sizes = [32, 32], strides = [1, 1]} : vector<32x128xf32> to vector<32x32xf32>
    %145 = vector.shape_cast %144 : vector<32x32xf32> to vector<2x16x32xf32>
    %146 = arith.truncf %145 : vector<2x16x32xf32> to vector<2x16x32xbf16>
    %147 = vector.extract_strided_slice %12 {offsets = [0, 96], sizes = [32, 32], strides = [1, 1]} : vector<32x128xf32> to vector<32x32xf32>
    %148 = vector.shape_cast %147 : vector<32x32xf32> to vector<2x16x32xf32>
    %149 = arith.truncf %148 : vector<2x16x32xf32> to vector<2x16x32xbf16>
    "tpu.trace_start"() <{level = 10 : i32, message = "bnd,bmd->bnm"}> : () -> ()
    %cst_71 = arith.constant dense<0.000000e+00> : vector<2x16x16xf32>
    %150 = tpu.matmul %143, %146, %cst_71 {dimension_numbers = #tpu.dot_dimension_numbers<[2], [2], [1], [1], [0, 0, 0, 1, 1, 1], [0], [0]>} : vector<2x16x32xbf16>, vector<2x16x32xbf16>, vector<2x16x16xf32> -> vector<2x16x16xf32>
    "tpu.trace_stop"() : () -> ()
    %151 = vector.shape_cast %150 : vector<2x16x16xf32> to vector<2x1x16x16xf32>
    %152 = vector.broadcast %151 : vector<2x1x16x16xf32> to vector<2x3x16x16xf32>
    %153 = arith.addf %152, %22 : vector<2x3x16x16xf32>
    %cst_72 = arith.constant dense<0xFF800000> : vector<2x3x16xf32>
    %154 = vector.multi_reduction <maximumf>, %153, %cst_72 [3] : vector<2x3x16x16xf32> to vector<2x3x16xf32>
    %155 = vector.shape_cast %154 : vector<2x3x16xf32> to vector<2x3x16x1xf32>
    %156 = vector.broadcast %155 : vector<2x3x16x1xf32> to vector<2x3x16x16xf32>
    %157 = arith.subf %153, %156 : vector<2x3x16x16xf32>
    %158 = math.exp %157 : vector<2x3x16x16xf32>
    %cst_73 = arith.constant dense<0.000000e+00> : vector<2x3x16xf32>
    %159 = vector.multi_reduction <add>, %158, %cst_73 [3] : vector<2x3x16x16xf32> to vector<2x3x16xf32>
    %160 = vector.shape_cast %159 : vector<2x3x16xf32> to vector<2x3x16x1xf32>
    %161 = tpu.reciprocal %160 {approx = true} : vector<2x3x16x1xf32> -> vector<2x3x16x1xf32>
    %162 = vector.broadcast %161 : vector<2x3x16x1xf32> to vector<2x3x16x16xf32>
    %163 = arith.mulf %158, %162 : vector<2x3x16x16xf32>
    %164 = vector.extract_strided_slice %163 {offsets = [0, 0, 0, 0], sizes = [2, 1, 16, 16], strides = [1, 1, 1, 1]} : vector<2x3x16x16xf32> to vector<2x1x16x16xf32>
    %c0_74 = arith.constant 0 : index
    %c3 = arith.constant 3 : index
    %c0_75 = arith.constant 0 : index
    %c0_76 = arith.constant 0 : index
    %165 = vector.load %arg17[%c0_74, %c3, %c0_75, %c0_76] : memref<2x12x16x16xf32, #tpu.memory_space<vmem>>, vector<2x1x16x16xf32>
    tpu.vector_store %arg17[%c0_74, %c3, %c0_75, %c0_76], %164 {strides = array<i32>} : memref<2x12x16x16xf32, #tpu.memory_space<vmem>>, vector<2x1x16x16xf32>,
    %166 = vector.extract_strided_slice %163 {offsets = [0, 1, 0, 0], sizes = [2, 1, 16, 16], strides = [1, 1, 1, 1]} : vector<2x3x16x16xf32> to vector<2x1x16x16xf32>
    %c0_77 = arith.constant 0 : index
    %c7 = arith.constant 7 : index
    %c0_78 = arith.constant 0 : index
    %c0_79 = arith.constant 0 : index
    %167 = vector.load %arg17[%c0_77, %c7, %c0_78, %c0_79] : memref<2x12x16x16xf32, #tpu.memory_space<vmem>>, vector<2x1x16x16xf32>
    tpu.vector_store %arg17[%c0_77, %c7, %c0_78, %c0_79], %166 {strides = array<i32>} : memref<2x12x16x16xf32, #tpu.memory_space<vmem>>, vector<2x1x16x16xf32>,
    %168 = vector.extract_strided_slice %163 {offsets = [0, 2, 0, 0], sizes = [2, 1, 16, 16], strides = [1, 1, 1, 1]} : vector<2x3x16x16xf32> to vector<2x1x16x16xf32>
    %c0_80 = arith.constant 0 : index
    %c11 = arith.constant 11 : index
    %c0_81 = arith.constant 0 : index
    %c0_82 = arith.constant 0 : index
    %169 = vector.load %arg17[%c0_80, %c11, %c0_81, %c0_82] : memref<2x12x16x16xf32, #tpu.memory_space<vmem>>, vector<2x1x16x16xf32>
    tpu.vector_store %arg17[%c0_80, %c11, %c0_81, %c0_82], %168 {strides = array<i32>} : memref<2x12x16x16xf32, #tpu.memory_space<vmem>>, vector<2x1x16x16xf32>,
    %cst_83 = arith.constant dense<0.000000e+00> : vector<2x16x16xf32>
    %170 = vector.multi_reduction <add>, %163, %cst_83 [1] : vector<2x3x16x16xf32> to vector<2x16x16xf32>
    %cst_84 = arith.constant 0.333333343 : f32
    %171 = vector.broadcast %cst_84 : f32 to vector<2x16x16xf32>
    %172 = arith.mulf %170, %171 : vector<2x16x16xf32>
    %173 = arith.truncf %172 : vector<2x16x16xf32> to vector<2x16x16xbf16>
    "tpu.trace_start"() <{level = 10 : i32, message = "bnm,bmd->bnd"}> : () -> ()
    %cst_85 = arith.constant dense<0.000000e+00> : vector<2x16x32xf32>
    %174 = tpu.matmul %173, %149, %cst_85 {dimension_numbers = #tpu.dot_dimension_numbers<[2], [1], [1], [2], [0, 0, 0, 1, 1, 2], [0], [0]>} : vector<2x16x16xbf16>, vector<2x16x32xbf16>, vector<2x16x32xf32> -> vector<2x16x32xf32>
    "tpu.trace_stop"() : () -> ()
    %175 = vector.shape_cast %174 : vector<2x16x32xf32> to vector<32x32xf32>
    %176 = arith.truncf %175 : vector<32x32xf32> to vector<32x32xbf16>
    %c96 = arith.constant 96 : index
    %c0_86 = arith.constant 0 : index
    %177 = vector.load %arg6[%c96, %c0_86] : memref<128x128xbf16, #tpu.memory_space<vmem>>, vector<32x128xbf16>
    %cst_87 = arith.constant dense<0.000000e+00> : vector<32x128xf32>
    %178 = tpu.matmul %176, %177, %cst_87 {dimension_numbers = #tpu.dot_dimension_numbers<[1], [0], [0], [1], [0, 0, 1, 1], [], []>} : vector<32x32xbf16>, vector<32x128xbf16>, vector<32x128xf32> -> vector<32x128xf32>
    %179 = arith.addf %140, %178 : vector<32x128xf32>
    %c0_88 = arith.constant 0 : index
    %c0_89 = arith.constant 0 : index
    %180 = vector.load %arg7[%c0_88, %c0_89] : memref<1x128xf32, #tpu.memory_space<vmem>>, vector<1x128xf32>
    %181 = vector.broadcast %180 : vector<1x128xf32> to vector<32x128xf32>
    %182 = arith.addf %179, %181 : vector<32x128xf32>
    %183 = vector.shape_cast %182 : vector<32x128xf32> to vector<2x16x128xf32>
    %184 = arith.addf %0, %183 : vector<2x16x128xf32>
    %c0_90 = arith.constant 0 : index
    %c0_91 = arith.constant 0 : index
    %185 = vector.load %arg8[%c0_90, %c0_91] : memref<1x128xf32, #tpu.memory_space<vmem>>, vector<1x128xf32>
    %c0_92 = arith.constant 0 : index
    %c0_93 = arith.constant 0 : index
    %186 = vector.load %arg9[%c0_92, %c0_93] : memref<1x128xf32, #tpu.memory_space<vmem>>, vector<1x128xf32>
    %cst_94 = arith.constant dense<0.000000e+00> : vector<2x16xf32>
    %187 = vector.multi_reduction <add>, %184, %cst_94 [2] : vector<2x16x128xf32> to vector<2x16xf32>
    %188 = vector.shape_cast %187 : vector<2x16xf32> to vector<2x16x1xf32>
    %cst_95 = arith.constant 1.280000e+02 : f32
    %189 = vector.broadcast %cst_95 : f32 to vector<2x16x1xf32>
    %190 = arith.divf %188, %189 : vector<2x16x1xf32>
    %191 = vector.broadcast %190 : vector<2x16x1xf32> to vector<2x16x128xf32>
    %192 = arith.subf %184, %191 : vector<2x16x128xf32>
    %193 = arith.mulf %192, %192 : vector<2x16x128xf32>
    %cst_96 = arith.constant dense<0.000000e+00> : vector<2x16xf32>
    %194 = vector.multi_reduction <add>, %193, %cst_96 [2] : vector<2x16x128xf32> to vector<2x16xf32>
    %195 = vector.shape_cast %194 : vector<2x16xf32> to vector<2x16x1xf32>
    %cst_97 = arith.constant 1.280000e+02 : f32
    %196 = vector.broadcast %cst_97 : f32 to vector<2x16x1xf32>
    %197 = arith.divf %195, %196 : vector<2x16x1xf32>
    %198 = vector.broadcast %190 : vector<2x16x1xf32> to vector<2x16x128xf32>
    %199 = arith.subf %184, %198 : vector<2x16x128xf32>
    %cst_98 = arith.constant 9.99999974E-6 : f32
    %200 = vector.broadcast %cst_98 : f32 to vector<2x16x1xf32>
    %201 = arith.addf %197, %200 : vector<2x16x1xf32>
    %202 = math.rsqrt %201 : vector<2x16x1xf32>
    %203 = vector.broadcast %202 : vector<2x16x1xf32> to vector<2x16x128xf32>
    %204 = arith.mulf %199, %203 : vector<2x16x128xf32>
    %205 = vector.shape_cast %185 : vector<1x128xf32> to vector<1x1x128xf32>
    %206 = vector.broadcast %205 : vector<1x1x128xf32> to vector<2x16x128xf32>
    %207 = arith.mulf %204, %206 : vector<2x16x128xf32>
    %208 = vector.shape_cast %186 : vector<1x128xf32> to vector<1x1x128xf32>
    %209 = vector.broadcast %208 : vector<1x1x128xf32> to vector<2x16x128xf32>
    %210 = arith.addf %207, %209 : vector<2x16x128xf32>
    %211 = vector.shape_cast %210 : vector<2x16x128xf32> to vector<32x128xf32>
    %212 = arith.truncf %211 : vector<32x128xf32> to vector<32x128xbf16>
    %c0_99 = arith.constant 0 : index
    %c0_100 = arith.constant 0 : index
    %213 = vector.load %arg10[%c0_99, %c0_100] : memref<128x256xbf16, #tpu.memory_space<vmem>>, vector<128x256xbf16>
    %cst_101 = arith.constant dense<0.000000e+00> : vector<32x256xf32>
    %214 = tpu.matmul %212, %213, %cst_101 {dimension_numbers = #tpu.dot_dimension_numbers<[1], [0], [0], [1], [0, 0, 1, 1], [], []>} : vector<32x128xbf16>, vector<128x256xbf16>, vector<32x256xf32> -> vector<32x256xf32>
    %c0_102 = arith.constant 0 : index
    %c0_103 = arith.constant 0 : index
    %215 = vector.load %arg11[%c0_102, %c0_103] : memref<1x256xf32, #tpu.memory_space<vmem>>, vector<1x256xf32>
    %216 = vector.broadcast %215 : vector<1x256xf32> to vector<32x256xf32>
    %217 = arith.addf %214, %216 : vector<32x256xf32>
    %cst_104 = arith.constant 0.000000e+00 : f32
    %218 = vector.broadcast %cst_104 : f32 to vector<32x256xf32>
    %219 = arith.maximumf %217, %218 : vector<32x256xf32>
    %220 = arith.truncf %219 : vector<32x256xf32> to vector<32x256xbf16>
    %c0_105 = arith.constant 0 : index
    %c0_106 = arith.constant 0 : index
    %221 = vector.load %arg12[%c0_105, %c0_106] : memref<256x128xbf16, #tpu.memory_space<vmem>>, vector<256x128xbf16>
    %cst_107 = arith.constant dense<0.000000e+00> : vector<32x128xf32>
    %222 = tpu.matmul %220, %221, %cst_107 {dimension_numbers = #tpu.dot_dimension_numbers<[1], [0], [0], [1], [0, 0, 1, 1], [], []>} : vector<32x256xbf16>, vector<256x128xbf16>, vector<32x128xf32> -> vector<32x128xf32>
    %c0_108 = arith.constant 0 : index
    %c0_109 = arith.constant 0 : index
    %223 = vector.load %arg13[%c0_108, %c0_109] : memref<1x128xf32, #tpu.memory_space<vmem>>, vector<1x128xf32>
    %224 = vector.broadcast %223 : vector<1x128xf32> to vector<32x128xf32>
    %225 = arith.addf %222, %224 : vector<32x128xf32>
    %226 = vector.shape_cast %225 : vector<32x128xf32> to vector<2x16x128xf32>
    %227 = arith.addf %210, %226 : vector<2x16x128xf32>
    %c0_110 = arith.constant 0 : index
    %c0_111 = arith.constant 0 : index
    %228 = vector.load %arg14[%c0_110, %c0_111] : memref<1x128xf32, #tpu.memory_space<vmem>>, vector<1x128xf32>
    %c0_112 = arith.constant 0 : index
    %c0_113 = arith.constant 0 : index
    %229 = vector.load %arg15[%c0_112, %c0_113] : memref<1x128xf32, #tpu.memory_space<vmem>>, vector<1x128xf32>
    %cst_114 = arith.constant dense<0.000000e+00> : vector<2x16xf32>
    %230 = vector.multi_reduction <add>, %227, %cst_114 [2] : vector<2x16x128xf32> to vector<2x16xf32>
    %231 = vector.shape_cast %230 : vector<2x16xf32> to vector<2x16x1xf32>
    %cst_115 = arith.constant 1.280000e+02 : f32
    %232 = vector.broadcast %cst_115 : f32 to vector<2x16x1xf32>
    %233 = arith.divf %231, %232 : vector<2x16x1xf32>
    %234 = vector.broadcast %233 : vector<2x16x1xf32> to vector<2x16x128xf32>
    %235 = arith.subf %227, %234 : vector<2x16x128xf32>
    %236 = arith.mulf %235, %235 : vector<2x16x128xf32>
    %cst_116 = arith.constant dense<0.000000e+00> : vector<2x16xf32>
    %237 = vector.multi_reduction <add>, %236, %cst_116 [2] : vector<2x16x128xf32> to vector<2x16xf32>
    %238 = vector.shape_cast %237 : vector<2x16xf32> to vector<2x16x1xf32>
    %cst_117 = arith.constant 1.280000e+02 : f32
    %239 = vector.broadcast %cst_117 : f32 to vector<2x16x1xf32>
    %240 = arith.divf %238, %239 : vector<2x16x1xf32>
    %241 = vector.broadcast %233 : vector<2x16x1xf32> to vector<2x16x128xf32>
    %242 = arith.subf %227, %241 : vector<2x16x128xf32>
    %cst_118 = arith.constant 9.99999974E-6 : f32
    %243 = vector.broadcast %cst_118 : f32 to vector<2x16x1xf32>
    %244 = arith.addf %240, %243 : vector<2x16x1xf32>
    %245 = math.rsqrt %244 : vector<2x16x1xf32>
    %246 = vector.broadcast %245 : vector<2x16x1xf32> to vector<2x16x128xf32>
    %247 = arith.mulf %242, %246 : vector<2x16x128xf32>
    %248 = vector.shape_cast %228 : vector<1x128xf32> to vector<1x1x128xf32>
    %249 = vector.broadcast %248 : vector<1x1x128xf32> to vector<2x16x128xf32>
    %250 = arith.mulf %247, %249 : vector<2x16x128xf32>
    %251 = vector.shape_cast %229 : vector<1x128xf32> to vector<1x1x128xf32>
    %252 = vector.broadcast %251 : vector<1x1x128xf32> to vector<2x16x128xf32>
    %253 = arith.addf %250, %252 : vector<2x16x128xf32>
    %c0_119 = arith.constant 0 : index
    %c0_120 = arith.constant 0 : index
    %c0_121 = arith.constant 0 : index
    %254 = vector.load %arg16[%c0_119, %c0_120, %c0_121] : memref<2x16x128xf32, #tpu.memory_space<vmem>>, vector<2x16x128xf32>
    tpu.vector_store %arg16[%c0_119, %c0_120, %c0_121], %253 {strides = array<i32>} : memref<2x16x128xf32, #tpu.memory_space<vmem>>, vector<2x16x128xf32>,
    return
  }
  func.func @transform_0(%arg0: i32) -> (i32, i32, i32) {
    %c0_i32 = arith.constant 0 : i32
    %c0_i32_0 = arith.constant 0 : i32
    %c0_i32_1 = arith.constant 0 : i32
    return %arg0, %c0_i32, %c0_i32_0 : i32, i32, i32
  }
  func.func @transform_1(%arg0: i32) -> (i32, i32, i32) {
    %c0_i32 = arith.constant 0 : i32
    %c0_i32_0 = arith.constant 0 : i32
    %c0_i32_1 = arith.constant 0 : i32
    return %arg0, %c0_i32, %c0_i32_0 : i32, i32, i32
  }
  func.func @transform_2(%arg0: i32) -> (i32, i32, i32, i32) {
    %c0_i32 = arith.constant 0 : i32
    %c0_i32_0 = arith.constant 0 : i32
    %c0_i32_1 = arith.constant 0 : i32
    %c0_i32_2 = arith.constant 0 : i32
    return %arg0, %c0_i32, %c0_i32_0, %c0_i32_1 : i32, i32, i32, i32
  }
  func.func @transform_3(%arg0: i32) -> (i32, i32) {
    %c0_i32 = arith.constant 0 : i32
    %c0_i32_0 = arith.constant 0 : i32
    %c0_i32_1 = arith.constant 0 : i32
    return %c0_i32, %c0_i32_0 : i32, i32
  }
  func.func @transform_4(%arg0: i32) -> (i32, i32) {
    %c0_i32 = arith.constant 0 : i32
    %c0_i32_0 = arith.constant 0 : i32
    %c0_i32_1 = arith.constant 0 : i32
    return %c0_i32, %c0_i32_0 : i32, i32
  }
  func.func @transform_5(%arg0: i32) -> (i32, i32) {
    %c0_i32 = arith.constant 0 : i32
    %c0_i32_0 = arith.constant 0 : i32
    %c0_i32_1 = arith.constant 0 : i32
    return %c0_i32, %c0_i32_0 : i32, i32
  }
  func.func @transform_6(%arg0: i32) -> (i32, i32) {
    %c0_i32 = arith.constant 0 : i32
    %c0_i32_0 = arith.constant 0 : i32
    %c0_i32_1 = arith.constant 0 : i32
    return %c0_i32, %c0_i32_0 : i32, i32
  }
  func.func @transform_7(%arg0: i32) -> (i32, i32) {
    %c0_i32 = arith.constant 0 : i32
    %c0_i32_0 = arith.constant 0 : i32
    %c0_i32_1 = arith.constant 0 : i32
    return %c0_i32, %c0_i32_0 : i32, i32
  }
  func.func @transform_8(%arg0: i32) -> (i32, i32) {
    %c0_i32 = arith.constant 0 : i32
    %c0_i32_0 = arith.constant 0 : i32
    %c0_i32_1 = arith.constant 0 : i32
    return %c0_i32, %c0_i32_0 : i32, i32
  }
  func.func @transform_9(%arg0: i32) -> (i32, i32) {
    %c0_i32 = arith.constant 0 : i32
    %c0_i32_0 = arith.constant 0 : i32
    %c0_i32_1 = arith.constant 0 : i32
    return %c0_i32, %c0_i32_0 : i32, i32
  }
  func.func @transform_10(%arg0: i32) -> (i32, i32) {
    %c0_i32 = arith.constant 0 : i32
    %c0_i32_0 = arith.constant 0 : i32
    %c0_i32_1 = arith.constant 0 : i32
    return %c0_i32, %c0_i32_0 : i32, i32
  }
  func.func @transform_11(%arg0: i32) -> (i32, i32) {
    %c0_i32 = arith.constant 0 : i32
    %c0_i32_0 = arith.constant 0 : i32
    %c0_i32_1 = arith.constant 0 : i32
    return %c0_i32, %c0_i32_0 : i32, i32
  }
  func.func @transform_12(%arg0: i32) -> (i32, i32) {
    %c0_i32 = arith.constant 0 : i32
    %c0_i32_0 = arith.constant 0 : i32
    %c0_i32_1 = arith.constant 0 : i32
    return %c0_i32, %c0_i32_0 : i32, i32
  }
  func.func @transform_13(%arg0: i32) -> (i32, i32) {
    %c0_i32 = arith.constant 0 : i32
    %c0_i32_0 = arith.constant 0 : i32
    %c0_i32_1 = arith.constant 0 : i32
    return %c0_i32, %c0_i32_0 : i32, i32
  }
  func.func @transform_14(%arg0: i32) -> (i32, i32) {
    %c0_i32 = arith.constant 0 : i32
    %c0_i32_0 = arith.constant 0 : i32
    %c0_i32_1 = arith.constant 0 : i32
    return %c0_i32, %c0_i32_0 : i32, i32
  }
  func.func @transform_15(%arg0: i32) -> (i32, i32, i32) {
    %c0_i32 = arith.constant 0 : i32
    %c0_i32_0 = arith.constant 0 : i32
    %c0_i32_1 = arith.constant 0 : i32
    return %arg0, %c0_i32, %c0_i32_0 : i32, i32, i32
  }
  func.func @transform_16(%arg0: i32) -> (i32, i32, i32, i32) {
    %c0_i32 = arith.constant 0 : i32
    %c0_i32_0 = arith.constant 0 : i32
    %c0_i32_1 = arith.constant 0 : i32
    %c0_i32_2 = arith.constant 0 : i32
    return %arg0, %c0_i32, %c0_i32_0, %c0_i32_1 : i32, i32, i32, i32
  }
}

</mosaic_0001>

<bundles_post_ra>
// kernel: tpu_custom_call.1
= control target key start
LH: loop header
LB: loop body
LE: loop exit
PB: predicated region body
PF: predicated region fallthrough
CT: control target
= control target key end

     0   :  { %s4583_s0 = inlined_call_operand.hbm [shape: f32[2,16,128], index: 0, kind: input, shape index: {}]   ;;  %s4584_s1 = inlined_call_operand.hbm [shape: f32[2,1,16], index: 1, kind: input, shape index: {}]   ;;  %s4585_s2 = inlined_call_operand.hbm [shape: f32[2,3,16,16], index: 2, kind: input, shape index: {}]   ;;  %s4586_s3 = inlined_call_operand.hbm [shape: bf16[128,384], index: 3, kind: input, shape index: {}]   ;;  %s4587_s4 = inlined_call_operand.vmem [shape: f32[1,384], index: 4, kind: input, shape index: {}]   ;;  %s4588_s5 = inlined_call_operand.hbm [shape: bf16[128,128], index: 5, kind: input, shape index: {}]   ;;  %s4589_s6 = inlined_call_operand.vmem [shape: f32[1,128], index: 6, kind: input, shape index: {}]   ;;  %s4590_s7 = inlined_call_operand.vmem [shape: f32[1,128], index: 7, kind: input, shape index: {}]   ;;  %s4591_s8 = inlined_call_operand.vmem [shape: f32[1,128], index: 8, kind: input, shape index: {}]   ;;  %s4592_s9 = inlined_call_operand.hbm [shape: bf16[128,256], index: 9, kind: input, shape index: {}]   ;;  %s4593_s10 = inlined_call_operand.vmem [shape: f32[1,256], index: 10, kind: input, shape index: {}]   ;;  %s4594_s11 = inlined_call_operand.hbm [shape: bf16[256,128], index: 11, kind: input, shape index: {}]   ;;  %s4595_s12 = inlined_call_operand.vmem [shape: f32[1,128], index: 12, kind: input, shape index: {}]   ;;  %s4596_s13 = inlined_call_operand.vmem [shape: f32[1,128], index: 13, kind: input, shape index: {}]   ;;  %s4597_s14 = inlined_call_operand.vmem [shape: f32[1,128], index: 14, kind: input, shape index: {}]   ;;  %s4598_s15 = inlined_call_operand.hbm [shape: f32[2,16,128], index: 15, kind: output, shape index: {0}]   ;;  %s4599_s16 = inlined_call_operand.hbm [shape: f32[2,12,16,16], index: 16, kind: output, shape index: {1}]  }
   0x1   :  { %4600 = sst [smem:[#allocation23_spill]] %s4583_s0 }
   0x2   :  { %22 = vsyncpa [#allocation3], 0 }
   0x3   :  { %23 = vsyncpa [#allocation6], 0 }
   0x4   :  { %24 = vsyncpa [#allocation9], 0 }
   0x5   :  { %25 = vsyncpa [#allocation12], 0 }
   0x6   :  { %26 = vsyncpa [#allocation4], 0 }
   0x7   :  { %27 = vsyncpa [#allocation16], 0  ;;  %s3690_s21 = smov [#allocation5]  }
   0x8   :  { %s45_s22 = sshll.u32 %s3690_s21, 4  ;;  %s46_s22 = int_to_ptr.vmem [resolvable:$true] %s45_s22 }
   0x9   :  { %s3506_s23 = scalar_lea.vmem %s46_s22, 32  ;;  %p3511_p1 = scmp.lt.s32.totalorder %s46_s22, %s46_s22 }
   0xa   :  { %p3507_p0 = scmp.ne.s32.totalorder %s46_s22, %s3506_s23  ;;  %p3512_p2 = scmp.lt.s32.totalorder %s3506_s23, %s3506_s23 }
   0xc   :  { %p3513_p3 = por %p3512_p2, %p3511_p1 }
   0xe   :  { %p3514_p4 = pnand %p3513_p3, %p3507_p0 }
  0x10   :  { %3517 = shalt.err (!%p3514_p4)
}
  0x11   :  { %s3691_s24 = smov 16   ;;  %s3692_s25 = smov 1  }
  0x12   :  { %51 = dma.hbm_to_vmem [thread:$0]  %s4584_s1, 32, %s46_s22, [#allocation6], %s3691_s24, %s3691_s24, %s3692_s25  }
  0x13   :  { %s3693_s28 = smov [#allocation8]  }
  0x14   :  { %s69_s29 = sshll.u32 %s3693_s28, 4  ;;  %s70_s29 = int_to_ptr.vmem [resolvable:$true] %s69_s29 }
  0x15   :  { %s3526_s30 = scalar_lea.vmem %s70_s29, 3072  ;;  %p3531_p6 = scmp.lt.s32.totalorder %s70_s29, %s70_s29 }
  0x16   :  { %p3527_p5 = scmp.ne.s32.totalorder %s70_s29, %s3526_s30  ;;  %p3532_p7 = scmp.lt.s32.totalorder %s3526_s30, %s3526_s30 }
  0x18   :  { %p3533_p8 = por %p3532_p7, %p3531_p6 }
  0x1a   :  { %p3534_p9 = pnand %p3533_p8, %p3527_p5 }
  0x1c   :  { %3537 = shalt.err (!%p3534_p9)
}
  0x1d   :  { %s3694_s0 = smov 192   ;;  %s3695_s17 = smov 12  }
  0x1e   :  { %75 = dma.hbm_to_vmem [thread:$0]  %s4586_s3, 3072, %s70_s29, [#allocation9], %s3694_s0, %s3694_s0, %s3695_s17  }
  0x1f   :  { %s3696_s20 = smov [#allocation11]   ;;  %s3697_s23 = smov [#allocation2]  }
  0x20   :  { %s101_s21 = sshll.u32 %s3696_s20, 4  ;;  %s33_s1 = sshll.u32 %s3697_s23, 4  ;;  %s102_s21 = int_to_ptr.vmem [resolvable:$true] %s101_s21  ;;  %s34_s1 = int_to_ptr.vmem [resolvable:$true] %s33_s1 }
  0x21   :  { %s3546_s22 = scalar_lea.vmem %s102_s21, 2048  ;;  %p3551_p11 = scmp.lt.s32.totalorder %s102_s21, %s102_s21 }
  0x22   :  { %p3547_p10 = scmp.ne.s32.totalorder %s102_s21, %s3546_s22  ;;  %p3552_p12 = scmp.lt.s32.totalorder %s3546_s22, %s3546_s22 }
  0x24   :  { %p3553_p13 = por %p3552_p12, %p3551_p11 }
  0x26   :  { %p3554_p0 = pnand %p3553_p13, %p3547_p10 }
  0x28   :  { %3557 = shalt.err (!%p3554_p0)
}
  0x29   :  { %s3698_s24 = smov 128   ;;  %s3699_s25 = smov 8  }
  0x2a   :  { %107 = dma.hbm_to_vmem [thread:$0]  %s4592_s9, 2048, %s102_s21, [#allocation12], %s3698_s24, %s3698_s24, %s3699_s25  }
  0x2b   :  { %s3566_s27 = scalar_lea.vmem %s34_s1, 512  ;;  %p3571_p2 = scmp.lt.s32.totalorder %s34_s1, %s34_s1 }
  0x2c   :  { %p3567_p1 = scmp.ne.s32.totalorder %s34_s1, %s3566_s27  ;;  %p3572_p3 = scmp.lt.s32.totalorder %s3566_s27, %s3566_s27 }
  0x2e   :  { %p3573_p4 = por %p3572_p3, %p3571_p2 }
  0x30   :  { %p3574_p5 = pnand %p3573_p4, %p3567_p1 }
  0x32   :  { %3577 = shalt.err (!%p3574_p5)
}
  0x33   :  { %s4601_s30 = sld [smem:[#allocation23_spill]]  ;;  %s3700_s0 = smov [#allocation7]  }
  0x34   :  { %s57_s17 = sshll.u32 %s3700_s0, 4  ;;  %s3701_s18 = smov [#allocation10]   ;;  %s58_s17 = int_to_ptr.vmem [resolvable:$true] %s57_s17 }
  0x35   :  { %s83_s19 = sshll.u32 %s3701_s18, 4  ;;  %s3586_s9 = scalar_lea.vmem %s58_s17, 1536  ;;  %s84_s19 = int_to_ptr.vmem [resolvable:$true] %s83_s19 }
  0x36   :  { %p3587_p6 = scmp.ne.s32.totalorder %s58_s17, %s3586_s9  ;;  %p3591_p7 = scmp.lt.s32.totalorder %s58_s17, %s58_s17 }
  0x37   :  { %p3592_p8 = scmp.lt.s32.totalorder %s3586_s9, %s3586_s9 }
  0x39   :  { %39 = dma.hbm_to_vmem [thread:$0]  %s4601_s30, 512, %s34_s1, [#allocation3], %s3698_s24, %s3698_s24, %s3699_s25  }
  0x3a   :  { %p3593_p9 = por %p3592_p8, %p3591_p7 }
  0x3c   :  { %p3594_p10 = pnand %p3593_p9, %p3587_p6 }
  0x3e   :  { %3597 = shalt.err (!%p3594_p10)
}
  0x3f   :  { %63 = dma.hbm_to_vmem [thread:$0]  %s4585_s2, 1536, %s58_s17, [#allocation6], %s3698_s24, %s3698_s24, %s3699_s25  }
  0x40   :  { %s3606_s23 = scalar_lea.vmem %s84_s19, 1024  ;;  %p3611_p12 = scmp.lt.s32.totalorder %s84_s19, %s84_s19 }
  0x41   :  { %p3607_p11 = scmp.ne.s32.totalorder %s84_s19, %s3606_s23  ;;  %p3612_p13 = scmp.lt.s32.totalorder %s3606_s23, %s3606_s23 }
  0x43   :  { %p3613_p0 = por %p3612_p13, %p3611_p12 }
  0x45   :  { %p3614_p1 = pnand %p3613_p0, %p3607_p11 }
  0x47   :  { %3617 = shalt.err (!%p3614_p1)
}
  0x48   :  { %s3702_s1 = smov 64   ;;  %s3703_s22 = smov 4  }
  0x49   :  { %89 = dma.hbm_to_vmem [thread:$0]  %s4588_s5, 1024, %s84_s19, [#allocation9], %s3702_s1, %s3702_s1, %s3703_s22  }
  0x4a   :  { %s3704_s27 = smov [#allocation13]  }
  0x4b   :  { %s115_s28 = sshll.u32 %s3704_s27, 4  ;;  %s116_s28 = int_to_ptr.vmem [resolvable:$true] %s115_s28 }
  0x4c   :  { %s3626_s29 = scalar_lea.vmem %s116_s28, 2048  ;;  %p3631_p3 = scmp.lt.s32.totalorder %s116_s28, %s116_s28 }
  0x4d   :  { %p3627_p2 = scmp.ne.s32.totalorder %s116_s28, %s3626_s29  ;;  %p3632_p4 = scmp.lt.s32.totalorder %s3626_s29, %s3626_s29 }
  0x4f   :  { %p3633_p5 = por %p3632_p4, %p3631_p3 }
  0x51   :  { %p3634_p6 = pnand %p3633_p5, %p3627_p2 }
  0x53   :  { %3637 = shalt.err (!%p3634_p6)
}
  0x54   :  { %121 = dma.hbm_to_vmem [thread:$0]  %s4594_s11, 2048, %s116_s28, [#allocation12], %s3702_s1, %s3702_s1, %s3703_s22  }
  0x55   :  { %3678 = dma.done.wait [#allocation3], 512  }
  0x56   :  { %3679 = vsyncadd [#allocation3], 4294966784 }
  0x57   :  { %3680 = dma.done.wait [#allocation6], 1568  }
  0x58   :  { %3681 = vsyncadd [#allocation6], 4294965728 }
  0x59   :  { %3682 = dma.done.wait [#allocation9], 4096  }
  0x5a   :  { %3683 = vsyncadd [#allocation9], 4294963200 }
  0x5b   :  { %3684 = dma.done.wait [#allocation12], 4096  }
  0x5c   :  { %3685 = vsyncadd [#allocation12], 4294963200  ;;  %v3705_v0 = vmov 0   ;;  %v3206_v1 = vld [vmem:[#allocation8 + $0xac] ss:$12 sps:$4 sm:$0xff]   ;;  %v150_v8 = vld [vmem:[#allocation2] sm:$0xff]  ;;  %v190_v32 = vlaneseq }
  0x5d   :  { %365 = vmatprep.mubr.bf16.mxu0 %v3705_v0  ;;  %v3208_v2 = vld [vmem:[#allocation8 + $0xa8] ss:$12 sps:$4 sm:$0xff]   ;;  %333 = vmatprep.subr.bf16.mxu0 %v3206_v1  ;;  %v3211_v4 = vld [vmem:[#allocation8 + $0x90] ss:$12 sps:$4 sm:$0xff]   ;;  %v3214_v6 = vld [vmem:[#allocation8 + $0x78] ss:$12 sps:$4 sm:$0xff]  }
  0x5e   :  { %v3209_v3 = vld [vmem:[#allocation8 + $0x94] ss:$12 sps:$4 sm:$0xff]   ;;  %334 = vmatpush1.bf16.msra.mxu0 %v3208_v2  ;;  %v3212_v5 = vld [vmem:[#allocation8 + $0x7c] ss:$12 sps:$4 sm:$0xff]   ;;  %v3215_v7 = vld [vmem:[#allocation8 + $0x64] ss:$12 sps:$4 sm:$0xff]  }
  0x5f   :  { %335 = vmatprep.subr.bf16.mxu0 %v3209_v3  ;;  %v3217_v9 = vld [vmem:[#allocation8 + $0x60] ss:$12 sps:$4 sm:$0xff]   ;;  %v3230_v13 = vld [vmem:[#allocation8 + $0xb0] ss:$12 sps:$4 sm:$0xff]   ;;  %v3231_v14 = vld [vmem:[#allocation8 + $0x98] ss:$12 sps:$4 sm:$0xff]  }
  0x60   :  { %v3218_v10 = vld [vmem:[#allocation8 + $0x4c] ss:$12 sps:$4 sm:$0xff]   ;;  %v3220_v15 = vld [vmem:[#allocation8 + $0x48] ss:$12 sps:$4 sm:$0xff]   ;;  %3035 = vmatprep.subr.bf16.mxu1 %v3230_v13  ;;  %v3223_v18 = vld [vmem:[#allocation8 + $0x30] ss:$12 sps:$4 sm:$0xff]  }
  0x61   :  { %v151_v11 = vld [vmem:[#allocation2 + $0x8] sm:$0xff]  ;;  %v3221_v16 = vld [vmem:[#allocation8 + $0x34] ss:$12 sps:$4 sm:$0xff]   ;;  %3036 = vmatpush3.bf16.msra.mxu1 %v3230_v13  ;;  %v3234_v23 = vld [vmem:[#allocation8 + $0x50] ss:$12 sps:$4 sm:$0xff]   ;;  %v3706_v31 = vmov 0.0  }
  0x62   :  { %336 = vmatpush1.bf16.msra.mxu0 %v3211_v4  ;;  %v154_v12 = vpack.c.bf16 %v151_v11, %v150_v8  ;;  %3037 = vmatprep.subr.bf16.mxu1 %v3231_v14  ;;  %v3232_v17 = vld [vmem:[#allocation8 + $0x80] ss:$12 sps:$4 sm:$0xff]   ;;  %v3224_v19 = vld [vmem:[#allocation8 + $0x1c] ss:$12 sps:$4 sm:$0xff]   ;;  %v3226_v21 = vld [vmem:[#allocation8 + $0x18] ss:$12 sps:$4 sm:$0xff]  }
  0x63   :  { %337 = vmatprep.subr.bf16.mxu0 %v3212_v5  ;;  %v3233_v20 = vld [vmem:[#allocation8 + $0x68] ss:$12 sps:$4 sm:$0xff]   ;;  %v3227_v22 = vld [vmem:[#allocation8 + $0x4] ss:$12 sps:$4 sm:$0xff]   ;;  %v3229_v24 = vld [vmem:[#allocation8] ss:$12 sps:$4 sm:$0xff]  }
  0x64   :  { %3051 = vmatprep.mubr.bf16.mxu1 %v154_v12  ;;  %v3235_v25 = vld [vmem:[#allocation8 + $0x38] ss:$12 sps:$4 sm:$0xff]   ;;  %v3236_v26 = vld [vmem:[#allocation8 + $0x20] ss:$12 sps:$4 sm:$0xff]   ;;  %v3237_v30 = vld [vmem:[#allocation8 + $0x8] ss:$12 sps:$4 sm:$0xff]  }
  0x65   :  { %3038 = vmatpush3.bf16.msra.mxu1 %v3231_v14  ;;  %v152_v27 = vld [vmem:[#allocation2 + $0x10] sm:$0xff]  ;;  %v153_v28 = vld [vmem:[#allocation2 + $0x18] sm:$0xff]  ;;  %vm3707_vm0 = vmmov 0   ;;  %v3840_v33 = vshrl.u32 %v190_v32, 7  ;;  %v188_v36 = vld [vmem:[%s4587_s4] sm:$0x7] }
  0x66   :  { %338 = vmatpush1.bf16.msra.mxu0 %v3214_v6  ;;  %3039 = vmatprep.subr.bf16.mxu1 %v3232_v17  ;;  %v155_v29 = vpack.c.bf16 %v153_v28, %v152_v27  ;;  %vm487_vm1 = vcmask 261120   ;;  %v439_v14 = vld [vmem:[#allocation5] sm:$0x1]  ;;  %v450_v27 = vld [vmem:[#allocation7 + $0x28] sm:$0xff]  ;;  %vm594_vm4 = vcmask 130048   ;;  %s3709_s4 = smov 96  }
  0x67   :  { %339 = vmatprep.subr.bf16.mxu0 %v3215_v7  ;;  %v196_v34 = vsub.s32 1, %v3840_v33  ;;  %v3847_v38 = vsub.s32 0, %v3840_v33  ;;  %v200_v2 = vsub.s32 2, %v3840_v33  ;;  %vm441_vm2 = vcmp.gt.f32.partialorder %v439_v14, 0.5  ;;  %s3710_s0 = smov 32  }
  0x69   :  { %3040 = vmatpush3.bf16.msra.mxu1 %v3232_v17  ;;  %v197_v39 = vrot.slane %v188_v36, %v196_v34  ;;  %v193_v42 = vrot.slane %v188_v36, %v3847_v38  ;;  %v201_v3 = vrot.slane %v188_v36, %v200_v2  ;;  %v440_v17 = vld [vmem:[#allocation5 + $0x1] sm:$0x1] }
  0x6a   :  { %340 = vmatpush1.bf16.msra.mxu0 %v3217_v9  ;;  %3041 = vmatprep.subr.bf16.mxu1 %v3233_v20  ;;  %vm442_vm3 = vcmp.gt.f32.partialorder %v440_v17, 0.5 }
  0x6b   :  { %341 = vmatprep.subr.bf16.mxu0 %v3218_v10 }
  0x6d   :  { %3042 = vmatpush3.bf16.msra.mxu1 %v3233_v20  ;;  %v445_v20 = vld [vmem:[#allocation7] sm:$0xff] }
  0x6e   :  { %342 = vmatpush1.bf16.msra.mxu0 %v3220_v15  ;;  %3043 = vmatprep.subr.bf16.mxu1 %v3234_v23  ;;  %v3708_v15 = vmov -1e+09  }
  0x6f   :  { %343 = vmatprep.subr.bf16.mxu0 %v3221_v16  ;;  %v443_v16 = vsel %vm441_vm2, 0.0, %v3708_v15 }
  0x71   :  { %3044 = vmatpush3.bf16.msra.mxu1 %v3234_v23 }
  0x72   :  { %344 = vmatpush1.bf16.msra.mxu0 %v3223_v18  ;;  %3045 = vmatprep.subr.bf16.mxu1 %v3235_v25  ;;  %v462_v18 = vrot.slane %v443_v16, %v3847_v38 }
  0x73   :  { %345 = vmatprep.subr.bf16.mxu0 %v3224_v19  ;;  %v447_v19 = vld [vmem:[#allocation7 + $0x10] sm:$0xff] }
  0x74   :  { %v3886_v23 = vadd.f32 %v462_v18, %v445_v20 }
  0x75   :  { %3046 = vmatpush3.bf16.msra.mxu1 %v3235_v25  ;;  %v444_v25 = vsel %vm442_vm3, 0.0, %v3708_v15 }
  0x76   :  { %346 = vmatpush1.bf16.msra.mxu0 %v3226_v21  ;;  %3047 = vmatprep.subr.bf16.mxu1 %v3236_v26  ;;  %v449_v21 = vld [vmem:[#allocation7 + $0x20] sm:$0xff]  ;;  %v466_v36 = vrot.slane %v444_v25, %v3847_v38 }
  0x77   :  { %347 = vmatprep.subr.bf16.mxu0 %v3227_v22  ;;  %v3884_v22 = vadd.f32 %v462_v18, %v447_v19 }
  0x79   :  { %3048 = vmatpush3.bf16.msra.mxu1 %v3236_v26  ;;  %v3888_v26 = vadd.f32 %v462_v18, %v449_v21 }
  0x7a   :  { %348 = vmatpush1.bf16.msra.mxu0 %v3229_v24  ;;  %3049 = vmatprep.subr.bf16.mxu1 %v3237_v30  ;;  %v448_v24 = vld [vmem:[#allocation7 + $0x18] sm:$0xff] }
  0x7b   :  { %3061 = vmatprep.subr.bf16.mxu0 %v3706_v31 }
  0x7d   :  { %366 = vmatmul.mubr.bf16.vlgmr.msra.gmra.mxu0 %v154_v12  ;;  %3050 = vmatpush3.bf16.msra.mxu1 %v3237_v30 }
  0x7e   :  { %375 = vmatprep.mubr.bf16.mxu0 %v3705_v0  ;;  %3055 = vmatprep.subr.bf16.mxu1 %v3706_v31 }
  0x80   :  { %3052 = vmatmul.mubr.bf16.vlgmr.msra.gmra.mxu1 %v155_v29 }
  0x81   :  { %3057 = vmatprep.mubr.msk.bf16.mxu1 %vm3707_vm0, %v3706_v31 }
  0x85   :  { %376 = vmatmul.mubr.bf16.gmra.mxu0 %v155_v29  ;;  %v446_v29 = vld [vmem:[#allocation7 + $0x8] sm:$0xff] }
  0x86   :  { %3063 = vmatprep.mubr.msk.bf16.mxu0 %vm3707_vm0, %v3706_v31 }
 0x13d   :  { %v367_v35 = vpop.f32.mrf.mxu0 }
 0x13e   :  { %v368_v49 = vadd.f32 %v367_v35, %v193_v42  ;;  %v3894_v35 = vadd.f32 %v462_v18, %v448_v24 }
 0x13f   :  { %v369_v37 = vpop.f32.mrf.mxu0 }
 0x140   :  { %v370_v43 = vadd.f32 %v369_v37, %v197_v39  ;;  %v435_v55 = vmul.f32 0.17677669, %v368_v49  ;;  %v3053_v4 = vpop.f32.mrf.mxu1  ;;  %v452_v49 = vld [vmem:[#allocation7 + $0x38] sm:$0xff] }
 0x141   :  { %v371_v40 = vpop.f32.mrf.mxu0  ;;  %v429_v6 = vadd.f32 %v3053_v4, %v201_v3 }
 0x142   :  { %v372_v46 = vadd.f32 %v371_v40, %v193_v42  ;;  %v420_v5 = vpop.f32.mrf.mxu1 }
 0x143   :  { %v373_v41 = vpop.f32.mrf.mxu0  ;;  %v421_v8 = vadd.f32 %v420_v5, %v201_v3  ;;  %v456_v5 = vld [vmem:[#allocation7 + $0x58] sm:$0xff] }
 0x144   :  { %v374_v44 = vadd.f32 %v373_v41, %v197_v39  ;;  %v436_v52 = vmul.f32 0.17677669, %v372_v46  ;;  %v3054_v7 = vpop.f32.mrf.mxu1 }
 0x145   :  { %v377_v45 = vpop.f32.mrf.mxu0  ;;  %v432_v9 = vadd.f32 %v3054_v7, %v201_v3 }
 0x146   :  { %v3852_v47 = vpack.c.bf16 %v374_v44, %v370_v43  ;;  %v378_v56 = vadd.f32 %v377_v45, %v193_v42  ;;  %v3857_v59 = vpack.c.bf16 %v436_v52, %v435_v55  ;;  %v423_v10 = vpop.f32.mrf.mxu1  ;;  %v3903_v43 = vadd.f32 %v462_v18, %v446_v29  ;;  %v451_v44 = vld [vmem:[#allocation7 + $0x30] sm:$0xff]  ;;  %v453_v55 = vld [vmem:[#allocation7 + $0x40] sm:$0xff] }
 0x147   :  { %v379_v48 = vpop.f32.mrf.mxu0  ;;  %v3875_v11 = vpack.c.bf16 %v432_v9, %v429_v6  ;;  %v424_v12 = vadd.f32 %v423_v10, %v201_v3  ;;  %v455_v6 = vld [vmem:[#allocation7 + $0x50] sm:$0xff]  ;;  %v3928_v10 = vadd.f32 %v466_v36, %v456_v5 }
 0x148   :  { %v492_v50 = vsel %vm487_vm1, %v3852_v47, 0  ;;  %v380_v53 = vadd.f32 %v379_v48, %v197_v39  ;;  %v437_v61 = vmul.f32 0.17677669, %v378_v56 }
 0x149   :  { %v381_v51 = vpop.f32.mrf.mxu0  ;;  %3056 = vmatpush3.bf16.xpose.msra.mxu1 %v492_v50  ;;  %v3877_v13 = vpack.c.bf16 %v424_v12, %v421_v8  ;;  %v3908_v50 = vadd.f32 %v466_v36, %v451_v44  ;;  %v3930_v12 = vadd.f32 %v466_v36, %v455_v6 }
 0x14a   :  { %3067 = vmatprep.subr.bf16.mxu1 %v3706_v31  ;;  %v382_v57 = vadd.f32 %v381_v51, %v193_v42 }
 0x14b   :  { %v383_v54 = vpop.f32.mrf.mxu0 }
 0x14c   :  { %v384_v58 = vadd.f32 %v383_v54, %v197_v39  ;;  %v438_v62 = vmul.f32 0.17677669, %v382_v57  ;;  %v3897_v39 = vadd.f32 %v462_v18, %v450_v27  ;;  %v454_v57 = vld [vmem:[#allocation7 + $0x48] sm:$0xff] }
 0x14d   :  { %v3925_v4 = vadd.f32 %v466_v36, %v454_v57 }
 0x14e   :  { %v3859_v60 = vpack.c.bf16 %v384_v58, %v380_v53  ;;  %v3868_v1 = vpack.c.bf16 %v438_v62, %v437_v61  ;;  %v3917_v58 = vadd.f32 %v466_v36, %v452_v49  ;;  %v3919_v62 = vadd.f32 %v466_v36, %v453_v55 }
 0x150   :  { %3058 = vmatmul.mubr.msk.bf16.vlgmr.msra.gmra.mxu1 %vm487_vm1, %v3857_v59  ;;  %v539_v63 = vsel %vm487_vm1, %v3859_v60, 0 }
 0x151   :  { %3062 = vmatpush3.bf16.xpose.msra.mxu0 %v539_v63  ;;  %3069 = vmatprep.mubr.msk.bf16.mxu1 %vm3707_vm0, %v3706_v31 }
 0x152   :  { %3073 = vmatprep.subr.bf16.mxu0 %v3706_v31  ;;  %3068 = vmatpush3.bf16.msra.mxu1 %v3877_v13 }
 0x153   :  { %3079 = vmatprep.subr.bf16.mxu1 %v3706_v31 }
 0x158   :  { %3064 = vmatmul.mubr.msk.bf16.vlgmr.msra.gmra.mxu0 %vm487_vm1, %v3868_v1 }
 0x159   :  { %3075 = vmatprep.mubr.msk.bf16.mxu0 %vm3707_vm0, %v3706_v31  ;;  %3074 = vmatpush3.bf16.msra.mxu0 %v3875_v11 }
 0x15a   :  { %3085 = vmatprep.subr.bf16.mxu0 %v3706_v31 }
 0x210   :  { %v528_v28 = vpop.f32.mrf.mxu1 }
 0x211   :  { %v3891_v30 = vadd.f32 %v528_v28, %v3884_v22  ;;  %v582_v32 = vadd.f32 %v528_v28, %v3886_v23  ;;  %v586_v42 = vadd.f32 %v528_v28, %v3888_v26 }
 0x212   :  { %v3059_v37 = vpop.f32.mrf.mxu1 }
 0x213   :  { %v601_v40 = vsel %vm594_vm4, %v3891_v30, -inf  ;;  %v595_v41 = vsel %vm594_vm4, %v582_v32, -inf  ;;  %v607_v51 = vsel %vm594_vm4, %v586_v42, -inf }
 0x214   :  { %602 = vmax.xlane.f32.xlu1 %v601_v40  ;;  %596 = vmax.xlane.f32.xlu0 %v595_v41  ;;  %v531_v45 = vpop.f32.mrf.mxu1 }
 0x215   :  { %v3906_v46 = vadd.f32 %v531_v45, %v3894_v35  ;;  %v3914_v53 = vadd.f32 %v531_v45, %v3897_v39  ;;  %v583_v54 = vadd.f32 %v531_v45, %v3903_v43 }
 0x216   :  { %v3060_v48 = vpop.f32.mrf.mxu1 }
 0x217   :  { %v604_v52 = vsel %vm594_vm4, %v3906_v46, -inf  ;;  %v610_v63 = vsel %vm594_vm4, %v3914_v53, -inf  ;;  %v598_v2 = vsel %vm594_vm4, %v583_v54, -inf }
 0x218   :  { %v575_v56 = vpop.f32.mrf.mxu0  ;;  %608 = vmax.xlane.f32.xlu0 %v607_v51  ;;  %605 = vmax.xlane.f32.xlu1 %v604_v52 }
 0x219   :  { %v588_v3 = vadd.f32 %v575_v56, %v3908_v50  ;;  %v590_v17 = vadd.f32 %v575_v56, %v3919_v62  ;;  %v592_v21 = vadd.f32 %v575_v56, %v3930_v12 }
 0x21a   :  { %v3065_v61 = vpop.f32.mrf.mxu0 }
 0x21b   :  { %v613_v15 = vsel %vm594_vm4, %v588_v3, -inf  ;;  %v619_v19 = vsel %vm594_vm4, %v590_v17, -inf  ;;  %v625_v25 = vsel %vm594_vm4, %v592_v21, -inf }
 0x21c   :  { %v578_v7 = vpop.f32.mrf.mxu0  ;;  %611 = vmax.xlane.f32.xlu1 %v610_v63  ;;  %599 = vmax.xlane.f32.xlu0 %v598_v2 }
 0x21d   :  { %v589_v8 = vadd.f32 %v578_v7, %v3917_v58  ;;  %v591_v16 = vadd.f32 %v578_v7, %v3925_v4  ;;  %v593_v20 = vadd.f32 %v578_v7, %v3928_v10 }
 0x21e   :  { %v3066_v9 = vpop.f32.mrf.mxu0 }
 0x21f   :  { %v616_v14 = vsel %vm594_vm4, %v589_v8, -inf  ;;  %v622_v18 = vsel %vm594_vm4, %v591_v16, -inf  ;;  %v628_v24 = vsel %vm594_vm4, %v593_v20, -inf }
 0x220   :  { %617 = vmax.xlane.f32.xlu1 %v616_v14  ;;  %614 = vmax.xlane.f32.xlu0 %v613_v15 }
 0x224   :  { %623 = vmax.xlane.f32.xlu1 %v622_v18  ;;  %620 = vmax.xlane.f32.xlu0 %v619_v19 }
 0x228   :  { %629 = vmax.xlane.f32.xlu1 %v628_v24  ;;  %626 = vmax.xlane.f32.xlu0 %v625_v25 }
 0x29d   :  { %v603_v27 = vpop.xlane.xlu1 %602  ;;  %v597_v28 = vpop.xlane.xlu0 %596 }
 0x29e   :  { %v633_v29 = vsub.f32 %v3891_v30, %v603_v27  ;;  %v631_v36 = vsub.f32 %v582_v32, %v597_v28 }
 0x2a0   :  { %v643_v37 = vmul.f32 1.442695, %v631_v36  ;;  %v647_v40 = vmul.f32 1.442695, %v633_v29 }
 0x2a1   :  { %v609_v41 = vpop.xlane.xlu0 %608  ;;  %v606_v44 = vpop.xlane.xlu1 %605 }
 0x2a2   :  { %v635_v45 = vsub.f32 %v586_v42, %v609_v41  ;;  %3286 = vpow2.f32 %v643_v37  ;;  %v634_v49 = vsub.f32 %v3906_v46, %v606_v44 }
 0x2a3   :  { %3288 = vpow2.f32 %v647_v40 }
 0x2a4   :  { %v651_v48 = vmul.f32 1.442695, %v635_v45  ;;  %v649_v57 = vmul.f32 1.442695, %v634_v49 }
 0x2a5   :  { %v612_v51 = vpop.xlane.xlu1 %611  ;;  %v600_v52 = vpop.xlane.xlu0 %599 }
 0x2a6   :  { %v632_v55 = vsub.f32 %v583_v54, %v600_v52  ;;  %3290 = vpow2.f32 %v651_v48  ;;  %v636_v61 = vsub.f32 %v3914_v53, %v612_v51 }
 0x2a8   :  { %v645_v56 = vmul.f32 1.442695, %v632_v55  ;;  %v653_v42 = vmul.f32 1.442695, %v636_v61 }
 0x2a9   :  { %v618_v30 = vpop.xlane.xlu1 %617  ;;  %v615_v32 = vpop.xlane.xlu0 %614 }
 0x2aa   :  { %v637_v63 = vsub.f32 %v588_v3, %v615_v32  ;;  %3292 = vpow2.f32 %v645_v56  ;;  %v638_v5 = vsub.f32 %v589_v8, %v618_v30 }
 0x2ab   :  { %3294 = vpow2.f32 %v649_v57 }
 0x2ac   :  { %v655_v2 = vmul.f32 1.442695, %v637_v63  ;;  %v657_v14 = vmul.f32 1.442695, %v638_v5 }
 0x2ad   :  { %v624_v6 = vpop.xlane.xlu1 %623  ;;  %v621_v7 = vpop.xlane.xlu0 %620 }
 0x2ae   :  { %v639_v9 = vsub.f32 %v590_v17, %v621_v7  ;;  %3296 = vpow2.f32 %v655_v2  ;;  %v640_v15 = vsub.f32 %v591_v16, %v624_v6 }
 0x2af   :  { %v3945_v46 = vpop.eup %3286  ;;  %3298 = vpow2.f32 %v653_v42 }
 0x2b0   :  { %v659_v54 = vmul.f32 1.442695, %v639_v9  ;;  %v667_v53 = vsel %vm594_vm4, %v3945_v46, 0.0  ;;  %v3949_v3 = vpop.eup %3288  ;;  %v661_v17 = vmul.f32 1.442695, %v640_v15 }
 0x2b1   :  { %v627_v18 = vpop.xlane.xlu0 %626  ;;  %v630_v19 = vpop.xlane.xlu1 %629  ;;  %668 = vadd.xlane.f32.xlu0 %v667_v53  ;;  %v673_v27 = vsel %vm594_vm4, %v3949_v3, 0.0 }
 0x2b2   :  { %v641_v24 = vsub.f32 %v592_v21, %v627_v18  ;;  %3300 = vpow2.f32 %v659_v54  ;;  %v642_v25 = vsub.f32 %v593_v20, %v630_v19 }
 0x2b3   :  { %3302 = vpow2.f32 %v657_v14  ;;  %v3953_v28 = vpop.eup %3290 }
 0x2b4   :  { %v663_v8 = vmul.f32 1.442695, %v641_v24  ;;  %v665_v29 = vmul.f32 1.442695, %v642_v25  ;;  %v679_v36 = vsel %vm594_vm4, %v3953_v28, 0.0 }
 0x2b5   :  { %674 = vadd.xlane.f32.xlu0 %v673_v27 }
 0x2b6   :  { %3304 = vpow2.f32 %v663_v8 }
 0x2b7   :  { %v3955_v16 = vpop.eup %3292  ;;  %3306 = vpow2.f32 %v661_v17 }
 0x2b8   :  { %v670_v21 = vsel %vm594_vm4, %v3955_v16, 0.0  ;;  %v3961_v37 = vpop.eup %3294  ;;  %3308 = vpow2.f32 %v665_v29 }
 0x2b9   :  { %680 = vadd.xlane.f32.xlu0 %v679_v36  ;;  %671 = vadd.xlane.f32.xlu1 %v670_v21  ;;  %v676_v40 = vsel %vm594_vm4, %v3961_v37, 0.0 }
 0x2bb   :  { %v3963_v20 = vpop.eup %3296 }
 0x2bc   :  { %v685_v41 = vsel %vm594_vm4, %v3963_v20, 0.0  ;;  %v3969_v44 = vpop.eup %3298 }
 0x2bd   :  { %677 = vadd.xlane.f32.xlu1 %v676_v40  ;;  %686 = vadd.xlane.f32.xlu0 %v685_v41  ;;  %v682_v48 = vsel %vm594_vm4, %v3969_v44, 0.0 }
 0x2bf   :  { %v3971_v45 = vpop.eup %3300 }
 0x2c0   :  { %v691_v49 = vsel %vm594_vm4, %v3971_v45, 0.0  ;;  %v3977_v51 = vpop.eup %3302 }
 0x2c1   :  { %683 = vadd.xlane.f32.xlu1 %v682_v48  ;;  %692 = vadd.xlane.f32.xlu0 %v691_v49  ;;  %v688_v55 = vsel %vm594_vm4, %v3977_v51, 0.0 }
 0x2c3   :  { %v3979_v52 = vpop.eup %3304 }
 0x2c4   :  { %v697_v56 = vsel %vm594_vm4, %v3979_v52, 0.0  ;;  %v3985_v57 = vpop.eup %3306 }
 0x2c5   :  { %689 = vadd.xlane.f32.xlu1 %v688_v55  ;;  %698 = vadd.xlane.f32.xlu0 %v697_v56  ;;  %v694_v61 = vsel %vm594_vm4, %v3985_v57, 0.0  ;;  %v3989_v30 = vpop.eup %3308 }
 0x2c6   :  { %v700_v32 = vsel %vm594_vm4, %v3989_v30, 0.0 }
 0x2c9   :  { %695 = vadd.xlane.f32.xlu1 %v694_v61 }
 0x2cd   :  { %701 = vadd.xlane.f32.xlu1 %v700_v32 }
 0x2db   :  { %865 = vrot.lane.b32.xlu0 %v3852_v47, %s3709_s4 }
 0x2de   :  { %918 = vrot.lane.b32.xlu1 %v3859_v60, %s3709_s4 }
 0x2e2   :  { %862 = vrot.lane.b32.xlu1 %v3857_v59, %s3709_s4 }
 0x2e6   :  { %915 = vrot.lane.b32.xlu1 %v3868_v1, %s3709_s4 }
 0x33a   :  { %v669_v63 = vpop.xlane.xlu0 %668 }
 0x33b   :  { %3310 = vrcp.f32 %v669_v63 }
 0x33e   :  { %v675_v2 = vpop.xlane.xlu0 %674 }
 0x33f   :  { %3312 = vrcp.f32 %v675_v2 }
 0x342   :  { %v672_v42 = vpop.xlane.xlu1 %671  ;;  %v681_v5 = vpop.xlane.xlu0 %680 }
 0x343   :  { %3314 = vrcp.f32 %v672_v42 }
 0x344   :  { %3316 = vrcp.f32 %v681_v5 }
 0x346   :  { %v678_v6 = vpop.xlane.xlu1 %677  ;;  %v687_v7 = vpop.xlane.xlu0 %686 }
 0x347   :  { %3318 = vrcp.f32 %v678_v6 }
 0x348   :  { %v3311_v9 = vpop.eup %3310  ;;  %3320 = vrcp.f32 %v687_v7 }
 0x349   :  { %v715_v54 = vmul.f32 %v3311_v9, %v3945_v46 }
 0x34a   :  { %v684_v14 = vpop.xlane.xlu1 %683  ;;  %v693_v15 = vpop.xlane.xlu0 %692 }
 0x34b   :  { %727 = vst.msk [vmem:[#allocation15] sm:$0xff] %vm594_vm4, %v715_v54  ;;  %3322 = vrcp.f32 %v684_v14 }
 0x34c   :  { %v3313_v53 = vpop.eup %3312  ;;  %3324 = vrcp.f32 %v693_v15 }
 0x34d   :  { %v717_v18 = vmul.f32 %v3313_v53, %v3949_v3 }
 0x34e   :  { %v690_v19 = vpop.xlane.xlu1 %689  ;;  %v699_v24 = vpop.xlane.xlu0 %698 }
 0x34f   :  { %732 = vst.msk [vmem:[#allocation15 + $0x40] sm:$0xff] %vm594_vm4, %v717_v18  ;;  %3326 = vrcp.f32 %v690_v19  ;;  %v742_v21 = vsel %vm594_vm4, %v717_v18, 0.0 }
 0x350   :  { %v3315_v8 = vpop.eup %3314  ;;  %3328 = vrcp.f32 %v699_v24 }
 0x351   :  { %v3317_v17 = vpop.eup %3316  ;;  %v716_v25 = vmul.f32 %v3315_v8, %v3955_v16 }
 0x352   :  { %v719_v46 = vmul.f32 %v3317_v17, %v3953_v28  ;;  %v696_v27 = vpop.xlane.xlu1 %695  ;;  %v741_v28 = vsel %vm594_vm4, %v715_v54, 0.0 }
 0x353   :  { %728 = vst.msk [vmem:[#allocation15 + $0x8] sm:$0xff] %vm594_vm4, %v716_v25  ;;  %3330 = vrcp.f32 %v696_v27  ;;  %v743_v55 = vadd.f32 %v742_v21, %v741_v28  ;;  %v746_v61 = vsel %vm594_vm4, %v716_v25, 0.0 }
 0x354   :  { %v3319_v29 = vpop.eup %3318  ;;  %737 = vst.msk [vmem:[#allocation15 + $0x80] sm:$0xff] %vm594_vm4, %v719_v46  ;;  %v744_v16 = vsel %vm594_vm4, %v719_v46, 0.0 }
 0x355   :  { %v3321_v3 = vpop.eup %3320  ;;  %v718_v36 = vmul.f32 %v3319_v29, %v3961_v37  ;;  %v745_v32 = vadd.f32 %v744_v16, %v743_v55 }
 0x356   :  { %v721_v40 = vmul.f32 %v3321_v3, %v3963_v20  ;;  %v702_v41 = vpop.xlane.xlu1 %701 }
 0x357   :  { %733 = vst.msk [vmem:[#allocation15 + $0x48] sm:$0xff] %vm594_vm4, %v718_v36  ;;  %3332 = vrcp.f32 %v702_v41  ;;  %v747_v48 = vsel %vm594_vm4, %v718_v36, 0.0 }
 0x358   :  { %v3323_v49 = vpop.eup %3322  ;;  %729 = vst.msk [vmem:[#allocation15 + $0xc0] sm:$0xff] %vm594_vm4, %v721_v40  ;;  %v748_v63 = vadd.f32 %v747_v48, %v746_v61 }
 0x359   :  { %v3325_v56 = vpop.eup %3324  ;;  %v720_v37 = vmul.f32 %v3323_v49, %v3969_v44  ;;  %v761_v44 = vmul.f32 0.33333334, %v745_v32 }
 0x35a   :  { %v723_v20 = vmul.f32 %v3325_v56, %v3971_v45  ;;  %v866_v45 = vpop.permute.xlu0 %865 }
 0x35b   :  { %738 = vst.msk [vmem:[#allocation15 + $0x88] sm:$0xff] %vm594_vm4, %v720_v37  ;;  %v749_v2 = vsel %vm594_vm4, %v720_v37, 0.0  ;;  %v871_v19 = vsel %vm487_vm1, %v866_v45, 0 }
 0x35c   :  { %v3327_v42 = vpop.eup %3326  ;;  %734 = vst.msk [vmem:[#allocation15 + $0x100] sm:$0xff] %vm594_vm4, %v723_v20  ;;  %v750_v5 = vadd.f32 %v749_v2, %v748_v63  ;;  %v752_v18 = vsel %vm594_vm4, %v723_v20, 0.0 }
 0x35d   :  { %v3329_v6 = vpop.eup %3328  ;;  %v722_v7 = vmul.f32 %v3327_v42, %v3977_v51  ;;  %v919_v51 = vpop.permute.xlu1 %918 }
 0x35e   :  { %v725_v9 = vmul.f32 %v3329_v6, %v3979_v52  ;;  %v762_v54 = vmul.f32 0.33333334, %v750_v5  ;;  %v751_v52 = vsel %vm594_vm4, %v721_v40, 0.0 }
 0x35f   :  { %730 = vst.msk [vmem:[#allocation15 + $0xc8] sm:$0xff] %vm594_vm4, %v722_v7  ;;  %v753_v17 = vadd.f32 %v752_v18, %v751_v52  ;;  %v756_v46 = vsel %vm594_vm4, %v722_v7, 0.0 }
 0x360   :  { %v3331_v14 = vpop.eup %3330  ;;  %739 = vst.msk [vmem:[#allocation15 + $0x140] sm:$0xff] %vm594_vm4, %v725_v9  ;;  %v765_v15 = vpack.c.bf16 %v762_v54, %v761_v44  ;;  %v754_v24 = vsel %vm594_vm4, %v725_v9, 0.0 }
 0x361   :  { %v724_v53 = vmul.f32 %v3331_v14, %v3985_v57  ;;  %v755_v27 = vadd.f32 %v754_v24, %v753_v17  ;;  %v863_v21 = vpop.permute.xlu1 %862 }
 0x362   :  { %3070 = vmatmul.mubr.msk.bf16.vlgmr.msra.gmra.mxu1 %vm594_vm4, %v765_v15 }
 0x363   :  { %735 = vst.msk [vmem:[#allocation15 + $0x108] sm:$0xff] %vm594_vm4, %v724_v53  ;;  %3080 = vmatpush3.bf16.xpose.msra.mxu1 %v871_v19  ;;  %3081 = vmatprep.mubr.msk.bf16.mxu1 %vm3707_vm0, %v3706_v31  ;;  %v757_v8 = vsel %vm594_vm4, %v724_v53, 0.0  ;;  %v763_v40 = vmul.f32 0.33333334, %v755_v27 }
 0x364   :  { %v3333_v57 = vpop.eup %3332  ;;  %3091 = vmatprep.subr.bf16.mxu1 %v3706_v31  ;;  %v758_v29 = vadd.f32 %v757_v8, %v756_v46 }
 0x365   :  { %v726_v25 = vmul.f32 %v3333_v57, %v3989_v30  ;;  %v924_v30 = vsel %vm487_vm1, %v919_v51, 0  ;;  %v916_v16 = vpop.permute.xlu1 %915 }
 0x367   :  { %740 = vst.msk [vmem:[#allocation15 + $0x148] sm:$0xff] %vm594_vm4, %v726_v25  ;;  %v759_v3 = vsel %vm594_vm4, %v726_v25, 0.0 }
 0x368   :  { %v760_v36 = vadd.f32 %v759_v3, %v758_v29 }
 0x36a   :  { %3082 = vmatmul.mubr.msk.bf16.vlgmr.msra.gmra.mxu1 %vm487_vm1, %v863_v21  ;;  %v764_v41 = vmul.f32 0.33333334, %v760_v36 }
 0x36b   :  { %3093 = vmatprep.mubr.msk.bf16.mxu1 %vm3707_vm0, %v3706_v31 }
 0x36c   :  { %v766_v28 = vpack.c.bf16 %v764_v41, %v763_v40 }
 0x36e   :  { %3076 = vmatmul.mubr.msk.bf16.vlgmr.msra.gmra.mxu0 %vm594_vm4, %v766_v28 }
 0x36f   :  { %3086 = vmatpush3.bf16.xpose.msra.mxu0 %v924_v30  ;;  %3087 = vmatprep.mubr.msk.bf16.mxu0 %vm3707_vm0, %v3706_v31 }
 0x370   :  { %3097 = vmatprep.subr.bf16.mxu0 %v3706_v31 }
 0x376   :  { %3088 = vmatmul.mubr.msk.bf16.vlgmr.msra.gmra.mxu0 %vm487_vm1, %v916_v16 }
 0x377   :  { %3099 = vmatprep.mubr.msk.bf16.mxu0 %vm3707_vm0, %v3706_v31 }
 0x422   :  { %v4053_v48 = vpop.f32.mrf.mxu1 }
 0x424   :  { %v3071_v49 = vpop.f32.mrf.mxu1 }
 0x426   :  { %v4055_v55 = vpop.f32.mrf.mxu1 }
 0x427   :  { %v855_v56 = vpack.c.bf16 %v4055_v55, %v4053_v48  ;;  %v3240_v55 = vld [vmem:[#allocation10 + $0x18] sm:$0xff]  }
 0x428   :  { %v3072_v37 = vpop.f32.mrf.mxu1 }
 0x42a   :  { %v907_v61 = vpop.f32.mrf.mxu1 }
 0x42b   :  { %v967_v20 = vadd.f32 %v907_v61, %v3886_v23  ;;  %v969_v2 = vadd.f32 %v907_v61, %v3884_v22  ;;  %v971_v45 = vadd.f32 %v907_v61, %v3888_v26 }
 0x42c   :  { %v3083_v32 = vpop.f32.mrf.mxu1 }
 0x42d   :  { %v979_v63 = vsel %vm594_vm4, %v967_v20, -inf  ;;  %v985_v44 = vsel %vm594_vm4, %v969_v2, -inf  ;;  %v991_v19 = vsel %vm594_vm4, %v971_v45, -inf }
 0x42e   :  { %v4062_v42 = vpop.f32.mrf.mxu0  ;;  %980 = vmax.xlane.f32.xlu0 %v979_v63  ;;  %v910_v5 = vpop.f32.mrf.mxu1 }
 0x42f   :  { %v968_v6 = vadd.f32 %v910_v5, %v3903_v43  ;;  %v972_v14 = vadd.f32 %v910_v5, %v3897_v39  ;;  %v970_v52 = vadd.f32 %v910_v5, %v3894_v35 }
 0x430   :  { %v3077_v7 = vpop.f32.mrf.mxu0  ;;  %v3084_v9 = vpop.f32.mrf.mxu1 }
 0x431   :  { %v982_v54 = vsel %vm594_vm4, %v968_v6, -inf  ;;  %v994_v51 = vsel %vm594_vm4, %v972_v14, -inf  ;;  %v988_v57 = vsel %vm594_vm4, %v970_v52, -inf }
 0x432   :  { %v4069_v15 = vpop.f32.mrf.mxu0  ;;  %986 = vmax.xlane.f32.xlu0 %v985_v44  ;;  %983 = vmax.xlane.f32.xlu1 %v982_v54 }
 0x433   :  { %v856_v53 = vpack.c.bf16 %v4069_v15, %v4062_v42 }
 0x434   :  { %v3078_v18 = vpop.f32.mrf.mxu0 }
 0x436   :  { %v960_v24 = vpop.f32.mrf.mxu0  ;;  %992 = vmax.xlane.f32.xlu0 %v991_v19  ;;  %995 = vmax.xlane.f32.xlu1 %v994_v51 }
 0x437   :  { %v973_v17 = vadd.f32 %v960_v24, %v3908_v50  ;;  %v975_v36 = vadd.f32 %v960_v24, %v3919_v62  ;;  %v977_v28 = vadd.f32 %v960_v24, %v3930_v12 }
 0x438   :  { %v3089_v8 = vpop.f32.mrf.mxu0 }
 0x439   :  { %v997_v29 = vsel %vm594_vm4, %v973_v17, -inf  ;;  %v1003_v40 = vsel %vm594_vm4, %v975_v36, -inf  ;;  %v1009_v16 = vsel %vm594_vm4, %v977_v28, -inf }
 0x43a   :  { %v963_v25 = vpop.f32.mrf.mxu0  ;;  %989 = vmax.xlane.f32.xlu0 %v988_v57 }
 0x43b   :  { %v974_v46 = vadd.f32 %v963_v25, %v3917_v58  ;;  %v976_v21 = vadd.f32 %v963_v25, %v3925_v4  ;;  %v978_v30 = vadd.f32 %v963_v25, %v3928_v10 }
 0x43c   :  { %v3090_v27 = vpop.f32.mrf.mxu0 }
 0x43d   :  { %v1000_v3 = vsel %vm594_vm4, %v974_v46, -inf  ;;  %v1006_v41 = vsel %vm594_vm4, %v976_v21, -inf  ;;  %v1012_v49 = vsel %vm594_vm4, %v978_v30, -inf }
 0x43e   :  { %998 = vmax.xlane.f32.xlu0 %v997_v29  ;;  %1001 = vmax.xlane.f32.xlu1 %v1000_v3 }
 0x442   :  { %1004 = vmax.xlane.f32.xlu0 %v1003_v40  ;;  %1007 = vmax.xlane.f32.xlu1 %v1006_v41 }
 0x446   :  { %1010 = vmax.xlane.f32.xlu0 %v1009_v16  ;;  %1013 = vmax.xlane.f32.xlu1 %v1012_v49 }
 0x4b7   :  { %v981_v37 = vpop.xlane.xlu0 %980 }
 0x4b8   :  { %v1015_v61 = vsub.f32 %v967_v20, %v981_v37 }
 0x4ba   :  { %v1027_v32 = vmul.f32 1.442695, %v1015_v61 }
 0x4bb   :  { %v987_v63 = vpop.xlane.xlu0 %986  ;;  %v984_v5 = vpop.xlane.xlu1 %983 }
 0x4bc   :  { %3334 = vpow2.f32 %v1027_v32  ;;  %v1017_v7 = vsub.f32 %v969_v2, %v987_v63  ;;  %v1016_v9 = vsub.f32 %v968_v6, %v984_v5 }
 0x4be   :  { %v1031_v44 = vmul.f32 1.442695, %v1017_v7  ;;  %v1029_v54 = vmul.f32 1.442695, %v1016_v9 }
 0x4bf   :  { %v993_v18 = vpop.xlane.xlu0 %992  ;;  %v996_v19 = vpop.xlane.xlu1 %995 }
 0x4c0   :  { %3336 = vpow2.f32 %v1031_v44  ;;  %v1019_v51 = vsub.f32 %v971_v45, %v993_v18  ;;  %v1020_v8 = vsub.f32 %v972_v14, %v996_v19 }
 0x4c1   :  { %3338 = vpow2.f32 %v1029_v54 }
 0x4c2   :  { %v1035_v24 = vmul.f32 1.442695, %v1019_v51  ;;  %v1037_v27 = vmul.f32 1.442695, %v1020_v8 }
 0x4c3   :  { %v990_v57 = vpop.xlane.xlu0 %989 }
 0x4c4   :  { %3340 = vpow2.f32 %v1035_v24  ;;  %v1018_v25 = vsub.f32 %v970_v52, %v990_v57 }
 0x4c6   :  { %v1033_v20 = vmul.f32 1.442695, %v1018_v25 }
 0x4c7   :  { %v999_v29 = vpop.xlane.xlu0 %998  ;;  %v1002_v3 = vpop.xlane.xlu1 %1001 }
 0x4c8   :  { %3342 = vpow2.f32 %v1033_v20  ;;  %v1021_v40 = vsub.f32 %v973_v17, %v999_v29  ;;  %v1022_v2 = vsub.f32 %v974_v46, %v1002_v3 }
 0x4c9   :  { %v4089_v6 = vpop.eup %3334  ;;  %3344 = vpow2.f32 %v1037_v27 }
 0x4ca   :  { %v1039_v41 = vmul.f32 1.442695, %v1021_v40  ;;  %v1041_v16 = vmul.f32 1.442695, %v1022_v2  ;;  %v1051_v45 = vsel %vm594_vm4, %v4089_v6, 0.0 }
 0x4cb   :  { %1052 = vadd.xlane.f32.xlu0 %v1051_v45  ;;  %v1005_v14 = vpop.xlane.xlu0 %1004  ;;  %v1008_v49 = vpop.xlane.xlu1 %1007 }
 0x4cc   :  { %3346 = vpow2.f32 %v1039_v41  ;;  %v1023_v52 = vsub.f32 %v975_v36, %v1005_v14  ;;  %v1024_v37 = vsub.f32 %v976_v21, %v1008_v49 }
 0x4cd   :  { %v4093_v61 = vpop.eup %3336  ;;  %3348 = vpow2.f32 %v1041_v16 }
 0x4ce   :  { %v4095_v32 = vpop.eup %3338  ;;  %v1043_v17 = vmul.f32 1.442695, %v1023_v52  ;;  %v1045_v46 = vmul.f32 1.442695, %v1024_v37  ;;  %v1057_v63 = vsel %vm594_vm4, %v4093_v61, 0.0 }
 0x4cf   :  { %1058 = vadd.xlane.f32.xlu0 %v1057_v63  ;;  %v1011_v5 = vpop.xlane.xlu0 %1010  ;;  %v1054_v7 = vsel %vm594_vm4, %v4095_v32, 0.0  ;;  %v1014_v9 = vpop.xlane.xlu1 %1013 }
 0x4d0   :  { %3350 = vpow2.f32 %v1043_v17  ;;  %v1025_v44 = vsub.f32 %v977_v28, %v1011_v5  ;;  %1055 = vadd.xlane.f32.xlu1 %v1054_v7  ;;  %v1026_v36 = vsub.f32 %v978_v30, %v1014_v9 }
 0x4d1   :  { %v4101_v21 = vpop.eup %3340  ;;  %3352 = vpow2.f32 %v1045_v46 }
 0x4d2   :  { %v1047_v54 = vmul.f32 1.442695, %v1025_v44  ;;  %v1049_v18 = vmul.f32 1.442695, %v1026_v36  ;;  %v1063_v19 = vsel %vm594_vm4, %v4101_v21, 0.0 }
 0x4d3   :  { %1064 = vadd.xlane.f32.xlu0 %v1063_v19 }
 0x4d4   :  { %3354 = vpow2.f32 %v1047_v54 }
 0x4d5   :  { %v4105_v51 = vpop.eup %3342  ;;  %3356 = vpow2.f32 %v1049_v18 }
 0x4d6   :  { %v1060_v24 = vsel %vm594_vm4, %v4105_v51, 0.0  ;;  %v4109_v8 = vpop.eup %3344 }
 0x4d7   :  { %1061 = vadd.xlane.f32.xlu1 %v1060_v24  ;;  %v1066_v57 = vsel %vm594_vm4, %v4109_v8, 0.0 }
 0x4d9   :  { %v4111_v28 = vpop.eup %3346 }
 0x4da   :  { %v1069_v30 = vsel %vm594_vm4, %v4111_v28, 0.0  ;;  %v4117_v25 = vpop.eup %3348 }
 0x4db   :  { %1070 = vadd.xlane.f32.xlu0 %v1069_v30  ;;  %1067 = vadd.xlane.f32.xlu1 %v1066_v57  ;;  %v1072_v29 = vsel %vm594_vm4, %v4117_v25, 0.0 }
 0x4dd   :  { %v4119_v27 = vpop.eup %3350 }
 0x4de   :  { %v1075_v20 = vsel %vm594_vm4, %v4119_v27, 0.0  ;;  %v4125_v3 = vpop.eup %3352 }
 0x4df   :  { %1076 = vadd.xlane.f32.xlu0 %v1075_v20  ;;  %1073 = vadd.xlane.f32.xlu1 %v1072_v29  ;;  %v1078_v41 = vsel %vm594_vm4, %v4125_v3, 0.0 }
 0x4e1   :  { %v4127_v40 = vpop.eup %3354 }
 0x4e2   :  { %v1081_v2 = vsel %vm594_vm4, %v4127_v40, 0.0  ;;  %v4133_v16 = vpop.eup %3356 }
 0x4e3   :  { %1082 = vadd.xlane.f32.xlu0 %v1081_v2  ;;  %1079 = vadd.xlane.f32.xlu1 %v1078_v41  ;;  %v1084_v45 = vsel %vm594_vm4, %v4133_v16, 0.0 }
 0x4e7   :  { %1085 = vadd.xlane.f32.xlu1 %v1084_v45 }
 0x4f8   :  { %1201 = vrot.lane.b32.xlu1 %v3875_v11, %s3709_s4 }
 0x4f9   :  { %1153 = vrot.lane.b32.xlu0 %v3877_v13, %s3709_s4 }
 0x4fc   :  { %1390 = vrot.lane.b32.xlu1 %v3852_v47, %s3702_s1 }
 0x4fd   :  { %1388 = vrot.lane.b32.xlu0 %v3857_v59, %s3702_s1 }
 0x500   :  { %1441 = vrot.lane.b32.xlu1 %v3859_v60, %s3702_s1 }
 0x504   :  { %1439 = vrot.lane.b32.xlu1 %v3868_v1, %s3702_s1 }
 0x554   :  { %v1053_v14 = vpop.xlane.xlu0 %1052 }
 0x555   :  { %3358 = vrcp.f32 %v1053_v14 }
 0x558   :  { %v1059_v49 = vpop.xlane.xlu0 %1058 }
 0x559   :  { %3360 = vrcp.f32 %v1059_v49  ;;  %v1056_v52 = vpop.xlane.xlu1 %1055  ;;  %v3238_v49 = vld [vmem:[#allocation10 + $0x8] sm:$0xff]  }
 0x55a   :  { %3362 = vrcp.f32 %v1056_v52 }
 0x55c   :  { %v1065_v37 = vpop.xlane.xlu0 %1064 }
 0x55d   :  { %3364 = vrcp.f32 %v1065_v37 }
 0x560   :  { %v1062_v17 = vpop.xlane.xlu1 %1061 }
 0x561   :  { %3366 = vrcp.f32 %v1062_v17 }
 0x562   :  { %v3359_v46 = vpop.eup %3358 }
 0x563   :  { %v1099_v63 = vmul.f32 %v3359_v46, %v4089_v6 }
 0x564   :  { %v1071_v5 = vpop.xlane.xlu0 %1070  ;;  %v1068_v7 = vpop.xlane.xlu1 %1067 }
 0x565   :  { %1112 = vst.msk [vmem:[#allocation15 + $0x10] sm:$0xff] %vm594_vm4, %v1099_v63  ;;  %3368 = vrcp.f32 %v1071_v5 }
 0x566   :  { %v3361_v9 = vpop.eup %3360  ;;  %3370 = vrcp.f32 %v1068_v7 }
 0x567   :  { %v3363_v44 = vpop.eup %3362  ;;  %v1101_v36 = vmul.f32 %v3361_v9, %v4093_v61 }
 0x568   :  { %v1100_v54 = vmul.f32 %v3363_v44, %v4095_v32  ;;  %v1077_v18 = vpop.xlane.xlu0 %1076  ;;  %v1074_v19 = vpop.xlane.xlu1 %1073 }
 0x569   :  { %1117 = vst.msk [vmem:[#allocation15 + $0x50] sm:$0xff] %vm594_vm4, %v1101_v36  ;;  %3372 = vrcp.f32 %v1077_v18  ;;  %v1127_v32 = vsel %vm594_vm4, %v1101_v36, 0.0 }
 0x56a   :  { %v3365_v24 = vpop.eup %3364  ;;  %1113 = vst.msk [vmem:[#allocation15 + $0x18] sm:$0xff] %vm594_vm4, %v1100_v54  ;;  %3374 = vrcp.f32 %v1074_v19  ;;  %v1131_v17 = vsel %vm594_vm4, %v1100_v54, 0.0 }
 0x56b   :  { %v1103_v6 = vmul.f32 %v3365_v24, %v4101_v21  ;;  %v1126_v21 = vsel %vm594_vm4, %v1099_v63, 0.0 }
 0x56c   :  { %v1083_v30 = vpop.xlane.xlu0 %1082  ;;  %v1080_v57 = vpop.xlane.xlu1 %1079 }
 0x56d   :  { %1122 = vst.msk [vmem:[#allocation15 + $0x90] sm:$0xff] %vm594_vm4, %v1103_v6  ;;  %3376 = vrcp.f32 %v1083_v30  ;;  %v1129_v14 = vsel %vm594_vm4, %v1103_v6, 0.0 }
 0x56e   :  { %v3367_v20 = vpop.eup %3366  ;;  %3378 = vrcp.f32 %v1080_v57 }
 0x56f   :  { %v1102_v61 = vmul.f32 %v3367_v20, %v4105_v51  ;;  %v1128_v51 = vadd.f32 %v1127_v32, %v1126_v21 }
 0x570   :  { %v1154_v29 = vpop.permute.xlu0 %1153  ;;  %v1086_v2 = vpop.xlane.xlu1 %1085 }
 0x571   :  { %1118 = vst.msk [vmem:[#allocation15 + $0x58] sm:$0xff] %vm594_vm4, %v1102_v61  ;;  %3380 = vrcp.f32 %v1086_v2  ;;  %3092 = vmatpush3.bf16.msra.mxu1 %v1154_v29  ;;  %v1132_v45 = vsel %vm594_vm4, %v1102_v61, 0.0  ;;  %v1130_v7 = vadd.f32 %v1129_v14, %v1128_v51 }
 0x572   :  { %v3369_v41 = vpop.eup %3368  ;;  %v1133_v9 = vadd.f32 %v1132_v45, %v1131_v17  ;;  %v3239_v17 = vld [vmem:[#allocation10] sm:$0xff]   ;;  %3103 = vmatprep.subr.bf16.mxu1 %v3240_v55 }
 0x573   :  { %v3371_v52 = vpop.eup %3370  ;;  %v1105_v37 = vmul.f32 %v3369_v41, %v4111_v28 }
 0x574   :  { %v1104_v46 = vmul.f32 %v3371_v52, %v4109_v8  ;;  %v1202_v5 = vpop.permute.xlu1 %1201  ;;  %v1146_v8 = vmul.f32 0.33333334, %v1130_v7 }
 0x575   :  { %1114 = vst.msk [vmem:[#allocation15 + $0xd0] sm:$0xff] %vm594_vm4, %v1105_v37  ;;  %3098 = vmatpush3.bf16.msra.mxu0 %v1202_v5 }
 0x576   :  { %v3373_v63 = vpop.eup %3372  ;;  %1123 = vst.msk [vmem:[#allocation15 + $0x98] sm:$0xff] %vm594_vm4, %v1104_v46  ;;  %v1134_v44 = vsel %vm594_vm4, %v1104_v46, 0.0  ;;  %3111 = vmatprep.subr.bf16.mxu0 %v3238_v49 }
 0x577   :  { %v3375_v36 = vpop.eup %3374  ;;  %v1107_v28 = vmul.f32 %v3373_v63, %v4119_v27  ;;  %v1135_v18 = vadd.f32 %v1134_v44, %v1133_v9  ;;  %v1136_v27 = vsel %vm594_vm4, %v1105_v37, 0.0 }
 0x578   :  { %v1106_v54 = vmul.f32 %v3375_v36, %v4117_v25  ;;  %v1391_v46 = vpop.permute.xlu1 %1390 }
 0x579   :  { %1119 = vst.msk [vmem:[#allocation15 + $0x110] sm:$0xff] %vm594_vm4, %v1107_v28  ;;  %v1147_v19 = vmul.f32 0.33333334, %v1135_v18  ;;  %v1137_v30 = vsel %vm594_vm4, %v1107_v28, 0.0  ;;  %v1396_v18 = vsel %vm487_vm1, %v1391_v46, 0 }
 0x57a   :  { %v3377_v24 = vpop.eup %3376  ;;  %1115 = vst.msk [vmem:[#allocation15 + $0xd8] sm:$0xff] %vm594_vm4, %v1106_v54  ;;  %v1138_v2 = vadd.f32 %v1137_v30, %v1136_v27  ;;  %v1141_v41 = vsel %vm594_vm4, %v1106_v54, 0.0 }
 0x57b   :  { %v3379_v6 = vpop.eup %3378  ;;  %v1109_v57 = vmul.f32 %v3377_v24, %v4127_v40  ;;  %v1150_v20 = vpack.c.bf16 %v1147_v19, %v1146_v8  ;;  %v1389_v24 = vpop.permute.xlu0 %1388 }
 0x57c   :  { %v1108_v61 = vmul.f32 %v3379_v6, %v4125_v3 }
 0x57d   :  { %1124 = vst.msk [vmem:[#allocation15 + $0x150] sm:$0xff] %vm594_vm4, %v1109_v57  ;;  %3094 = vmatmul.mubr.msk.bf16.vlgmr.msra.gmra.mxu1 %vm594_vm4, %v1150_v20  ;;  %v1139_v25 = vsel %vm594_vm4, %v1109_v57, 0.0 }
 0x57e   :  { %v3381_v32 = vpop.eup %3380  ;;  %1120 = vst.msk [vmem:[#allocation15 + $0x118] sm:$0xff] %vm594_vm4, %v1108_v61  ;;  %v1142_v29 = vsel %vm594_vm4, %v1108_v61, 0.0  ;;  %v1140_v21 = vadd.f32 %v1139_v25, %v1138_v2  ;;  %3104 = vmatpush3.bf16.msra.mxu1 %v3240_v55 }
 0x57f   :  { %v1110_v40 = vmul.f32 %v3381_v32, %v4133_v16  ;;  %v1143_v3 = vadd.f32 %v1142_v29, %v1141_v41  ;;  %v1442_v16 = vpop.permute.xlu1 %1441 }
 0x580   :  { %v1148_v52 = vmul.f32 0.33333334, %v1140_v21  ;;  %v1447_v5 = vsel %vm487_vm1, %v1442_v16, 0 }
 0x581   :  { %1125 = vst.msk [vmem:[#allocation15 + $0x158] sm:$0xff] %vm594_vm4, %v1110_v40  ;;  %v1144_v45 = vsel %vm594_vm4, %v1110_v40, 0.0 }
 0x582   :  { %v1145_v14 = vadd.f32 %v1144_v45, %v1143_v3 }
 0x583   :  { %v1440_v48 = vpop.permute.xlu1 %1439 }
 0x584   :  { %v1149_v37 = vmul.f32 0.33333334, %v1145_v14 }
 0x586   :  { %v1151_v51 = vpack.c.bf16 %v1149_v37, %v1148_v52 }
 0x588   :  { %3100 = vmatmul.mubr.msk.bf16.vlgmr.msra.gmra.mxu0 %vm594_vm4, %v1151_v51 }
 0x589   :  { %3112 = vmatpush3.bf16.msra.mxu0 %v3238_v49  ;;  %3115 = vmatprep.mubr.msk.bf16.mxu0 %vm487_vm1, %v855_v56  ;;  %v3241_v56 = vld [vmem:[#allocation10 + $0x10] sm:$0xff]  }
 0x58a   :  { %3113 = vmatprep.subr.bf16.mxu0 %v3239_v17  ;;  %3105 = vmatprep.subr.bf16.mxu1 %v3241_v56 }
 0x58b   :  { %3106 = vmatpush3.bf16.msra.mxu1 %v3241_v56 }
 0x58c   :  { %3119 = vmatprep.subr.bf16.mxu1 %v3706_v31 }
 0x58d   :  { %3114 = vmatpush3.bf16.msra.mxu0 %v3239_v17 }
 0x58e   :  { %3125 = vmatprep.subr.bf16.mxu0 %v3706_v31 }
 0x590   :  { %3116 = vmatmul.mubr.msk.bf16.vlgmr.msra.gmra.mxu0 %vm487_vm1, %v856_v53 }
 0x591   :  { %3126 = vmatpush3.bf16.xpose.msra.mxu0 %v1447_v5  ;;  %3127 = vmatprep.mubr.msk.bf16.mxu0 %vm3707_vm0, %v3706_v31 }
 0x592   :  { %3137 = vmatprep.subr.bf16.mxu0 %v3706_v31 }
 0x598   :  { %3128 = vmatmul.mubr.msk.bf16.vlgmr.msra.gmra.mxu0 %vm487_vm1, %v1440_v48 }
 0x599   :  { %3139 = vmatprep.mubr.msk.bf16.mxu0 %vm3707_vm0, %v3706_v31 }
 0x63d   :  { %v1193_v42 = vpop.f32.mrf.mxu1 }
 0x63f   :  { %v3095_v15 = vpop.f32.mrf.mxu1 }
 0x641   :  { %v1196_v53 = vpop.f32.mrf.mxu1 }
 0x642   :  { %v1248_v49 = vpack.c.bf16 %v1196_v53, %v1193_v42 }
 0x643   :  { %v3096_v7 = vpop.f32.mrf.mxu1 }
 0x644   :  { %3107 = vmatprep.mubr.msk.bf16.mxu1 %vm487_vm1, %v1248_v49 }
 0x648   :  { %v1241_v9 = vpop.f32.mrf.mxu0 }
 0x64a   :  { %v3101_v63 = vpop.f32.mrf.mxu0 }
 0x64c   :  { %v1244_v44 = vpop.f32.mrf.mxu0 }
 0x64d   :  { %v1249_v36 = vpack.c.bf16 %v1244_v44, %v1241_v9 }
 0x64e   :  { %v3102_v28 = vpop.f32.mrf.mxu0 }
 0x64f   :  { %3108 = vmatmul.mubr.msk.bf16.vlgmr.msra.gmra.mxu1 %vm487_vm1, %v1249_v36 }
 0x650   :  { %3120 = vmatpush3.bf16.xpose.msra.mxu1 %v1396_v18  ;;  %v4207_v54 = vpop.f32.mrf.mxu0  ;;  %3121 = vmatprep.mubr.msk.bf16.mxu1 %vm3707_vm0, %v3706_v31 }
 0x651   :  { %3131 = vmatprep.subr.bf16.mxu1 %v3706_v31 }
 0x652   :  { %v4212_v8 = vpop.f32.mrf.mxu0 }
 0x654   :  { %v4214_v19 = vpop.f32.mrf.mxu0 }
 0x656   :  { %v4216_v6 = vpop.f32.mrf.mxu0 }
 0x657   :  { %3122 = vmatmul.mubr.msk.bf16.vlgmr.msra.gmra.mxu1 %vm487_vm1, %v1389_v24 }
 0x658   :  { %v1483_v30 = vpop.f32.mrf.mxu0  ;;  %3133 = vmatprep.mubr.msk.bf16.mxu1 %vm3707_vm0, %v3706_v31 }
 0x659   :  { %v1496_v57 = vadd.f32 %v1483_v30, %v3908_v50  ;;  %v1498_v27 = vadd.f32 %v1483_v30, %v3919_v62 }
 0x65a   :  { %v3129_v20 = vpop.f32.mrf.mxu0 }
 0x65b   :  { %v1520_v61 = vsel %vm594_vm4, %v1496_v57, -inf  ;;  %v1526_v2 = vsel %vm594_vm4, %v1498_v27, -inf }
 0x65c   :  { %1521 = vmax.xlane.f32.xlu0 %v1520_v61  ;;  %v1486_v25 = vpop.f32.mrf.mxu0 }
 0x65d   :  { %v1497_v32 = vadd.f32 %v1486_v25, %v3917_v58  ;;  %v1499_v40 = vadd.f32 %v1486_v25, %v3925_v4 }
 0x65e   :  { %v3130_v29 = vpop.f32.mrf.mxu0 }
 0x65f   :  { %v1523_v41 = vsel %vm594_vm4, %v1497_v32, -inf  ;;  %v1529_v21 = vsel %vm594_vm4, %v1499_v40, -inf }
 0x660   :  { %1527 = vmax.xlane.f32.xlu0 %v1526_v2  ;;  %1524 = vmax.xlane.f32.xlu1 %v1523_v41 }
 0x664   :  { %1530 = vmax.xlane.f32.xlu1 %v1529_v21  ;;  %v1500_v21 = vadd.f32 %v1483_v30, %v3930_v12 }
 0x6e5   :  { %v1522_v14 = vpop.xlane.xlu0 %1521 }
 0x6e6   :  { %v1544_v46 = vsub.f32 %v1496_v57, %v1522_v14 }
 0x6e8   :  { %v1562_v42 = vmul.f32 1.442695, %v1544_v46 }
 0x6e9   :  { %v1525_v3 = vpop.xlane.xlu1 %1524  ;;  %v1528_v48 = vpop.xlane.xlu0 %1527 }
 0x6ea   :  { %v1545_v37 = vsub.f32 %v1497_v32, %v1525_v3  ;;  %v1546_v53 = vsub.f32 %v1498_v27, %v1528_v48  ;;  %v1501_v27 = vadd.f32 %v1486_v25, %v3928_v10 }
 0x6ec   :  { %v1564_v55 = vmul.f32 1.442695, %v1545_v37  ;;  %v1566_v28 = vmul.f32 1.442695, %v1546_v53  ;;  %v1532_v37 = vsel %vm594_vm4, %v1500_v21, -inf }
 0x6ed   :  { %v1531_v51 = vpop.xlane.xlu1 %1530 }
 0x6ee   :  { %v1547_v16 = vsub.f32 %v1499_v40, %v1531_v51  ;;  %3382 = vpow2.f32 %v1564_v55  ;;  %v1535_v40 = vsel %vm594_vm4, %v1501_v27, -inf }
 0x6ef   :  { %3384 = vpow2.f32 %v1562_v42 }
 0x6f0   :  { %v1568_v49 = vmul.f32 1.442695, %v1547_v16 }
 0x6f2   :  { %3386 = vpow2.f32 %v1568_v49 }
 0x6f3   :  { %3388 = vpow2.f32 %v1566_v28 }
 0x6fb   :  { %v4255_v3 = vpop.eup %3382 }
 0x6fc   :  { %v4257_v25 = vpop.eup %3384  ;;  %v1595_v51 = vsel %vm594_vm4, %v4255_v3, 0.0 }
 0x6fd   :  { %v1592_v46 = vsel %vm594_vm4, %v4257_v25, 0.0 }
 0x6ff   :  { %v4259_v14 = vpop.eup %3386 }
 0x700   :  { %v1601_v30 = vsel %vm594_vm4, %v4259_v14, 0.0  ;;  %v4268_v16 = vpop.eup %3388 }
 0x701   :  { %v1598_v48 = vsel %vm594_vm4, %v4268_v16, 0.0 }
 0x70f   :  { %v4229_v45 = vpop.f32.mrf.mxu1 }
 0x711   :  { %v4231_v52 = vpop.f32.mrf.mxu1 }
 0x713   :  { %v4233_v17 = vpop.f32.mrf.mxu1 }
 0x715   :  { %v4235_v5 = vpop.f32.mrf.mxu1 }
 0x717   :  { %v1432_v56 = vpop.f32.mrf.mxu1 }
 0x718   :  { %v1490_v15 = vadd.f32 %v1432_v56, %v3886_v23  ;;  %v1492_v63 = vadd.f32 %v1432_v56, %v3884_v22  ;;  %v1494_v20 = vadd.f32 %v1432_v56, %v3888_v26 }
 0x719   :  { %v3123_v7 = vpop.f32.mrf.mxu1 }
 0x71a   :  { %v1502_v9 = vsel %vm594_vm4, %v1490_v15, -inf  ;;  %v1508_v24 = vsel %vm594_vm4, %v1492_v63, -inf  ;;  %v1514_v32 = vsel %vm594_vm4, %v1494_v20, -inf }
 0x71b   :  { %1503 = vmax.xlane.f32.xlu0 %v1502_v9  ;;  %v1435_v44 = vpop.f32.mrf.mxu1 }
 0x71c   :  { %v1491_v36 = vadd.f32 %v1435_v44, %v3903_v43  ;;  %v4245_v61 = vadd.f32 %v1435_v44, %v3897_v39  ;;  %v1493_v2 = vadd.f32 %v1435_v44, %v3894_v35 }
 0x71d   :  { %v3124_v18 = vpop.f32.mrf.mxu1 }
 0x71e   :  { %v1505_v57 = vsel %vm594_vm4, %v1491_v36, -inf  ;;  %v1517_v29 = vsel %vm594_vm4, %v4245_v61, -inf  ;;  %v1511_v41 = vsel %vm594_vm4, %v1493_v2, -inf }
 0x71f   :  { %1509 = vmax.xlane.f32.xlu0 %v1508_v24  ;;  %1506 = vmax.xlane.f32.xlu1 %v1505_v57 }
 0x723   :  { %1515 = vmax.xlane.f32.xlu0 %v1514_v32  ;;  %1518 = vmax.xlane.f32.xlu1 %v1517_v29 }
 0x727   :  { %1512 = vmax.xlane.f32.xlu0 %v1511_v41  ;;  %1536 = vmax.xlane.f32.xlu1 %v1535_v40 }
 0x72b   :  { %1533 = vmax.xlane.f32.xlu0 %v1532_v37  ;;  %1596 = vadd.xlane.f32.xlu1 %v1595_v51 }
 0x72f   :  { %1593 = vadd.xlane.f32.xlu0 %v1592_v46  ;;  %1602 = vadd.xlane.f32.xlu1 %v1601_v30 }
 0x733   :  { %1599 = vadd.xlane.f32.xlu0 %v1598_v48 }
 0x7a4   :  { %v1504_v55 = vpop.xlane.xlu0 %1503 }
 0x7a5   :  { %v1538_v56 = vsub.f32 %v1490_v15, %v1504_v55 }
 0x7a7   :  { %v1550_v42 = vmul.f32 1.442695, %v1538_v56 }
 0x7a8   :  { %v1510_v53 = vpop.xlane.xlu0 %1509  ;;  %v1507_v49 = vpop.xlane.xlu1 %1506 }
 0x7a9   :  { %3390 = vpow2.f32 %v1550_v42  ;;  %v1540_v7 = vsub.f32 %v1492_v63, %v1510_v53  ;;  %v1539_v57 = vsub.f32 %v1491_v36, %v1507_v49 }
 0x7ab   :  { %v1554_v9 = vmul.f32 1.442695, %v1540_v7  ;;  %v1552_v37 = vmul.f32 1.442695, %v1539_v57 }
 0x7ac   :  { %v1516_v44 = vpop.xlane.xlu0 %1515  ;;  %v1519_v28 = vpop.xlane.xlu1 %1518 }
 0x7ad   :  { %3392 = vpow2.f32 %v1554_v9  ;;  %v1542_v18 = vsub.f32 %v1494_v20, %v1516_v44  ;;  %v1543_v36 = vsub.f32 %v4245_v61, %v1519_v28 }
 0x7af   :  { %v1558_v24 = vmul.f32 1.442695, %v1542_v18  ;;  %v1560_v42 = vmul.f32 1.442695, %v1543_v36 }
 0x7b0   :  { %v1513_v32 = vpop.xlane.xlu0 %1512  ;;  %v1537_v29 = vpop.xlane.xlu1 %1536 }
 0x7b1   :  { %3394 = vpow2.f32 %v1558_v24  ;;  %v1549_v41 = vsub.f32 %v1501_v27, %v1537_v29  ;;  %v1541_v51 = vsub.f32 %v1493_v2, %v1513_v32 }
 0x7b3   :  { %v1572_v40 = vmul.f32 1.442695, %v1549_v41  ;;  %v1556_v55 = vmul.f32 1.442695, %v1541_v51 }
 0x7b4   :  { %v1534_v15 = vpop.xlane.xlu0 %1533  ;;  %v1597_v46 = vpop.xlane.xlu1 %1596 }
 0x7b5   :  { %v1548_v30 = vsub.f32 %v1500_v21, %v1534_v15  ;;  %3396 = vpow2.f32 %v1572_v40 }
 0x7b6   :  { %v4272_v48 = vpop.eup %3390  ;;  %3398 = vrcp.f32 %v1597_v46 }
 0x7b7   :  { %v1570_v63 = vmul.f32 1.442695, %v1548_v30  ;;  %v1574_v20 = vsel %vm594_vm4, %v4272_v48, 0.0  ;;  %3400 = vpow2.f32 %v1552_v37 }
 0x7b8   :  { %1575 = vadd.xlane.f32.xlu0 %v1574_v20  ;;  %v1594_v27 = vpop.xlane.xlu0 %1593  ;;  %v1603_v56 = vpop.xlane.xlu1 %1602 }
 0x7b9   :  { %3402 = vpow2.f32 %v1570_v63 }
 0x7ba   :  { %v4277_v2 = vpop.eup %3392  ;;  %3404 = vrcp.f32 %v1594_v27 }
 0x7bb   :  { %3406 = vrcp.f32 %v1603_v56  ;;  %v1580_v21 = vsel %vm594_vm4, %v4277_v2, 0.0 }
 0x7bc   :  { %3408 = vpow2.f32 %v1556_v55  ;;  %1581 = vadd.xlane.f32.xlu0 %v1580_v21  ;;  %v1600_v53 = vpop.xlane.xlu0 %1599 }
 0x7bd   :  { %3410 = vrcp.f32 %v1600_v53 }
 0x7be   :  { %v4281_v49 = vpop.eup %3394  ;;  %3412 = vpow2.f32 %v1560_v42 }
 0x7bf   :  { %v1586_v61 = vsel %vm594_vm4, %v4281_v49, 0.0 }
 0x7c0   :  { %1587 = vadd.xlane.f32.xlu0 %v1586_v61 }
 0x7c2   :  { %v4285_v7 = vpop.eup %3396 }
 0x7c3   :  { %v3399_v9 = vpop.eup %3398  ;;  %v1607_v44 = vsel %vm594_vm4, %v4285_v7, 0.0 }
 0x7c4   :  { %v4289_v28 = vpop.eup %3400  ;;  %v1629_v18 = vmul.f32 %v3399_v9, %v4255_v3  ;;  %1608 = vadd.xlane.f32.xlu1 %v1607_v44 }
 0x7c5   :  { %v1577_v40 = vsel %vm594_vm4, %v4289_v28, 0.0 }
 0x7c6   :  { %v4292_v24 = vpop.eup %3402  ;;  %1638 = vst.msk [vmem:[#allocation15 + $0xe8] sm:$0xff] %vm594_vm4, %v1629_v18  ;;  %v1664_v15 = vsel %vm594_vm4, %v1629_v18, 0.0 }
 0x7c7   :  { %v3405_v57 = vpop.eup %3404  ;;  %v1604_v32 = vsel %vm594_vm4, %v4292_v24, 0.0 }
 0x7c8   :  { %v3407_v29 = vpop.eup %3406  ;;  %v1628_v41 = vmul.f32 %v3405_v57, %v4257_v25  ;;  %1605 = vadd.xlane.f32.xlu0 %v1604_v32  ;;  %1578 = vadd.xlane.f32.xlu1 %v1577_v40 }
 0x7c9   :  { %v4300_v37 = vpop.eup %3408  ;;  %v1631_v3 = vmul.f32 %v3407_v29, %v4259_v14 }
 0x7ca   :  { %v3411_v51 = vpop.eup %3410  ;;  %1637 = vst.msk [vmem:[#allocation15 + $0xe0] sm:$0xff] %vm594_vm4, %v1628_v41  ;;  %v1583_v30 = vsel %vm594_vm4, %v4300_v37, 0.0  ;;  %v1659_v14 = vsel %vm594_vm4, %v1628_v41, 0.0 }
 0x7cb   :  { %1643 = vst.msk [vmem:[#allocation15 + $0x128] sm:$0xff] %vm594_vm4, %v1631_v3  ;;  %v1665_v46 = vsel %vm594_vm4, %v1631_v3, 0.0  ;;  %v1630_v25 = vmul.f32 %v3411_v51, %v4268_v16  ;;  %v4310_v20 = vpop.eup %3412 }
 0x7cc   :  { %v1666_v63 = vadd.f32 %v1665_v46, %v1664_v15  ;;  %1584 = vadd.xlane.f32.xlu1 %v1583_v30  ;;  %v1589_v27 = vsel %vm594_vm4, %v4310_v20, 0.0 }
 0x7cd   :  { %1642 = vst.msk [vmem:[#allocation15 + $0x120] sm:$0xff] %vm594_vm4, %v1630_v25  ;;  %v1660_v36 = vsel %vm594_vm4, %v1630_v25, 0.0 }
 0x7ce   :  { %v1661_v55 = vadd.f32 %v1660_v36, %v1659_v14 }
 0x7d0   :  { %1590 = vadd.xlane.f32.xlu1 %v1589_v27 }
 0x7de   :  { %1675 = vrot.lane.b32.xlu0 %v3877_v13, %s3702_s1 }
 0x7e1   :  { %1722 = vrot.lane.b32.xlu1 %v3875_v11, %s3702_s1 }
 0x7e2   :  { %1846 = vrot.lane.b32.xlu0 %v3857_v59, %s3710_s0 }
 0x7e5   :  { %1848 = vrot.lane.b32.xlu1 %v3852_v47, %s3710_s0 }
 0x7e9   :  { %1899 = vrot.lane.b32.xlu1 %v3859_v60, %s3710_s0 }
 0x7ed   :  { %1897 = vrot.lane.b32.xlu1 %v3868_v1, %s3710_s0 }
 0x841   :  { %v1576_v16 = vpop.xlane.xlu0 %1575 }
 0x842   :  { %3414 = vrcp.f32 %v1576_v16 }
 0x845   :  { %v1582_v56 = vpop.xlane.xlu0 %1581 }
 0x846   :  { %3416 = vrcp.f32 %v1582_v56 }
 0x849   :  { %v1588_v21 = vpop.xlane.xlu0 %1587 }
 0x84a   :  { %3418 = vrcp.f32 %v1588_v21 }
 0x84d   :  { %v1609_v42 = vpop.xlane.xlu1 %1608 }
 0x84e   :  { %3420 = vrcp.f32 %v1609_v42 }
 0x84f   :  { %v3415_v53 = vpop.eup %3414 }
 0x850   :  { %v1622_v59 = vmul.f32 %v3415_v53, %v4272_v48 }
 0x851   :  { %v1606_v61 = vpop.xlane.xlu0 %1605  ;;  %v1579_v47 = vpop.xlane.xlu1 %1578 }
 0x852   :  { %1635 = vst.msk [vmem:[#allocation15 + $0x20] sm:$0xff] %vm594_vm4, %v1622_v59  ;;  %3422 = vrcp.f32 %v1606_v61  ;;  %v1649_v16 = vsel %vm594_vm4, %v1622_v59, 0.0 }
 0x853   :  { %v3417_v60 = vpop.eup %3416  ;;  %3424 = vrcp.f32 %v1579_v47 }
 0x854   :  { %v1624_v1 = vmul.f32 %v3417_v60, %v4277_v2 }
 0x855   :  { %v1676_v9 = vpop.permute.xlu0 %1675  ;;  %v1585_v44 = vpop.xlane.xlu1 %1584 }
 0x856   :  { %1640 = vst.msk [vmem:[#allocation15 + $0x60] sm:$0xff] %vm594_vm4, %v1624_v1  ;;  %3132 = vmatpush3.bf16.msra.mxu1 %v1676_v9  ;;  %3426 = vrcp.f32 %v1585_v44  ;;  %v1650_v30 = vsel %vm594_vm4, %v1624_v1, 0.0 }
 0x857   :  { %v3419_v18 = vpop.eup %3418  ;;  %v1651_v42 = vadd.f32 %v1650_v30, %v1649_v16 }
 0x858   :  { %v1626_v57 = vmul.f32 %v3419_v18, %v4281_v49  ;;  %v3242_v18 = vld [vmem:[#allocation10 + $0x28] sm:$0xff]  }
 0x859   :  { %v1591_v48 = vpop.xlane.xlu1 %1590  ;;  %3143 = vmatprep.subr.bf16.mxu1 %v3242_v18 }
 0x85a   :  { %1645 = vst.msk [vmem:[#allocation15 + $0xa0] sm:$0xff] %vm594_vm4, %v1626_v57  ;;  %3428 = vrcp.f32 %v1591_v48  ;;  %v1652_v56 = vsel %vm594_vm4, %v1626_v57, 0.0  ;;  %v3243_v57 = vld [vmem:[#allocation10 + $0x20] sm:$0xff]  }
 0x85b   :  { %v3421_v32 = vpop.eup %3420  ;;  %v1653_v59 = vadd.f32 %v1652_v56, %v1651_v42 }
 0x85c   :  { %v1633_v29 = vmul.f32 %v3421_v32, %v4285_v7 }
 0x85d   :  { %v1723_v41 = vpop.permute.xlu1 %1722  ;;  %v1669_v1 = vmul.f32 0.33333334, %v1653_v59 }
 0x85e   :  { %1648 = vst.msk [vmem:[#allocation15 + $0x168] sm:$0xff] %vm594_vm4, %v1633_v29  ;;  %3138 = vmatpush3.bf16.msra.mxu0 %v1723_v41  ;;  %v1667_v2 = vsel %vm594_vm4, %v1633_v29, 0.0 }
 0x85f   :  { %v3423_v40 = vpop.eup %3422  ;;  %3151 = vmatprep.subr.bf16.mxu0 %v3706_v31  ;;  %v1668_v15 = vadd.f32 %v1667_v2, %v1666_v63 }
 0x860   :  { %v3425_v3 = vpop.eup %3424  ;;  %v1632_v51 = vmul.f32 %v3423_v40, %v4292_v24 }
 0x861   :  { %v1623_v49 = vmul.f32 %v3425_v3, %v4289_v28  ;;  %v1672_v27 = vmul.f32 0.33333334, %v1668_v15  ;;  %v1849_v24 = vpop.permute.xlu1 %1848 }
 0x862   :  { %1647 = vst.msk [vmem:[#allocation15 + $0x160] sm:$0xff] %vm594_vm4, %v1632_v51  ;;  %v1662_v46 = vsel %vm594_vm4, %v1632_v51, 0.0 }
 0x863   :  { %1636 = vst.msk [vmem:[#allocation15 + $0x28] sm:$0xff] %vm594_vm4, %v1623_v49  ;;  %v1663_v7 = vadd.f32 %v1662_v46, %v1661_v55  ;;  %v3427_v25 = vpop.eup %3426  ;;  %v1654_v55 = vsel %vm594_vm4, %v1623_v49, 0.0 }
 0x864   :  { %v1625_v14 = vmul.f32 %v3427_v25, %v4300_v37  ;;  %v1854_v37 = vsel %vm487_vm1, %v1849_v24, 0 }
 0x865   :  { %v1671_v36 = vmul.f32 0.33333334, %v1663_v7 }
 0x866   :  { %1641 = vst.msk [vmem:[#allocation15 + $0x68] sm:$0xff] %vm594_vm4, %v1625_v14  ;;  %v1655_v28 = vsel %vm594_vm4, %v1625_v14, 0.0  ;;  %v1900_v14 = vpop.permute.xlu1 %1899 }
 0x867   :  { %v1674_v63 = vpack.c.bf16 %v1672_v27, %v1671_v36  ;;  %v3429_v21 = vpop.eup %3428  ;;  %v1656_v61 = vadd.f32 %v1655_v28, %v1654_v55  ;;  %v1905_v56 = vsel %vm487_vm1, %v1900_v14, 0 }
 0x868   :  { %v1627_v53 = vmul.f32 %v3429_v21, %v4310_v20  ;;  %v1847_v20 = vpop.permute.xlu0 %1846 }
 0x869   :  { %3140 = vmatmul.mubr.msk.bf16.vlgmr.msra.gmra.mxu0 %vm594_vm4, %v1674_v63 }
 0x86a   :  { %3152 = vmatpush3.bf16.xpose.msra.mxu0 %v1854_v37  ;;  %3153 = vmatprep.mubr.msk.bf16.mxu0 %vm3707_vm0, %v3706_v31  ;;  %1646 = vst.msk [vmem:[#allocation15 + $0xa8] sm:$0xff] %vm594_vm4, %v1627_v53  ;;  %v1657_v47 = vsel %vm594_vm4, %v1627_v53, 0.0  ;;  %v1898_v42 = vpop.permute.xlu1 %1897 }
 0x86b   :  { %3163 = vmatprep.subr.bf16.mxu0 %v3706_v31  ;;  %v1658_v60 = vadd.f32 %v1657_v47, %v1656_v61 }
 0x86d   :  { %v1670_v9 = vmul.f32 0.33333334, %v1658_v60  ;;  %v1374_v60 = vadd.f32 %v4212_v8, %v4231_v52 }
 0x86f   :  { %v1673_v44 = vpack.c.bf16 %v1670_v9, %v1669_v1 }
 0x871   :  { %3154 = vmatmul.mubr.msk.bf16.vlgmr.msra.gmra.mxu0 %vm487_vm1, %v1847_v20  ;;  %3134 = vmatmul.mubr.msk.bf16.vlgmr.msra.gmra.mxu1 %vm594_vm4, %v1673_v44  ;;  %v1385_v44 = vadd.f32 %v4214_v19, %v4233_v17 }
 0x872   :  { %3165 = vmatprep.mubr.msk.bf16.mxu0 %vm3707_vm0, %v3706_v31  ;;  %3144 = vmatpush3.bf16.msra.mxu1 %v3242_v18 }
 0x873   :  { %3145 = vmatprep.subr.bf16.mxu1 %v3243_v57 }
 0x876   :  { %3146 = vmatpush3.bf16.msra.mxu1 %v3243_v57 }
 0x877   :  { %3157 = vmatprep.subr.bf16.mxu1 %v3706_v31 }
 0x929   :  { %v1762_v48 = vpop.f32.mrf.mxu0 }
 0x92b   :  { %v3141_v32 = vpop.f32.mrf.mxu0 }
 0x92d   :  { %v1765_v29 = vpop.f32.mrf.mxu0 }
 0x92e   :  { %v1770_v24 = vpack.c.bf16 %v1765_v29, %v1762_v48 }
 0x92f   :  { %v3142_v41 = vpop.f32.mrf.mxu0 }
 0x931   :  { %v1890_v40 = vpop.f32.mrf.mxu0  ;;  %v1715_v2 = vpop.f32.mrf.mxu1 }
 0x932   :  { %v1948_v3 = vadd.f32 %v1890_v40, %v3886_v23  ;;  %v1950_v46 = vadd.f32 %v1890_v40, %v3884_v22  ;;  %v1952_v63 = vadd.f32 %v1890_v40, %v3888_v26 }
 0x933   :  { %v3155_v51 = vpop.f32.mrf.mxu0  ;;  %v3135_v49 = vpop.f32.mrf.mxu1 }
 0x934   :  { %v1960_v15 = vsel %vm594_vm4, %v1948_v3, -inf  ;;  %v1966_v28 = vsel %vm594_vm4, %v1950_v46, -inf }
 0x935   :  { %1961 = vmax.xlane.f32.xlu0 %v1960_v15  ;;  %v1893_v7 = vpop.f32.mrf.mxu0  ;;  %v1718_v25 = vpop.f32.mrf.mxu1 }
 0x936   :  { %v1949_v30 = vadd.f32 %v1893_v7, %v3903_v43  ;;  %v1769_v36 = vpack.c.bf16 %v1718_v25, %v1715_v2  ;;  %v1953_v22 = vadd.f32 %v1893_v7, %v3897_v39  ;;  %v1972_v43 = vsel %vm594_vm4, %v1952_v63, -inf }
 0x937   :  { %v3156_v27 = vpop.f32.mrf.mxu0  ;;  %v3136_v16 = vpop.f32.mrf.mxu1  ;;  %v1951_v21 = vadd.f32 %v1893_v7, %v3894_v35  ;;  %v1382_v35 = vadd.f32 %v4207_v54, %v4229_v45  ;;  %v1377_v54 = vadd.f32 %v4216_v6, %v4235_v5 }
 0x938   :  { %v1963_v23 = vsel %vm594_vm4, %v1949_v30, -inf  ;;  %3147 = vmatprep.mubr.msk.bf16.mxu1 %vm487_vm1, %v1769_v36  ;;  %v1975_v26 = vsel %vm594_vm4, %v1953_v22, -inf }
 0x939   :  { %1967 = vmax.xlane.f32.xlu0 %v1966_v28  ;;  %1964 = vmax.xlane.f32.xlu1 %v1963_v23  ;;  %v1969_v39 = vsel %vm594_vm4, %v1951_v21, -inf }
 0x93a   :  { %3148 = vmatmul.mubr.msk.bf16.vlgmr.msra.gmra.mxu1 %vm487_vm1, %v1770_v24 }
 0x93b   :  { %3158 = vmatpush3.bf16.xpose.msra.mxu1 %v1905_v56  ;;  %3159 = vmatprep.mubr.msk.bf16.mxu1 %vm3707_vm0, %v3706_v31 }
 0x93c   :  { %3169 = vmatprep.subr.bf16.mxu1 %v3706_v31 }
 0x93d   :  { %1973 = vmax.xlane.f32.xlu0 %v1972_v43  ;;  %1976 = vmax.xlane.f32.xlu1 %v1975_v26 }
 0x941   :  { %1970 = vmax.xlane.f32.xlu0 %v1969_v39 }
 0x942   :  { %3160 = vmatmul.mubr.msk.bf16.vlgmr.msra.gmra.mxu1 %vm487_vm1, %v1898_v42 }
 0x943   :  { %3171 = vmatprep.mubr.msk.bf16.mxu1 %vm3707_vm0, %v3706_v31 }
 0x9be   :  { %v1962_v55 = vpop.xlane.xlu0 %1961 }
 0x9bf   :  { %v1996_v59 = vsub.f32 %v1948_v3, %v1962_v55 }
 0x9c1   :  { %v2008_v31 = vmul.f32 1.442695, %v1996_v59 }
 0x9c2   :  { %v1968_v53 = vpop.xlane.xlu0 %1967  ;;  %v1965_v61 = vpop.xlane.xlu1 %1964 }
 0x9c3   :  { %v1998_v9 = vsub.f32 %v1950_v46, %v1968_v53  ;;  %v1997_v18 = vsub.f32 %v1949_v30, %v1965_v61  ;;  %3430 = vpow2.f32 %v2008_v31 }
 0x9c5   :  { %v2012_v8 = vmul.f32 1.442695, %v1998_v9  ;;  %v2010_v40 = vmul.f32 1.442695, %v1997_v18 }
 0x9c6   :  { %v1974_v37 = vpop.xlane.xlu0 %1973  ;;  %v1977_v2 = vpop.xlane.xlu1 %1976 }
 0x9c7   :  { %v2000_v45 = vsub.f32 %v1952_v63, %v1974_v37  ;;  %3432 = vpow2.f32 %v2012_v8  ;;  %v2001_v49 = vsub.f32 %v1953_v22, %v1977_v2 }
 0x9c8   :  { %3434 = vpow2.f32 %v2010_v40 }
 0x9c9   :  { %v2016_v17 = vmul.f32 1.442695, %v2000_v45  ;;  %v2018_v30 = vmul.f32 1.442695, %v2001_v49 }
 0x9ca   :  { %v1971_v57 = vpop.xlane.xlu0 %1970 }
 0x9cb   :  { %v1999_v52 = vsub.f32 %v1951_v21, %v1971_v57  ;;  %3436 = vpow2.f32 %v2016_v17 }
 0x9cd   :  { %v2014_v15 = vmul.f32 1.442695, %v1999_v52 }
 0x9cf   :  { %3438 = vpow2.f32 %v2014_v15 }
 0x9d0   :  { %3440 = vpow2.f32 %v2018_v30  ;;  %v4412_v28 = vpop.eup %3430 }
 0x9d1   :  { %v2032_v23 = vsel %vm594_vm4, %v4412_v28, 0.0 }
 0x9fa   :  { %v3149_v47 = vpop.f32.mrf.mxu1 }
 0x9fb   :  { %v4389_v1 = vadd.f32 %v3149_v47, %v1382_v35 }
 0x9fc   :  { %v1827_v20 = vpop.f32.mrf.mxu1 }
 0x9fd   :  { %v4393_v48 = vadd.f32 %v1827_v20, %v1374_v60 }
 0x9fe   :  { %v3150_v32 = vpop.f32.mrf.mxu1 }
 0x9ff   :  { %v4397_v29 = vadd.f32 %v3150_v32, %v1385_v44 }
 0xa00   :  { %v1830_v41 = vpop.f32.mrf.mxu1 }
 0xa01   :  { %v4399_v3 = vadd.f32 %v1830_v41, %v1377_v54 }
 0xa02   :  { %v1941_v19 = vpop.f32.mrf.mxu1 }
 0xa03   :  { %v1954_v51 = vadd.f32 %v1941_v19, %v3908_v50  ;;  %v1956_v5 = vadd.f32 %v1941_v19, %v3919_v62  ;;  %v1958_v36 = vadd.f32 %v1941_v19, %v3930_v12  ;;  %v4414_v12 = vpop.eup %3432 }
 0xa04   :  { %v3161_v46 = vpop.f32.mrf.mxu1  ;;  %v4419_v63 = vpop.eup %3434  ;;  %v2038_v56 = vsel %vm594_vm4, %v4414_v12, 0.0 }
 0xa05   :  { %v1978_v6 = vsel %vm594_vm4, %v1954_v51, -inf  ;;  %v1984_v50 = vsel %vm594_vm4, %v1956_v5, -inf  ;;  %v1990_v16 = vsel %vm594_vm4, %v1958_v36, -inf  ;;  %v2035_v43 = vsel %vm594_vm4, %v4419_v63, 0.0 }
 0xa06   :  { %1979 = vmax.xlane.f32.xlu0 %v1978_v6  ;;  %v1944_v7 = vpop.f32.mrf.mxu1 }
 0xa07   :  { %v1955_v25 = vadd.f32 %v1944_v7, %v3917_v58  ;;  %v1957_v24 = vadd.f32 %v1944_v7, %v3925_v4  ;;  %v1959_v62 = vadd.f32 %v1944_v7, %v3928_v10  ;;  %v4421_v10 = vpop.eup %3436 }
 0xa08   :  { %v3162_v14 = vpop.f32.mrf.mxu1  ;;  %v4423_v22 = vpop.eup %3438  ;;  %v2044_v21 = vsel %vm594_vm4, %v4421_v10, 0.0 }
 0xa09   :  { %v1981_v27 = vsel %vm594_vm4, %v1955_v25, -inf  ;;  %v1987_v58 = vsel %vm594_vm4, %v1957_v24, -inf  ;;  %v1993_v4 = vsel %vm594_vm4, %v1959_v62, -inf  ;;  %v2041_v26 = vsel %vm594_vm4, %v4423_v22, 0.0  ;;  %v4433_v39 = vpop.eup %3440 }
 0xa0a   :  { %1985 = vmax.xlane.f32.xlu0 %v1984_v50  ;;  %1982 = vmax.xlane.f32.xlu1 %v1981_v27  ;;  %v2047_v42 = vsel %vm594_vm4, %v4433_v39, 0.0 }
 0xa0e   :  { %1991 = vmax.xlane.f32.xlu0 %v1990_v16  ;;  %1988 = vmax.xlane.f32.xlu1 %v1987_v58 }
 0xa12   :  { %2033 = vadd.xlane.f32.xlu0 %v2032_v23  ;;  %1994 = vmax.xlane.f32.xlu1 %v1993_v4 }
 0xa16   :  { %2039 = vadd.xlane.f32.xlu0 %v2038_v56  ;;  %2036 = vadd.xlane.f32.xlu1 %v2035_v43 }
 0xa1a   :  { %2045 = vadd.xlane.f32.xlu0 %v2044_v21  ;;  %2042 = vadd.xlane.f32.xlu1 %v2041_v26 }
 0xa1e   :  { %2048 = vadd.xlane.f32.xlu1 %v2047_v42 }
 0xa8f   :  { %v1980_v55 = vpop.xlane.xlu0 %1979 }
 0xa90   :  { %v2002_v53 = vsub.f32 %v1954_v51, %v1980_v55 }
 0xa92   :  { %v2020_v37 = vmul.f32 1.442695, %v2002_v53 }
 0xa93   :  { %v1986_v35 = vpop.xlane.xlu0 %1985  ;;  %v1983_v59 = vpop.xlane.xlu1 %1982 }
 0xa94   :  { %3442 = vpow2.f32 %v2020_v37  ;;  %v2004_v61 = vsub.f32 %v1956_v5, %v1986_v35  ;;  %v2003_v47 = vsub.f32 %v1955_v25, %v1983_v59 }
 0xa96   :  { %v2024_v60 = vmul.f32 1.442695, %v2004_v61  ;;  %v2022_v9 = vmul.f32 1.442695, %v2003_v47 }
 0xa97   :  { %v1992_v20 = vpop.xlane.xlu0 %1991  ;;  %v1989_v44 = vpop.xlane.xlu1 %1988 }
 0xa98   :  { %3444 = vpow2.f32 %v2024_v60  ;;  %v2006_v31 = vsub.f32 %v1958_v36, %v1992_v20  ;;  %v2005_v18 = vsub.f32 %v1957_v24, %v1989_v44 }
 0xa99   :  { %3446 = vpow2.f32 %v2022_v9 }
 0xa9a   :  { %v2028_v57 = vmul.f32 1.442695, %v2006_v31  ;;  %v2026_v32 = vmul.f32 1.442695, %v2005_v18 }
 0xa9b   :  { %v2034_v54 = vpop.xlane.xlu0 %2033  ;;  %v1995_v45 = vpop.xlane.xlu1 %1994 }
 0xa9c   :  { %3448 = vpow2.f32 %v2028_v57  ;;  %v2007_v8 = vsub.f32 %v1959_v62, %v1995_v45 }
 0xa9d   :  { %3450 = vpow2.f32 %v2026_v32 }
 0xa9e   :  { %3452 = vrcp.f32 %v2034_v54  ;;  %v2030_v52 = vmul.f32 1.442695, %v2007_v8 }
 0xa9f   :  { %v2040_v41 = vpop.xlane.xlu0 %2039  ;;  %v2037_v40 = vpop.xlane.xlu1 %2036 }
 0xaa0   :  { %3454 = vpow2.f32 %v2030_v52 }
 0xaa1   :  { %v4437_v2 = vpop.eup %3442  ;;  %3456 = vrcp.f32 %v2040_v41 }
 0xaa2   :  { %3458 = vrcp.f32 %v2037_v40  ;;  %v2050_v19 = vsel %vm594_vm4, %v4437_v2, 0.0 }
 0xaa3   :  { %2051 = vadd.xlane.f32.xlu0 %v2050_v19  ;;  %v2046_v17 = vpop.xlane.xlu0 %2045  ;;  %v2043_v51 = vpop.xlane.xlu1 %2042 }
 0xaa4   :  { %3460 = vrcp.f32 %v2046_v17 }
 0xaa5   :  { %v4441_v49 = vpop.eup %3444  ;;  %3462 = vrcp.f32 %v2043_v51 }
 0xaa6   :  { %v4443_v15 = vpop.eup %3446  ;;  %v2056_v46 = vsel %vm594_vm4, %v4441_v49, 0.0 }
 0xaa7   :  { %2057 = vadd.xlane.f32.xlu0 %v2056_v46  ;;  %v2053_v6 = vsel %vm594_vm4, %v4443_v15, 0.0  ;;  %v2049_v5 = vpop.xlane.xlu1 %2048 }
 0xaa8   :  { %2054 = vadd.xlane.f32.xlu1 %v2053_v6  ;;  %3464 = vrcp.f32 %v2049_v5 }
 0xaa9   :  { %v4449_v7 = vpop.eup %3448 }
 0xaaa   :  { %v4451_v25 = vpop.eup %3450  ;;  %v2062_v30 = vsel %vm594_vm4, %v4449_v7, 0.0 }
 0xaab   :  { %v3453_v14 = vpop.eup %3452  ;;  %2063 = vadd.xlane.f32.xlu0 %v2062_v30  ;;  %v2059_v36 = vsel %vm594_vm4, %v4451_v25, 0.0 }
 0xaac   :  { %v2080_v50 = vmul.f32 %v3453_v14, %v4412_v28  ;;  %2060 = vadd.xlane.f32.xlu1 %v2059_v36 }
 0xaad   :  { %v4458_v27 = vpop.eup %3454 }
 0xaae   :  { %v3457_v24 = vpop.eup %3456  ;;  %2093 = vst.msk [vmem:[#allocation15 + $0x30] sm:$0xff] %vm594_vm4, %v2080_v50  ;;  %v2065_v62 = vsel %vm594_vm4, %v4458_v27, 0.0  ;;  %v2107_v56 = vsel %vm594_vm4, %v2080_v50, 0.0 }
 0xaaf   :  { %v3459_v16 = vpop.eup %3458  ;;  %v2082_v58 = vmul.f32 %v3457_v24, %v4414_v12 }
 0xab0   :  { %v2081_v23 = vmul.f32 %v3459_v16, %v4419_v63  ;;  %2066 = vadd.xlane.f32.xlu1 %v2065_v62  ;;  %v3244_v16 = vld [vmem:[#allocation10 + $0x38] sm:$0xff]  }
 0xab1   :  { %v3461_v4 = vpop.eup %3460  ;;  %2098 = vst.msk [vmem:[#allocation15 + $0x70] sm:$0xff] %vm594_vm4, %v2082_v58  ;;  %v2108_v28 = vsel %vm594_vm4, %v2082_v58, 0.0  ;;  %v3245_v58 = vld [vmem:[#allocation10 + $0x30] sm:$0xff]  }
 0xab2   :  { %v3463_v43 = vpop.eup %3462  ;;  %2094 = vst.msk [vmem:[#allocation15 + $0x38] sm:$0xff] %vm594_vm4, %v2081_v23  ;;  %v2084_v21 = vmul.f32 %v3461_v4, %v4421_v10  ;;  %v2109_v26 = vadd.f32 %v2108_v28, %v2107_v56  ;;  %v2112_v55 = vsel %vm594_vm4, %v2081_v23, 0.0 }
 0xab3   :  { %v2083_v42 = vmul.f32 %v3463_v43, %v4423_v22 }
 0xab4   :  { %2103 = vst.msk [vmem:[#allocation15 + $0xb0] sm:$0xff] %vm594_vm4, %v2084_v21  ;;  %v2110_v12 = vsel %vm594_vm4, %v2084_v21, 0.0 }
 0xab5   :  { %v3465_v63 = vpop.eup %3464  ;;  %2099 = vst.msk [vmem:[#allocation15 + $0x78] sm:$0xff] %vm594_vm4, %v2083_v42  ;;  %v2113_v53 = vsel %vm594_vm4, %v2083_v42, 0.0  ;;  %v2111_v37 = vadd.f32 %v2110_v12, %v2109_v26 }
 0xab6   :  { %v2085_v35 = vmul.f32 %v3465_v63, %v4433_v39  ;;  %v2114_v59 = vadd.f32 %v2113_v53, %v2112_v55 }
 0xab7   :  { %v2127_v61 = vmul.f32 0.33333334, %v2111_v37  ;;  %v2911_v37 = vld [vmem:[%s4589_s6] ss:$0 sm:$0xff] }
 0xab8   :  { %2104 = vst.msk [vmem:[#allocation15 + $0xb8] sm:$0xff] %vm594_vm4, %v2085_v35  ;;  %v2115_v10 = vsel %vm594_vm4, %v2085_v35, 0.0 }
 0xab9   :  { %v2116_v22 = vadd.f32 %v2115_v10, %v2114_v59 }
 0xabb   :  { %v2128_v47 = vmul.f32 0.33333334, %v2116_v22 }
 0xabd   :  { %v2131_v60 = vpack.c.bf16 %v2128_v47, %v2127_v61 }
 0xac1   :  { %2180 = vrot.lane.b32.xlu1 %v3875_v11, %s3710_s0  ;;  %2133 = vrot.lane.b32.xlu0 %v3877_v13, %s3710_s0 }
 0xb2c   :  { %v2052_v9 = vpop.xlane.xlu0 %2051 }
 0xb2d   :  { %3466 = vrcp.f32 %v2052_v9  ;;  %v3494_v9 = vld [vmem:[#allocation2] sm:$0xff] }
 0xb30   :  { %v2058_v20 = vpop.xlane.xlu0 %2057 }
 0xb31   :  { %3468 = vrcp.f32 %v2058_v20  ;;  %v2055_v39 = vpop.xlane.xlu1 %2054 }
 0xb32   :  { %3470 = vrcp.f32 %v2055_v39 }
 0xb34   :  { %v2064_v44 = vpop.xlane.xlu0 %2063 }
 0xb35   :  { %3472 = vrcp.f32 %v2064_v44  ;;  %v2061_v31 = vpop.xlane.xlu1 %2060 }
 0xb36   :  { %3474 = vrcp.f32 %v2061_v31 }
 0xb38   :  { %v2134_v18 = vpop.permute.xlu0 %2133 }
 0xb39   :  { %v2067_v57 = vpop.xlane.xlu1 %2066  ;;  %3164 = vmatpush3.bf16.msra.mxu0 %v2134_v18  ;;  %v3496_v18 = vld [vmem:[#allocation2 + $0x8] sm:$0xff] }
 0xb3a   :  { %v3467_v32 = vpop.eup %3466  ;;  %3476 = vrcp.f32 %v2067_v57  ;;  %3175 = vmatprep.subr.bf16.mxu0 %v3244_v16 }
 0xb3b   :  { %v2086_v11 = vmul.f32 %v3467_v32, %v4437_v2  ;;  %v3497_v32 = vld [vmem:[#allocation2 + $0x10] sm:$0xff] }
 0xb3c   :  { %3166 = vmatmul.mubr.msk.bf16.vlgmr.msra.gmra.mxu0 %vm594_vm4, %v2131_v60 }
 0xb3d   :  { %2095 = vst.msk [vmem:[#allocation15 + $0xf0] sm:$0xff] %vm594_vm4, %v2086_v11  ;;  %v2181_v13 = vpop.permute.xlu1 %2180  ;;  %v2117_v51 = vsel %vm594_vm4, %v2086_v11, 0.0  ;;  %3176 = vmatpush3.bf16.msra.mxu0 %v3244_v16  ;;  %v3261_v16 = vld [vmem:[#allocation11 + $0x20] ss:$8 sps:$4 sm:$0xff]  }
 0xb3e   :  { %v3469_v54 = vpop.eup %3468  ;;  %3170 = vmatpush3.bf16.msra.mxu1 %v2181_v13  ;;  %3177 = vmatprep.subr.bf16.mxu0 %v3245_v58  ;;  %v3248_v13 = vld [vmem:[#allocation11 + $0x74] ss:$8 sps:$4 sm:$0xff]  }
 0xb3f   :  { %v3471_v45 = vpop.eup %3470  ;;  %v2088_v8 = vmul.f32 %v3469_v54, %v4441_v49  ;;  %2496 = vmatprep.subr.bf16.mxu1 %v3248_v13 }
 0xb40   :  { %v2087_v52 = vmul.f32 %v3471_v45, %v4443_v15 }
 0xb41   :  { %2100 = vst.msk [vmem:[#allocation15 + $0x130] sm:$0xff] %vm594_vm4, %v2088_v8  ;;  %v2118_v19 = vsel %vm594_vm4, %v2088_v8, 0.0  ;;  %3178 = vmatpush3.bf16.msra.mxu0 %v3245_v58  ;;  %v3266_v58 = vld [vmem:[#allocation11 + $0x14] ss:$8 sps:$4 sm:$0xff]  }
 0xb42   :  { %v3473_v41 = vpop.eup %3472  ;;  %2096 = vst.msk [vmem:[#allocation15 + $0xf8] sm:$0xff] %vm594_vm4, %v2087_v52  ;;  %v2119_v6 = vadd.f32 %v2118_v19, %v2117_v51  ;;  %v2122_v5 = vsel %vm594_vm4, %v2087_v52, 0.0 }
 0xb43   :  { %v3475_v40 = vpop.eup %3474  ;;  %v2090_v2 = vmul.f32 %v3473_v41, %v4449_v7 }
 0xb44   :  { %v2089_v17 = vmul.f32 %v3475_v40, %v4451_v25 }
 0xb45   :  { %2105 = vst.msk [vmem:[#allocation15 + $0x170] sm:$0xff] %vm594_vm4, %v2090_v2  ;;  %v2120_v15 = vsel %vm594_vm4, %v2090_v2, 0.0 }
 0xb46   :  { %2101 = vst.msk [vmem:[#allocation15 + $0x138] sm:$0xff] %vm594_vm4, %v2089_v17  ;;  %v2123_v49 = vsel %vm594_vm4, %v2089_v17, 0.0  ;;  %v2121_v30 = vadd.f32 %v2120_v15, %v2119_v6 }
 0xb47   :  { %v3477_v46 = vpop.eup %3476  ;;  %v2124_v14 = vadd.f32 %v2123_v49, %v2122_v5  ;;  %v3251_v5 = vld [vmem:[#allocation11 + $0x64] ss:$8 sps:$4 sm:$0xff]  }
 0xb48   :  { %v2091_v7 = vmul.f32 %v3477_v46, %v4458_v27  ;;  %v2129_v50 = vmul.f32 0.33333334, %v2121_v30  ;;  %v3254_v30 = vld [vmem:[#allocation11 + $0x54] ss:$8 sps:$4 sm:$0xff]  }
 0xb4a   :  { %2106 = vst.msk [vmem:[#allocation15 + $0x178] sm:$0xff] %vm594_vm4, %v2091_v7  ;;  %v2125_v25 = vsel %vm594_vm4, %v2091_v7, 0.0  ;;  %v3249_v7 = vld [vmem:[#allocation11 + $0x60] ss:$8 sps:$4 sm:$0xff]  }
 0xb4b   :  { %v2126_v36 = vadd.f32 %v2125_v25, %v2124_v14  ;;  %v3252_v14 = vld [vmem:[#allocation11 + $0x50] ss:$8 sps:$4 sm:$0xff]   ;;  %v3257_v25 = vld [vmem:[#allocation11 + $0x44] ss:$8 sps:$4 sm:$0xff]  }
 0xb4d   :  { %v2130_v24 = vmul.f32 0.33333334, %v2126_v36  ;;  %v3255_v36 = vld [vmem:[#allocation11 + $0x40] ss:$8 sps:$4 sm:$0xff]  }
 0xb4f   :  { %v2132_v62 = vpack.c.bf16 %v2130_v24, %v2129_v50  ;;  %v3258_v50 = vld [vmem:[#allocation11 + $0x30] ss:$8 sps:$4 sm:$0xff]   ;;  %v3260_v24 = vld [vmem:[#allocation11 + $0x34] ss:$8 sps:$4 sm:$0xff]  }
 0xb51   :  { %3172 = vmatmul.mubr.msk.bf16.vlgmr.msra.gmra.mxu1 %vm594_vm4, %v2132_v62  ;;  %v3263_v62 = vld [vmem:[#allocation11 + $0x24] ss:$8 sps:$4 sm:$0xff]  }
 0xb52   :  { %2528 = vmatprep.mubr.bf16.mxu1 %v3705_v0 }
 0xbfc   :  { %v2173_v27 = vpop.f32.mrf.mxu0 }
 0xbfe   :  { %v3167_v23 = vpop.f32.mrf.mxu0 }
 0xbff   :  { %v3269_v23 = vld [vmem:[#allocation11 + $0x4] ss:$8 sps:$4 sm:$0xff]  }
 0xc00   :  { %v2176_v4 = vpop.f32.mrf.mxu0 }
 0xc01   :  { %v2227_v56 = vpack.c.bf16 %v2176_v4, %v2173_v27  ;;  %v3264_v27 = vld [vmem:[#allocation11 + $0x10] ss:$8 sps:$4 sm:$0xff]   ;;  %v3267_v4 = vld [vmem:[#allocation11] ss:$8 sps:$4 sm:$0xff]  }
 0xc02   :  { %v3168_v28 = vpop.f32.mrf.mxu0 }
 0xc03   :  { %3179 = vmatprep.mubr.msk.bf16.mxu0 %vm487_vm1, %v2227_v56  ;;  %v3270_v56 = vld [vmem:[#allocation13 + $0x78] sm:$0xff]  }
 0xc04   :  { %v3271_v28 = vld [vmem:[#allocation13 + $0x38] sm:$0xff]   ;;  %3007 = vmatprep.subr.bf16.mxu0 %v3270_v56 }
 0xc11   :  { %v2220_v43 = vpop.f32.mrf.mxu1 }
 0xc13   :  { %v3173_v21 = vpop.f32.mrf.mxu1 }
 0xc14   :  { %v3273_v21 = vld [vmem:[#allocation13 + $0x30] sm:$0xff]  }
 0xc15   :  { %v2223_v26 = vpop.f32.mrf.mxu1 }
 0xc16   :  { %v2228_v42 = vpack.c.bf16 %v2223_v26, %v2220_v43  ;;  %v3272_v43 = vld [vmem:[#allocation13 + $0x70] sm:$0xff]   ;;  %v3274_v26 = vld [vmem:[#allocation13 + $0x68] sm:$0xff]  }
 0xc17   :  { %v3174_v12 = vpop.f32.mrf.mxu1 }
 0xc18   :  { %3180 = vmatmul.mubr.msk.bf16.vlgmr.msra.gmra.mxu0 %vm487_vm1, %v2228_v42  ;;  %v3275_v42 = vld [vmem:[#allocation13 + $0x28] sm:$0xff]   ;;  %v3276_v12 = vld [vmem:[#allocation13 + $0x60] sm:$0xff]  }
 0xc19   :  { %3008 = vmatpush3.bf16.msra.mxu0 %v3271_v28 }
 0xc1a   :  { %3009 = vmatprep.subr.bf16.mxu0 %v3272_v43 }
 0xc1d   :  { %3010 = vmatpush3.bf16.msra.mxu0 %v3273_v21 }
 0xc1e   :  { %3011 = vmatprep.subr.bf16.mxu0 %v3274_v26 }
 0xc21   :  { %3012 = vmatpush3.bf16.msra.mxu0 %v3275_v42 }
 0xc22   :  { %3013 = vmatprep.subr.bf16.mxu0 %v3276_v12 }
 0xcd8   :  { %v3181_v63 = vpop.f32.mrf.mxu0 }
 0xcd9   :  { %v2302_v61 = vadd.f32 %v3181_v63, %v4389_v1  ;;  %v3277_v63 = vld [vmem:[#allocation13 + $0x20] sm:$0xff]  }
 0xcda   :  { %v2285_v55 = vpop.f32.mrf.mxu0  ;;  %3014 = vmatpush3.bf16.msra.mxu0 %v3277_v63 }
 0xcdb   :  { %v2300_v53 = vadd.f32 %v2285_v55, %v4393_v48  ;;  %v2313_v44 = vadd.f32 %v2911_v37, %v2302_v61  ;;  %v3495_v48 = vld [vmem:[#allocation2 + $0x18] sm:$0xff] }
 0xcdc   :  { %v3182_v35 = vpop.f32.mrf.mxu0  ;;  %v3278_v55 = vld [vmem:[#allocation13 + $0x58] sm:$0xff]  }
 0xcdd   :  { %v2311_v59 = vadd.f32 %v2911_v37, %v2300_v53  ;;  %v2303_v10 = vadd.f32 %v3182_v35, %v4397_v29  ;;  %v2317_v11 = vadd.f32 %v3497_v32, %v2313_v44  ;;  %v3246_v29 = vld [vmem:[#allocation11 + $0x70] ss:$8 sps:$4 sm:$0xff]   ;;  %3015 = vmatprep.subr.bf16.mxu0 %v3278_v55 }
 0xcde   :  { %v2288_v22 = vpop.f32.mrf.mxu0  ;;  %2497 = vmatpush1.bf16.msra.mxu1 %v3246_v29  ;;  %v3279_v53 = vld [vmem:[#allocation13 + $0x18] sm:$0xff]  }
 0xcdf   :  { %v2314_v47 = vadd.f32 %v2911_v37, %v2303_v10  ;;  %v2301_v60 = vadd.f32 %v2288_v22, %v4399_v3  ;;  %v2315_v20 = vadd.f32 %v3494_v9, %v2311_v59  ;;  %2498 = vmatprep.subr.bf16.mxu1 %v3251_v5  ;;  %3016 = vmatpush3.bf16.msra.mxu0 %v3279_v53  ;;  %v2913_v29 = vld [vmem:[%s4591_s8] ss:$0 sm:$0xff]  ;;  %v3284_v5 = vld [vmem:[#allocation13 + $0x40] sm:$0xff]  }
 0xce1   :  { %v2312_v39 = vadd.f32 %v2911_v37, %v2301_v60  ;;  %2321 = vadd.xlane.f32.xlu1 %v2315_v20  ;;  %v2318_v31 = vadd.f32 %v3495_v48, %v2314_v47 }
 0xce2   :  { %2499 = vmatpush1.bf16.msra.mxu1 %v3249_v7  ;;  %v3285_v7 = vld [vmem:[#allocation13] sm:$0xff]  }
 0xce3   :  { %v2316_v57 = vadd.f32 %v3496_v18, %v2312_v39  ;;  %2500 = vmatprep.subr.bf16.mxu1 %v3254_v30  ;;  %v2912_v18 = vld [vmem:[%s4590_s7] ss:$0 sm:$0xff] }
 0xce5   :  { %2327 = vadd.xlane.f32.xlu1 %v2318_v31  ;;  %2323 = vadd.xlane.f32.xlu0 %v2316_v57 }
 0xce6   :  { %2501 = vmatpush1.bf16.msra.mxu1 %v3252_v14 }
 0xce7   :  { %2502 = vmatprep.subr.bf16.mxu1 %v3257_v25 }
 0xce9   :  { %2325 = vadd.xlane.f32.xlu0 %v2317_v11 }
 0xcea   :  { %2503 = vmatpush1.bf16.msra.mxu1 %v3255_v36 }
 0xceb   :  { %2504 = vmatprep.subr.bf16.mxu1 %v3260_v24 }
 0xcee   :  { %2505 = vmatpush1.bf16.msra.mxu1 %v3258_v50 }
 0xcef   :  { %2506 = vmatprep.subr.bf16.mxu1 %v3263_v62 }
 0xcf2   :  { %2507 = vmatpush1.bf16.msra.mxu1 %v3261_v16 }
 0xcf3   :  { %2508 = vmatprep.subr.bf16.mxu1 %v3266_v58 }
 0xcf6   :  { %2509 = vmatpush1.bf16.msra.mxu1 %v3264_v27 }
 0xcf7   :  { %2510 = vmatprep.subr.bf16.mxu1 %v3269_v23 }
 0xcfa   :  { %2511 = vmatpush1.bf16.msra.mxu1 %v3267_v4 }
 0xd6a   :  { %v2322_v1 = vpop.xlane.xlu1 %2321 }
 0xd6b   :  { %v2330_v3 = vmul.f32 0.0078125, %v2322_v1 }
 0xd6d   :  { %v4513_v54 = vsub.f32 %v2315_v20, %v2330_v3 }
 0xd6e   :  { %v2328_v45 = vpop.xlane.xlu1 %2327  ;;  %v2324_v8 = vpop.xlane.xlu0 %2323 }
 0xd6f   :  { %v2333_v52 = vmul.f32 0.0078125, %v2328_v45  ;;  %v2331_v41 = vmul.f32 0.0078125, %v2324_v8  ;;  %v2338_v40 = vmul.f32 %v4513_v54, %v4513_v54 }
 0xd71   :  { %v4517_v2 = vsub.f32 %v2316_v57, %v2331_v41  ;;  %2342 = vadd.xlane.f32.xlu0 %v2338_v40  ;;  %v4519_v17 = vsub.f32 %v2318_v31, %v2333_v52 }
 0xd72   :  { %v2326_v19 = vpop.xlane.xlu0 %2325 }
 0xd73   :  { %v2332_v51 = vmul.f32 0.0078125, %v2326_v19  ;;  %v2339_v49 = vmul.f32 %v4517_v2, %v4517_v2  ;;  %v2341_v46 = vmul.f32 %v4519_v17, %v4519_v17 }
 0xd75   :  { %v4523_v15 = vsub.f32 %v2317_v11, %v2332_v51  ;;  %2344 = vadd.xlane.f32.xlu1 %v2339_v49 }
 0xd77   :  { %v2340_v6 = vmul.f32 %v4523_v15, %v4523_v15 }
 0xd79   :  { %2348 = vadd.xlane.f32.xlu1 %v2341_v46  ;;  %2346 = vadd.xlane.f32.xlu0 %v2340_v6  ;;  %v3280_v46 = vld [vmem:[#allocation13 + $0x50] sm:$0xff]   ;;  %v3283_v6 = vld [vmem:[#allocation13 + $0x8] sm:$0xff]  }
 0xd7a   :  { %3017 = vmatprep.subr.bf16.mxu0 %v3280_v46 }
 0xdfa   :  { %v2343_v37 = vpop.xlane.xlu0 %2342 }
 0xdfb   :  { %v2350_v35 = vmul.f32 0.0078125, %v2343_v37 }
 0xdfd   :  { %v2354_v59 = vadd.f32 1e-05, %v2350_v35 }
 0xdfe   :  { %v2345_v10 = vpop.xlane.xlu1 %2344 }
 0xdff   :  { %3478 = vrsqrt.f32 %v2354_v59  ;;  %v2351_v22 = vmul.f32 0.0078125, %v2345_v10 }
 0xe01   :  { %v2355_v61 = vadd.f32 1e-05, %v2351_v22 }
 0xe02   :  { %v2349_v47 = vpop.xlane.xlu1 %2348  ;;  %v2347_v60 = vpop.xlane.xlu0 %2346 }
 0xe03   :  { %3480 = vrsqrt.f32 %v2355_v61  ;;  %v2353_v9 = vmul.f32 0.0078125, %v2349_v47  ;;  %v2352_v20 = vmul.f32 0.0078125, %v2347_v60  ;;  %v2930_v47 = vld [vmem:[%s4595_s12] ss:$0 sm:$0xff]  ;;  %s3711_s12 = smov [#allocation15]  }
 0xe04   :  { %s2836_s23 = sshll.u32 %s3711_s12, 4  ;;  %s2837_s23 = int_to_ptr.vmem [resolvable:$true] %s2836_s23 }
 0xe05   :  { %v2357_v39 = vadd.f32 1e-05, %v2353_v9  ;;  %v2356_v44 = vadd.f32 1e-05, %v2352_v20  ;;  %s3638_s1 = scalar_lea.vmem %s2837_s23, 6144  ;;  %p3643_p8 = scmp.lt.s32.totalorder %s2837_s23, %s2837_s23 }
 0xe06   :  { %p3639_p7 = scmp.ne.s32.totalorder %s2837_s23, %s3638_s1  ;;  %p3644_p9 = scmp.lt.s32.totalorder %s3638_s1, %s3638_s1 }
 0xe07   :  { %3482 = vrsqrt.f32 %v2357_v39 }
 0xe08   :  { %3484 = vrsqrt.f32 %v2356_v44  ;;  %p3645_p10 = por %p3644_p9, %p3643_p8 }
 0xe0a   :  { %p3646_p11 = pnand %p3645_p10, %p3639_p7 }
 0xe0c   :  { %v3479_v48 = vpop.eup %3478 }
 0xe0d   :  { %v2362_v31 = vmul.f32 %v3479_v48, %v4513_v54 }
 0xe0f   :  { %v2372_v11 = vmul.f32 %v2912_v18, %v2362_v31 }
 0xe10   :  { %v3481_v57 = vpop.eup %3480 }
 0xe11   :  { %v2363_v32 = vmul.f32 %v3481_v57, %v4517_v2  ;;  %v4537_v45 = vadd.f32 %v2913_v29, %v2372_v11 }
 0xe13   :  { %v2373_v13 = vmul.f32 %v2912_v18, %v2363_v32 }
 0xe14   :  { %v3483_v1 = vpop.eup %3482 }
 0xe15   :  { %v3485_v3 = vpop.eup %3484  ;;  %v4539_v8 = vadd.f32 %v2913_v29, %v2373_v13  ;;  %v2365_v54 = vmul.f32 %v3483_v1, %v4519_v17  ;;  %v3281_v17 = vld [vmem:[#allocation13 + $0x10] sm:$0xff]  }
 0xe16   :  { %v2364_v52 = vmul.f32 %v3485_v3, %v4523_v15  ;;  %3018 = vmatpush3.bf16.msra.mxu0 %v3281_v17  ;;  %v3282_v15 = vld [vmem:[#allocation13 + $0x48] sm:$0xff]  }
 0xe17   :  { %v2386_v41 = vpack.c.bf16 %v4539_v8, %v4537_v45  ;;  %v2375_v40 = vmul.f32 %v2912_v18, %v2365_v54  ;;  %3019 = vmatprep.subr.bf16.mxu0 %v3282_v15 }
 0xe18   :  { %v2374_v2 = vmul.f32 %v2912_v18, %v2364_v52 }
 0xe19   :  { %2529 = vmatmul.mubr.bf16.vlgmr.msra.gmra.mxu1 %v2386_v41  ;;  %v4548_v51 = vadd.f32 %v2913_v29, %v2375_v40 }
 0xe1a   :  { %2538 = vmatprep.mubr.bf16.mxu1 %v3705_v0  ;;  %v4546_v19 = vadd.f32 %v2913_v29, %v2374_v2  ;;  %3020 = vmatpush3.bf16.msra.mxu0 %v3283_v6  ;;  %v2404_v0 = vld [vmem:[%s4593_s10] sm:$0x3] }
 0xe1b   :  { %3021 = vmatprep.subr.bf16.mxu0 %v3284_v5  ;;  %v2413_v14 = vrot.slane %v2404_v0, %v196_v34  ;;  %v2409_v25 = vrot.slane %v2404_v0, %v3847_v38 }
 0xe1c   :  { %v2387_v49 = vpack.c.bf16 %v4548_v51, %v4546_v19 }
 0xe1e   :  { %3022 = vmatpush3.bf16.msra.mxu0 %v3285_v7 }
 0xe21   :  { %2539 = vmatmul.mubr.bf16.gmra.mxu1 %v2387_v49 }
 0xed9   :  { %v2530_v30 = vpop.f32.mrf.mxu1 }
 0xeda   :  { %v2531_v16 = vadd.f32 %v2530_v30, %v2409_v25 }
 0xedb   :  { %v2532_v36 = vpop.f32.mrf.mxu1 }
 0xedc   :  { %v2533_v24 = vadd.f32 %v2532_v36, %v2413_v14  ;;  %v2549_v43 = vmax.f32 %v2531_v16, 0.0 }
 0xedd   :  { %v2534_v50 = vpop.f32.mrf.mxu1 }
 0xede   :  { %v2535_v62 = vadd.f32 %v2534_v50, %v2409_v25  ;;  %v2550_v56 = vmax.f32 %v2533_v24, 0.0 }
 0xedf   :  { %v2536_v58 = vpop.f32.mrf.mxu1 }
 0xee0   :  { %v2537_v27 = vadd.f32 %v2536_v58, %v2413_v14  ;;  %v2551_v23 = vmax.f32 %v2535_v62, 0.0 }
 0xee1   :  { %v2540_v4 = vpop.f32.mrf.mxu1 }
 0xee2   :  { %v2552_v28 = vmax.f32 %v2537_v27, 0.0  ;;  %v2557_v42 = vpack.c.bf16 %v2551_v23, %v2549_v43  ;;  %v2541_v38 = vadd.f32 %v2540_v4, %v2409_v25 }
 0xee3   :  { %v2542_v21 = vpop.f32.mrf.mxu1 }
 0xee4   :  { %v2558_v26 = vpack.c.bf16 %v2552_v28, %v2550_v56  ;;  %v2543_v33 = vadd.f32 %v2542_v21, %v2413_v14  ;;  %v2553_v59 = vmax.f32 %v2541_v38, 0.0 }
 0xee5   :  { %v2544_v12 = vpop.f32.mrf.mxu1 }
 0xee6   :  { %v2545_v34 = vadd.f32 %v2544_v12, %v2409_v25  ;;  %2728 = vmatprep.mubr.bf16.mxu0 %v2558_v26  ;;  %v2554_v37 = vmax.f32 %v2543_v33, 0.0 }
 0xee7   :  { %v2546_v63 = vpop.f32.mrf.mxu1  ;;  %2729 = vmatmul.mubr.bf16.vlgmr.msra.gmra.mxu0 %v2557_v42 }
 0xee8   :  { %v2547_v55 = vadd.f32 %v2546_v63, %v2413_v14  ;;  %v2555_v53 = vmax.f32 %v2545_v34, 0.0 }
 0xeea   :  { %v2556_v35 = vmax.f32 %v2547_v55, 0.0  ;;  %v2559_v22 = vpack.c.bf16 %v2555_v53, %v2553_v59 }
 0xeec   :  { %v2560_v10 = vpack.c.bf16 %v2556_v35, %v2554_v37 }
 0xeee   :  { %2736 = vmatprep.mubr.bf16.mxu0 %v2560_v10 }
 0xeef   :  { %2737 = vmatmul.mubr.bf16.gmra.mxu0 %v2559_v22 }
 0xfa7   :  { %v3023_v61 = vpop.f32.mrf.mxu0 }
 0xfa9   :  { %v3024_v60 = vpop.f32.mrf.mxu0 }
 0xfaa   :  { %v3025_v9 = vadd.f32 %v3024_v60, %v3023_v61 }
 0xfab   :  { %v3026_v20 = vpop.f32.mrf.mxu0 }
 0xfac   :  { %v2731_v39 = vadd.f32 %v3025_v9, %v2930_v47 }
 0xfad   :  { %v3027_v44 = vpop.f32.mrf.mxu0 }
 0xfae   :  { %v3028_v48 = vadd.f32 %v3027_v44, %v3026_v20  ;;  %v2745_v31 = vadd.f32 %v2731_v39, %v4537_v45 }
 0xfaf   :  { %v3029_v18 = vpop.f32.mrf.mxu0 }
 0xfb0   :  { %v2734_v57 = vadd.f32 %v3028_v48, %v2930_v47  ;;  %2751 = vadd.xlane.f32.xlu0 %v2745_v31 }
 0xfb1   :  { %v3030_v32 = vpop.f32.mrf.mxu0 }
 0xfb2   :  { %v3031_v11 = vadd.f32 %v3030_v32, %v3029_v18  ;;  %v2746_v29 = vadd.f32 %v2734_v57, %v4539_v8 }
 0xfb3   :  { %v3032_v13 = vpop.f32.mrf.mxu0 }
 0xfb4   :  { %v2739_v1 = vadd.f32 %v3031_v11, %v2930_v47  ;;  %2753 = vadd.xlane.f32.xlu1 %v2746_v29 }
 0xfb5   :  { %v3033_v3 = vpop.f32.mrf.mxu0 }
 0xfb6   :  { %v3034_v54 = vadd.f32 %v3033_v3, %v3032_v13  ;;  %v2747_v52 = vadd.f32 %v2739_v1, %v4546_v19 }
 0xfb8   :  { %v2742_v41 = vadd.f32 %v3034_v54, %v2930_v47  ;;  %2755 = vadd.xlane.f32.xlu0 %v2747_v52 }
 0xfba   :  { %v2748_v40 = vadd.f32 %v2742_v41, %v4548_v51 }
 0xfbc   :  { %2757 = vadd.xlane.f32.xlu1 %v2748_v40 }
0x1039   :  { %v2752_v45 = vpop.xlane.xlu0 %2751 }
0x103a   :  { %v2759_v2 = vmul.f32 0.0078125, %v2752_v45 }
0x103c   :  { %v2763_v49 = vsub.f32 %v2745_v31, %v2759_v2 }
0x103d   :  { %v2754_v46 = vpop.xlane.xlu1 %2753 }
0x103e   :  { %v2760_v17 = vmul.f32 0.0078125, %v2754_v46  ;;  %v2767_v15 = vmul.f32 %v2763_v49, %v2763_v49 }
0x1040   :  { %v2764_v6 = vsub.f32 %v2746_v29, %v2760_v17  ;;  %2771 = vadd.xlane.f32.xlu0 %v2767_v15 }
0x1041   :  { %v2756_v8 = vpop.xlane.xlu0 %2755 }
0x1042   :  { %v2761_v5 = vmul.f32 0.0078125, %v2756_v8  ;;  %v2768_v7 = vmul.f32 %v2764_v6, %v2764_v6 }
0x1044   :  { %v2765_v0 = vsub.f32 %v2747_v52, %v2761_v5  ;;  %2773 = vadd.xlane.f32.xlu1 %v2768_v7 }
0x1045   :  { %v2758_v30 = vpop.xlane.xlu1 %2757 }
0x1046   :  { %v2762_v19 = vmul.f32 0.0078125, %v2758_v30  ;;  %v2769_v14 = vmul.f32 %v2765_v0, %v2765_v0 }
0x1048   :  { %v2766_v25 = vsub.f32 %v2748_v40, %v2762_v19  ;;  %2775 = vadd.xlane.f32.xlu0 %v2769_v14 }
0x104a   :  { %v2770_v51 = vmul.f32 %v2766_v25, %v2766_v25 }
0x104c   :  { %2777 = vadd.xlane.f32.xlu1 %v2770_v51 }
0x104d   :  { %3649 = shalt.err (!%p3646_p11)
}
0x104e   :  { %2842 = dma.vmem_to_hbm [thread:$0]  %s2837_s23, 6144, %s4599_s16, [#allocation16], %s3698_s24, %s3698_s24, %s3699_s25  }
0x104f   :  { %v2947_v26 = vld [vmem:[%s4596_s13] ss:$0 sm:$0xff]  ;;  %s3712_s13 = smov [#allocation14]  }
0x1050   :  { %v2948_v12 = vld [vmem:[%s4597_s14] ss:$0 sm:$0xff]  ;;  %s2824_s29 = sshll.u32 %s3712_s13, 4  ;;  %s2825_s29 = int_to_ptr.vmem [resolvable:$true] %s2824_s29 }
0x1051   :  { %s3658_s14 = scalar_lea.vmem %s2825_s29, 512  ;;  %p3663_p13 = scmp.lt.s32.totalorder %s2825_s29, %s2825_s29 }
0x1052   :  { %p3659_p12 = scmp.ne.s32.totalorder %s2825_s29, %s3658_s14  ;;  %p3664_p0 = scmp.lt.s32.totalorder %s3658_s14, %s3658_s14 }
0x1054   :  { %p3665_p1 = por %p3664_p0, %p3663_p13 }
0x1056   :  { %p3666_p2 = pnand %p3665_p1, %p3659_p12 }
0x10c9   :  { %v2772_v36 = vpop.xlane.xlu0 %2771 }
0x10ca   :  { %v2779_v50 = vmul.f32 0.0078125, %v2772_v36 }
0x10cc   :  { %v2783_v24 = vadd.f32 1e-05, %v2779_v50 }
0x10cd   :  { %v2774_v62 = vpop.xlane.xlu1 %2773 }
0x10ce   :  { %3486 = vrsqrt.f32 %v2783_v24  ;;  %v2780_v16 = vmul.f32 0.0078125, %v2774_v62 }
0x10d0   :  { %v2784_v58 = vadd.f32 1e-05, %v2780_v16 }
0x10d1   :  { %v2776_v27 = vpop.xlane.xlu0 %2775 }
0x10d2   :  { %3488 = vrsqrt.f32 %v2784_v58  ;;  %v2781_v23 = vmul.f32 0.0078125, %v2776_v27 }
0x10d4   :  { %v2785_v4 = vadd.f32 1e-05, %v2781_v23 }
0x10d5   :  { %v2778_v56 = vpop.xlane.xlu1 %2777 }
0x10d6   :  { %3490 = vrsqrt.f32 %v2785_v4  ;;  %v2782_v28 = vmul.f32 0.0078125, %v2778_v56 }
0x10d8   :  { %v2786_v43 = vadd.f32 1e-05, %v2782_v28 }
0x10da   :  { %3492 = vrsqrt.f32 %v2786_v43 }
0x10db   :  { %v3487_v21 = vpop.eup %3486 }
0x10dc   :  { %v2791_v42 = vmul.f32 %v3487_v21, %v2763_v49 }
0x10de   :  { %v2801_v33 = vmul.f32 %v2947_v26, %v2791_v42 }
0x10df   :  { %v3489_v34 = vpop.eup %3488 }
0x10e0   :  { %v2792_v38 = vmul.f32 %v3489_v34, %v2764_v6  ;;  %v2811_v63 = vadd.f32 %v2948_v12, %v2801_v33 }
0x10e2   :  { %v2802_v55 = vmul.f32 %v2947_v26, %v2792_v38  ;;  %2815 = vst [vmem:[#allocation14] sm:$0xff] %v2811_v63 }
0x10e3   :  { %v3491_v53 = vpop.eup %3490 }
0x10e4   :  { %v2793_v37 = vmul.f32 %v3491_v53, %v2765_v0  ;;  %v2812_v35 = vadd.f32 %v2948_v12, %v2802_v55 }
0x10e6   :  { %v2803_v59 = vmul.f32 %v2947_v26, %v2793_v37  ;;  %2816 = vst [vmem:[#allocation14 + $0x8] sm:$0xff] %v2812_v35 }
0x10e7   :  { %v3493_v10 = vpop.eup %3492 }
0x10e8   :  { %v2794_v22 = vmul.f32 %v3493_v10, %v2766_v25  ;;  %v2813_v61 = vadd.f32 %v2948_v12, %v2803_v59 }
0x10ea   :  { %v2804_v47 = vmul.f32 %v2947_v26, %v2794_v22  ;;  %2817 = vst [vmem:[#allocation14 + $0x10] sm:$0xff] %v2813_v61 }
0x10ec   :  { %v2814_v60 = vadd.f32 %v2948_v12, %v2804_v47 }
0x10ee   :  { %2818 = vst [vmem:[#allocation14 + $0x18] sm:$0xff] %v2814_v60 }
0x10ef   :  { %3669 = shalt.err (!%p3666_p2)
}
0x10f0   :  { %2830 = dma.vmem_to_hbm [thread:$0]  %s2825_s29, 512, %s4598_s15, [#allocation4], %s3698_s24, %s3698_s24, %s3699_s25  }
0x10f1   :  { %3686 = dma.done.wait [#allocation4], 512  }
0x10f2   :  { %3687 = vsyncadd [#allocation4], 4294966784 }
0x10f3   :  { %3688 = dma.done.wait [#allocation16], 6144  }
0x10f4   :  { %3689 = vsyncadd [#allocation16], 4294961152 }
0x10f5   :  { %2849 = vsyncpa [#allocation3], 1 }
0x10f6   :  { %2850 = vsyncpa [#allocation6], 1 }
0x10f7   :  { %2851 = vsyncpa [#allocation9], 1 }
0x10f8   :  { %2852 = vsyncpa [#allocation12], 1 }
0x10f9   :  { %2853 = vsyncpa [#allocation4], 1 }
0x10fa   :  { %2854 = vsyncpa [#allocation16], 1 }

</bundles_post_ra>
